<compile_context>
chip_gen: v7x
topology: tpu7x:2x2x1
jax: 0.10.0
libtpu: 0.0.40
codegen_flags: <defaults>
</compile_context>

<pallas_src>
import numpy as np
import jax
import jax.numpy as jnp
from jax import lax
from jax.experimental import pallas as pl
from jax.experimental.pallas import tpu as pltpu

_FUSED_MAX_C = 8          # lane-dense VPU path for channel counts <= this
_LO = 16                  # MXU-path scratch interior W-offset (bf16 sublane packing = 16)


# ----------------------------------------------------------------------------
# Kernels
# ----------------------------------------------------------------------------
def _lres_kernel_fused(x_ref, wt1_ref, b1_ref, wt2_ref, b2_ref, out_ref,
                       xpad_ref, mid_ref):
    """Small-C, lane-dense VPU path.

    x_ref/out_ref: (nb, H, W*C) f32 fused-NHWC blocks (lane-dense).
    wt*_ref:       (3, 4C-1, W*C) f32 per-lane conv weights (BN scale folded);
                   entry [ky, s-1, q] multiplies padded-row lane q+s of source
                   row h+ky.
    b*_ref:        (1, W*C) f32 folded BN bias (conv bias included).
    xpad_ref/mid_ref: (nb, H+2, W*C + 4C) f32 zero-halo scratch; interior at
                   rows [1:H+1], lanes [2C : 2C + W*C].
    """
    nb, H, WC = out_ref.shape
    Lp = xpad_ref.shape[2]
    off = (Lp - WC) // 2          # = 2*C, interior lane offset
    S = wt1_ref.shape[1]          # = 4*C - 1

    # Zero halo: a full dense (unmasked) clear of the small padded buffers
    # every step.  A "first step only" gate is not reliable here: scratch is
    # uninitialized and under megacore each TensorCore starts at a different
    # program_id, so there is no safe per-core first-iteration predicate.
    xpad_ref[...] = jnp.zeros_like(xpad_ref)
    mid_ref[...] = jnp.zeros_like(mid_ref)

    xv = x_ref[...].astype(jnp.float32)            # loaded once; also the residual
    xpad_ref[:, 1:H + 1, off:off + WC] = xv

    def conv_bn_relu(src_ref, wt_ref, b_ref):
        wt = wt_ref[...]                           # (3, S, WC), tiny
        srcv = src_ref[...]                        # (nb, H+2, Lp)
        acc = jnp.zeros((nb, H, WC), jnp.float32)
        for ky in range(3):
            rows = srcv[:, ky:ky + H, :]           # (nb, H, Lp)
            for si in range(S):
                s = si + 1
                acc = acc + rows[:, :, s:s + WC] * wt[ky, si:si + 1, :]
        return jnp.maximum(acc + b_ref[...], 0.0)

    y1 = conv_bn_relu(xpad_ref, wt1_ref, b1_ref)   # (nb, H, WC) f32
    mid_ref[:, 1:H + 1, off:off + WC] = y1         # lane-dense mid store
    y2 = conv_bn_relu(mid_ref, wt2_ref, b2_ref)

    out_ref[...] = (xv + y2).astype(out_ref.dtype)  # lane-dense output store


def _lres_kernel_mxu(x_ref, w1_ref, sb1_ref, w2_ref, sb2_ref, out_ref,
                     xpad_ref, mid_ref):
    """Large-C MXU path: per-tap accumulating dots (no im2col concat).

    x_ref:  (nb, H, W, Cin) f32 ; out_ref: (nb, H, W, Cout)
    w*_ref: (9, Cin, C*) bf16 per-tap weights, tap k = ky*3 + kx
    sb*_ref:(2, C*) f32, row 0 = folded BN scale, row 1 = folded BN bias
    xpad_ref/mid_ref: (nb, H+2, _LO+W+1, Cin) bf16 zero-halo scratch,
                   interior at rows [1:H+1], W [_LO:_LO+W].
    """
    nb, H, W, Cout = out_ref.shape
    Cin = x_ref.shape[3]
    M = nb * H * W

    xpad_ref[...] = jnp.zeros_like(xpad_ref)
    mid_ref[...] = jnp.zeros_like(mid_ref)

    xv = x_ref[...].astype(jnp.float32)            # loaded once; also the residual
    xpad_ref[:, 1:H + 1, _LO:_LO + W, :] = xv.astype(jnp.bfloat16)

    def conv_bn_relu(src_ref, w_ref, sb_ref):
        wv = w_ref[...]                            # (9, Cin, C*) bf16
        srcv = src_ref[...]                        # (nb, H+2, Wp, Cin) bf16
        cout = wv.shape[2]
        acc = jnp.zeros((M, cout), jnp.float32)
        for ky in range(3):
            rows = srcv[:, ky:ky + H, :, :]
            for kx in range(3):
                patch = rows[:, :, _LO - 1 + kx:_LO - 1 + kx + W, :].reshape(M, Cin)
                acc = acc + jnp.dot(patch, wv[ky * 3 + kx],
                                    preferred_element_type=jnp.float32)
        return jnp.maximum(acc * sb_ref[0:1, :] + sb_ref[1:2, :], 0.0)

    y1 = conv_bn_relu(xpad_ref, w1_ref, sb1_ref)   # (M, Cin)
    mid_ref[:, 1:H + 1, _LO:_LO + W, :] = (
        y1.reshape(nb, H, W, Cin).astype(jnp.bfloat16))
    y2 = conv_bn_relu(mid_ref, w2_ref, sb2_ref)    # (M, Cout)

    out_ref[...] = (xv + y2.reshape(nb, H, W, Cout)).astype(out_ref.dtype)


# ----------------------------------------------------------------------------
# Parameter packing (host-side, numpy)
# ----------------------------------------------------------------------------
def _fold_bn(conv_bias, gamma, beta, mean, var, eps=1e-5):
    scale = np.asarray(gamma, np.float32) / np.sqrt(np.asarray(var, np.float32) + eps)
    bias = (np.asarray(beta, np.float32)
            + (np.asarray(conv_bias, np.float32) - np.asarray(mean, np.float32)) * scale)
    return scale.astype(np.float32), bias.astype(np.float32)


def _fused_tables(w_oihw, scale, bias, W):
    """Per-lane weight table for the fused path.

    wtab[ky, s-1, q] (q = w*C + co) is the weight applied to padded-row lane
    q + s of source row h + ky, with the BN scale folded in.  s = 2C +
    (kx-1)*C + (ci-co) is always >= 1; colliding (kx, ci) pairs are summed
    (at most one is a valid channel per lane, so no double counting).
    """
    w = np.asarray(w_oihw, np.float32)            # (C, C, 3, 3) = (out, in, kh, kw)
    C = w.shape[0]
    WC = W * C
    S = 4 * C - 1
    co = np.arange(WC) % C
    wtab = np.zeros((3, S, WC), np.float32)
    for ky in range(3):
        for kx in range(3):
            for delta in range(-(C - 1), C):
                s = 2 * C + (kx - 1) * C + delta
                ci = co + delta
                valid = (ci >= 0) & (ci < C)
                vals = w[co, np.clip(ci, 0, C - 1), ky, kx] * scale[co]
                wtab[ky, s - 1] += np.where(valid, vals, 0.0)
    brow = bias[co].reshape(1, WC).astype(np.float32)
    return jnp.asarray(wtab), jnp.asarray(brow)


def _mxu_tables(w_oihw, scale, bias):
    w = np.asarray(w_oihw, np.float32)            # (Cout, Cin, 3, 3)
    cout, cin = int(w.shape[0]), int(w.shape[1])
    taps = np.transpose(w, (2, 3, 1, 0)).reshape(9, cin, cout)   # tap k = ky*3+kx
    sb = np.stack([scale, bias], axis=0).astype(np.float32)      # (2, Cout)
    return jnp.asarray(taps).astype(jnp.bfloat16), jnp.asarray(sb)


# ----------------------------------------------------------------------------
# VMEM model / tiling
# ----------------------------------------------------------------------------
def _round_up(x, m):
    return -(-int(x) // m) * m


def _prod(xs):
    p = 1
    for v in xs:
        p *= int(v)
    return p


def _padded_bytes(shape, itemsize, sublane):
    """Layout-padding-aware buffer size: minor dim -> 128 lanes, second-minor
    -> the sublane tile for the dtype (review: unpadded estimates undercount
    by up to 128/C at small channel counts)."""
    shape = tuple(int(d) for d in shape)
    if len(shape) == 0:
        return itemsize
    if len(shape) == 1:
        return _round_up(shape[0], 128) * itemsize
    lead = _prod(shape[:-2])
    return lead * _round_up(shape[-2], sublane) * _round_up(shape[-1], 128) * itemsize


def _vmem_estimate_fused(nb, H, W, C):
    WC = W * C
    Lp = WC + 4 * C
    blk_in = _padded_bytes((nb, H, WC), 4, 8)
    blk_out = blk_in
    wts = 2 * (_padded_bytes((3, 4 * C - 1, WC), 4, 8) + _padded_bytes((1, WC), 4, 8))
    scr = 2 * _padded_bytes((nb, H + 2, Lp), 4, 8)
    live = 4 * _padded_bytes((nb, H, Lp), 4, 8)          # srcv / rows / acc / xv
    return 2 * (blk_in + blk_out + wts) + scr + live     # x2: double-buffered blocks


def _vmem_estimate_mxu(nb, H, W, Cin, Cout):
    Wp = _LO + W + 1
    M = nb * H * W
    blk_in = _padded_bytes((nb, H, W, Cin), 4, 8)
    blk_out = _padded_bytes((nb, H, W, Cout), 4, 8)
    wts = (_padded_bytes((9, Cin, Cin), 2, 16) + _padded_bytes((9, Cin, Cout), 2, 16)
           + 2 * _padded_bytes((2, max(Cin, Cout)), 4, 8))
    scr = 2 * _padded_bytes((nb, H + 2, Wp, Cin), 2, 16)
    live = (_padded_bytes((M, max(Cin, Cout)), 4, 8)
            + _padded_bytes((nb, H, Wp, Cin), 2, 16)
            + _padded_bytes((M, Cin), 2, 16) + blk_in)
    return 2 * (blk_in + blk_out + wts) + scr + live


def _vmem_capacity_bytes():
    try:
        return int(pltpu.get_tpu_info().vmem_capacity_bytes)
    except Exception:
        return 64 * 1024 * 1024       # conservative default: v7x has the smallest VMEM


def _is_multi_tensorcore():
    # Only multi-TC parts benefit from keeping >= 2 grid steps ("parallel"
    # megacore sharding); on single-TC v5e/v6e it just adds per-step overhead.
    try:
        kind = (jax.devices()[0].device_kind or "").lower()
    except Exception:
        return False
    return any(t in kind for t in ("v7", "v4", "v5p"))


def _pick_nb(N, est_fn, budget, keep_two_steps):
    best = 1
    for cand in range(1, N + 1):
        if N % cand:
            continue
        if keep_two_steps and N >= 2 and N // cand < 2:
            continue
        if est_fn(cand) <= budget:
            best = cand
    return best


def _vmem_limit(est, cap):
    # Always pass an explicit scoped-VMEM limit (v5e default is only 16 MiB),
    # but keep headroom below the physical capacity (never request all 64 MiB
    # on v7x: Mosaic needs internal scratch + pipeline buffers).
    return int(min(cap - (6 << 20), max(32 << 20, 2 * est + (8 << 20))))


# ----------------------------------------------------------------------------
# Wrappers
# ----------------------------------------------------------------------------
def _run_fused(x_nhwc, w1, s1, b1, w2, s2, b2, budget, cap, keep_two):
    N, H, W, C = map(int, x_nhwc.shape)
    WC = W * C
    Lp = WC + 4 * C
    S = 4 * C - 1
    wt1, brow1 = _fused_tables(w1, s1, b1, W)
    wt2, brow2 = _fused_tables(w2, s2, b2, W)
    x_rows = x_nhwc.reshape(N, H, WC)              # free: fuses the two minor dims

    est = lambda nb: _vmem_estimate_fused(nb, H, W, C)
    nb = _pick_nb(N, est, budget, keep_two)
    limit = _vmem_limit(est(nb), cap)

    out_rows = pl.pallas_call(
        _lres_kernel_fused,
        out_shape=jax.ShapeDtypeStruct((N, H, WC), x_nhwc.dtype),
        grid_spec=pltpu.PrefetchScalarGridSpec(
            num_scalar_prefetch=0,
            grid=(N // nb,),
            in_specs=[
                pl.BlockSpec((nb, H, WC), lambda n: (n, 0, 0)),
                pl.BlockSpec((3, S, WC), lambda n: (0, 0, 0)),
                pl.BlockSpec((1, WC), lambda n: (0, 0)),
                pl.BlockSpec((3, S, WC), lambda n: (0, 0, 0)),
                pl.BlockSpec((1, WC), lambda n: (0, 0)),
            ],
            out_specs=pl.BlockSpec((nb, H, WC), lambda n: (n, 0, 0)),
            scratch_shapes=[
                pltpu.VMEM((nb, H + 2, Lp), jnp.float32),
                pltpu.VMEM((nb, H + 2, Lp), jnp.float32),
            ],
        ),
        compiler_params=pltpu.CompilerParams(
            dimension_semantics=("parallel",),
            vmem_limit_bytes=limit),
    )(x_rows, wt1, brow1, wt2, brow2)
    return out_rows.reshape(N, H, W, C)


def _run_mxu(x_nhwc, w1, s1, b1, w2, s2, b2, budget, cap, keep_two):
    N, H, W, Cin = map(int, x_nhwc.shape)
    Cout = int(w2.shape[0])
    Wp = _LO + W + 1
    w1_t, sb1 = _mxu_tables(w1, s1, b1)
    w2_t, sb2 = _mxu_tables(w2, s2, b2)

    est = lambda nb: _vmem_estimate_mxu(nb, H, W, Cin, Cout)
    nb = _pick_nb(N, est, budget, keep_two)
    limit = _vmem_limit(est(nb), cap)

    # Grid-invariant weights: skip double-buffering them when they are large
    # (VMEM is scarce on the 64 MiB v7x part).
    w_kwargs = {}
    if 9 * Cin * (Cin + Cout) * 2 > (2 << 20):
        w_kwargs["pipeline_mode"] = pl.Buffered(1)

    out = pl.pallas_call(
        _lres_kernel_mxu,
        out_shape=jax.ShapeDtypeStruct((N, H, W, Cout), x_nhwc.dtype),
        grid_spec=pltpu.PrefetchScalarGridSpec(
            num_scalar_prefetch=0,
            grid=(N // nb,),
            in_specs=[
                pl.BlockSpec((nb, H, W, Cin), lambda n: (n, 0, 0, 0)),
                pl.BlockSpec((9, Cin, Cin), lambda n: (0, 0, 0), **w_kwargs),
                pl.BlockSpec((2, Cin), lambda n: (0, 0)),
                pl.BlockSpec((9, Cin, Cout), lambda n: (0, 0, 0), **w_kwargs),
                pl.BlockSpec((2, Cout), lambda n: (0, 0)),
            ],
            out_specs=pl.BlockSpec((nb, H, W, Cout), lambda n: (n, 0, 0, 0)),
            scratch_shapes=[
                pltpu.VMEM((nb, H + 2, Wp, Cin), jnp.bfloat16),
                pltpu.VMEM((nb, H + 2, Wp, Cin), jnp.bfloat16),
            ],
        ),
        compiler_params=pltpu.CompilerParams(
            dimension_semantics=("parallel",),
            vmem_limit_bytes=limit),
    )(x_nhwc, w1_t, sb1, w2_t, sb2)
    return out


def lresidual_block(x_nchw, w1, b1, bn1, w2, b2, bn2, eps=1e-5):
    """LResidualBlock forward.

    x_nchw: (N, Cin, H, W) f32.  w*: PyTorch (Cout, Cin, 3, 3) conv weights,
    b*: (Cout,) conv biases, bn* = (gamma, beta, running_mean, running_var).
    Returns (N, Cout, H, W).
    """
    N, Cin, H, W = map(int, x_nchw.shape)
    Cout = int(w2.shape[0])
    assert Cin == Cout, "residual add requires inp == oup"
    assert tuple(w1.shape) == (Cin, Cin, 3, 3)
    assert tuple(w2.shape) == (Cout, Cin, 3, 3)

    s1, bb1 = _fold_bn(b1, *bn1, eps)
    s2, bb2 = _fold_bn(b2, *bn2, eps)

    cap = _vmem_capacity_bytes()
    budget = max(cap // 2 - (8 << 20), 8 << 20)
    keep_two = _is_multi_tensorcore()

    # TODO(synk): the NCHW<->NHWC boundary transposes remain XLA ops; accepting
    # NHWC at the module boundary would remove them entirely.
    x_nhwc = jnp.transpose(x_nchw, (0, 2, 3, 1))

    if Cin <= _FUSED_MAX_C:
        out_nhwc = _run_fused(x_nhwc, w1, s1, bb1, w2, s2, bb2, budget, cap, keep_two)
    else:
        out_nhwc = _run_mxu(x_nhwc, w1, s1, bb1, w2, s2, bb2, budget, cap, keep_two)
    return jnp.transpose(out_nhwc, (0, 3, 1, 2))


# ----------------------------------------------------------------------------
# Pure-JAX reference (inference-mode BN, full f32), NCHW in/out
# ----------------------------------------------------------------------------
def _reference(x_nchw, w1, b1, bn1, w2, b2, bn2, eps=1e-5):
    g1, be1, m1, v1 = bn1
    g2, be2, m2, v2 = bn2
    x = jnp.transpose(x_nchw, (0, 2, 3, 1))

    def conv(inp, w_oihw, b):
        w_hwio = jnp.transpose(w_oihw, (2, 3, 1, 0))
        y = lax.conv_general_dilated(inp, w_hwio, (1, 1), "SAME",
                                     dimension_numbers=("NHWC", "HWIO", "NHWC"),
                                     precision=lax.Precision.HIGHEST)
        return y + b

    y = jnp.maximum((conv(x, w1, b1) - m1) * g1 / jnp.sqrt(v1 + eps) + be1, 0.0)
    y = jnp.maximum((conv(y, w2, b2) - m2) * g2 / jnp.sqrt(v2 + eps) + be2, 0.0)
    return jnp.transpose(x + y, (0, 3, 1, 2))


# ----------------------------------------------------------------------------
# Self-test
# ----------------------------------------------------------------------------
if __name__ == "__main__":
    def make_params(key, cin, cout):
        ks = jax.random.split(key, 12)
        w1 = 0.1 * jax.random.normal(ks[0], (cin, cin, 3, 3), jnp.float32)
        b1 = 0.1 * jax.random.normal(ks[1], (cin,), jnp.float32)
        g1 = 1.0 + 0.1 * jax.random.normal(ks[2], (cin,), jnp.float32)
        be1 = 0.1 * jax.random.normal(ks[3], (cin,), jnp.float32)
        m1 = 0.1 * jax.random.normal(ks[4], (cin,), jnp.float32)
        v1 = 1.0 + jax.nn.softplus(jax.random.normal(ks[5], (cin,), jnp.float32))
        w2 = 0.1 * jax.random.normal(ks[6], (cout, cin, 3, 3), jnp.float32)
        b2 = 0.1 * jax.random.normal(ks[7], (cout,), jnp.float32)
        g2 = 1.0 + 0.1 * jax.random.normal(ks[8], (cout,), jnp.float32)
        be2 = 0.1 * jax.random.normal(ks[9], (cout,), jnp.float32)
        m2 = 0.1 * jax.random.normal(ks[10], (cout,), jnp.float32)
        v2 = 1.0 + jax.nn.softplus(jax.random.normal(ks[11], (cout,), jnp.float32))
        return (w1, b1, (g1, be1, m1, v1), w2, b2, (g2, be2, m2, v2))

    key = jax.random.PRNGKey(0)
    k1, k2, kx1, kx2 = jax.random.split(key, 4)

    # --- Test 1: small channel count (module-consistent shape) -> lane-dense
    #             fused VPU path; all-f32 so it should track the reference
    #             to roundoff.
    N, C, H, W = 2, 4, 16, 16
    p1 = make_params(k1, C, C)
    x1 = jax.random.normal(kx1, (N, C, H, W), jnp.float32)
    out1 = jax.block_until_ready(lresidual_block(x1, *p1))
    ref1 = _reference(x1, *p1)
    np.testing.assert_allclose(np.asarray(out1), np.asarray(ref1),
                               rtol=1e-4, atol=1e-4)

    # --- Test 2: larger channel count -> MXU accumulating-dots path
    #             (bf16 MXU operands / f32 accumulation => bf16-level tolerance).
    N2, C2 = 2, 16
    p2 = make_params(k2, C2, C2)
    x2 = jax.random.normal(kx2, (N2, C2, H, W), jnp.float32)
    out2 = jax.block_until_ready(lresidual_block(x2, *p2))
    ref2 = _reference(x2, *p2)
    np.testing.assert_allclose(np.asarray(out2), np.asarray(ref2),
                               rtol=2e-2, atol=5e-2)

    print("KERNEL_OK")
</pallas_src>

<mosaic_0001>
module attributes {stable_mosaic.version = 11 : i64} {
  func.func @_lres_kernel_fused(%arg0: i32, %arg1: memref<2x16x64xf32, #tpu.memory_space<vmem>>, %arg2: memref<3x15x64xf32, #tpu.memory_space<vmem>>, %arg3: memref<1x64xf32, #tpu.memory_space<vmem>>, %arg4: memref<3x15x64xf32, #tpu.memory_space<vmem>>, %arg5: memref<1x64xf32, #tpu.memory_space<vmem>>, %arg6: memref<2x16x64xf32, #tpu.memory_space<vmem>>, %arg7: memref<2x18x80xf32, #tpu.memory_space<vmem>>, %arg8: memref<2x18x80xf32, #tpu.memory_space<vmem>>) attributes {dimension_semantics = [#tpu.dimension_semantics<parallel>], iteration_bounds = array<i64: 1>, scalar_prefetch = 0 : i64, scratch_operands = 2 : i64, tpu.core_type = #tpu.core_type<tc>, window_params = [{transform_indices = @transform_0, window_bounds = array<i64: 2, 16, 64>}, {pipeline_mode = #tpu.pipeline_mode<synchronous>, transform_indices = @transform_1, window_bounds = array<i64: 3, 15, 64>}, {pipeline_mode = #tpu.pipeline_mode<synchronous>, transform_indices = @transform_2, window_bounds = array<i64: 1, 64>}, {pipeline_mode = #tpu.pipeline_mode<synchronous>, transform_indices = @transform_3, window_bounds = array<i64: 3, 15, 64>}, {pipeline_mode = #tpu.pipeline_mode<synchronous>, transform_indices = @transform_4, window_bounds = array<i64: 1, 64>}, {transform_indices = @transform_5, window_bounds = array<i64: 2, 16, 64>}]} {
    %cst = arith.constant 0.000000e+00 : f32
    %0 = vector.broadcast %cst : f32 to vector<2x18x80xf32>
    %c0 = arith.constant 0 : index
    %c0_0 = arith.constant 0 : index
    %c0_1 = arith.constant 0 : index
    %1 = vector.load %arg7[%c0, %c0_0, %c0_1] : memref<2x18x80xf32, #tpu.memory_space<vmem>>, vector<2x18x80xf32>
    tpu.vector_store %arg7[%c0, %c0_0, %c0_1], %0 {strides = array<i32>} : memref<2x18x80xf32, #tpu.memory_space<vmem>>, vector<2x18x80xf32>,
    %cst_2 = arith.constant 0.000000e+00 : f32
    %2 = vector.broadcast %cst_2 : f32 to vector<2x18x80xf32>
    %c0_3 = arith.constant 0 : index
    %c0_4 = arith.constant 0 : index
    %c0_5 = arith.constant 0 : index
    %3 = vector.load %arg8[%c0_3, %c0_4, %c0_5] : memref<2x18x80xf32, #tpu.memory_space<vmem>>, vector<2x18x80xf32>
    tpu.vector_store %arg8[%c0_3, %c0_4, %c0_5], %2 {strides = array<i32>} : memref<2x18x80xf32, #tpu.memory_space<vmem>>, vector<2x18x80xf32>,
    %c0_6 = arith.constant 0 : index
    %c0_7 = arith.constant 0 : index
    %c0_8 = arith.constant 0 : index
    %4 = vector.load %arg1[%c0_6, %c0_7, %c0_8] : memref<2x16x64xf32, #tpu.memory_space<vmem>>, vector<2x16x64xf32>
    %c0_9 = arith.constant 0 : index
    %c1 = arith.constant 1 : index
    %c8 = arith.constant 8 : index
    %5 = vector.load %arg7[%c0_9, %c1, %c8] : memref<2x18x80xf32, #tpu.memory_space<vmem>>, vector<2x16x64xf32>
    tpu.vector_store %arg7[%c0_9, %c1, %c8], %4 {strides = array<i32>} : memref<2x18x80xf32, #tpu.memory_space<vmem>>, vector<2x16x64xf32>,
    %c0_10 = arith.constant 0 : index
    %c0_11 = arith.constant 0 : index
    %c0_12 = arith.constant 0 : index
    %6 = vector.load %arg2[%c0_10, %c0_11, %c0_12] : memref<3x15x64xf32, #tpu.memory_space<vmem>>, vector<3x15x64xf32>
    %c0_13 = arith.constant 0 : index
    %c0_14 = arith.constant 0 : index
    %c0_15 = arith.constant 0 : index
    %7 = vector.load %arg7[%c0_13, %c0_14, %c0_15] : memref<2x18x80xf32, #tpu.memory_space<vmem>>, vector<2x18x80xf32>
    %cst_16 = arith.constant 0.000000e+00 : f32
    %8 = vector.broadcast %cst_16 : f32 to vector<2x16x64xf32>
    %9 = vector.extract_strided_slice %7 {offsets = [0, 0, 0], sizes = [2, 16, 80], strides = [1, 1, 1]} : vector<2x18x80xf32> to vector<2x16x80xf32>
    %10 = vector.extract_strided_slice %9 {offsets = [0, 0, 1], sizes = [2, 16, 64], strides = [1, 1, 1]} : vector<2x16x80xf32> to vector<2x16x64xf32>
    %11 = vector.extract_strided_slice %6 {offsets = [0, 0, 0], sizes = [1, 1, 64], strides = [1, 1, 1]} : vector<3x15x64xf32> to vector<1x1x64xf32>
    %12 = vector.shape_cast %11 : vector<1x1x64xf32> to vector<1x64xf32>
    %13 = vector.shape_cast %12 : vector<1x64xf32> to vector<1x1x64xf32>
    %14 = vector.broadcast %13 : vector<1x1x64xf32> to vector<2x16x64xf32>
    %15 = arith.mulf %10, %14 : vector<2x16x64xf32>
    %16 = arith.addf %8, %15 : vector<2x16x64xf32>
    %17 = vector.extract_strided_slice %9 {offsets = [0, 0, 2], sizes = [2, 16, 64], strides = [1, 1, 1]} : vector<2x16x80xf32> to vector<2x16x64xf32>
    %18 = vector.extract_strided_slice %6 {offsets = [0, 1, 0], sizes = [1, 1, 64], strides = [1, 1, 1]} : vector<3x15x64xf32> to vector<1x1x64xf32>
    %19 = vector.shape_cast %18 : vector<1x1x64xf32> to vector<1x64xf32>
    %20 = vector.shape_cast %19 : vector<1x64xf32> to vector<1x1x64xf32>
    %21 = vector.broadcast %20 : vector<1x1x64xf32> to vector<2x16x64xf32>
    %22 = arith.mulf %17, %21 : vector<2x16x64xf32>
    %23 = arith.addf %16, %22 : vector<2x16x64xf32>
    %24 = vector.extract_strided_slice %9 {offsets = [0, 0, 3], sizes = [2, 16, 64], strides = [1, 1, 1]} : vector<2x16x80xf32> to vector<2x16x64xf32>
    %25 = vector.extract_strided_slice %6 {offsets = [0, 2, 0], sizes = [1, 1, 64], strides = [1, 1, 1]} : vector<3x15x64xf32> to vector<1x1x64xf32>
    %26 = vector.shape_cast %25 : vector<1x1x64xf32> to vector<1x64xf32>
    %27 = vector.shape_cast %26 : vector<1x64xf32> to vector<1x1x64xf32>
    %28 = vector.broadcast %27 : vector<1x1x64xf32> to vector<2x16x64xf32>
    %29 = arith.mulf %24, %28 : vector<2x16x64xf32>
    %30 = arith.addf %23, %29 : vector<2x16x64xf32>
    %31 = vector.extract_strided_slice %9 {offsets = [0, 0, 4], sizes = [2, 16, 64], strides = [1, 1, 1]} : vector<2x16x80xf32> to vector<2x16x64xf32>
    %32 = vector.extract_strided_slice %6 {offsets = [0, 3, 0], sizes = [1, 1, 64], strides = [1, 1, 1]} : vector<3x15x64xf32> to vector<1x1x64xf32>
    %33 = vector.shape_cast %32 : vector<1x1x64xf32> to vector<1x64xf32>
    %34 = vector.shape_cast %33 : vector<1x64xf32> to vector<1x1x64xf32>
    %35 = vector.broadcast %34 : vector<1x1x64xf32> to vector<2x16x64xf32>
    %36 = arith.mulf %31, %35 : vector<2x16x64xf32>
    %37 = arith.addf %30, %36 : vector<2x16x64xf32>
    %38 = vector.extract_strided_slice %9 {offsets = [0, 0, 5], sizes = [2, 16, 64], strides = [1, 1, 1]} : vector<2x16x80xf32> to vector<2x16x64xf32>
    %39 = vector.extract_strided_slice %6 {offsets = [0, 4, 0], sizes = [1, 1, 64], strides = [1, 1, 1]} : vector<3x15x64xf32> to vector<1x1x64xf32>
    %40 = vector.shape_cast %39 : vector<1x1x64xf32> to vector<1x64xf32>
    %41 = vector.shape_cast %40 : vector<1x64xf32> to vector<1x1x64xf32>
    %42 = vector.broadcast %41 : vector<1x1x64xf32> to vector<2x16x64xf32>
    %43 = arith.mulf %38, %42 : vector<2x16x64xf32>
    %44 = arith.addf %37, %43 : vector<2x16x64xf32>
    %45 = vector.extract_strided_slice %9 {offsets = [0, 0, 6], sizes = [2, 16, 64], strides = [1, 1, 1]} : vector<2x16x80xf32> to vector<2x16x64xf32>
    %46 = vector.extract_strided_slice %6 {offsets = [0, 5, 0], sizes = [1, 1, 64], strides = [1, 1, 1]} : vector<3x15x64xf32> to vector<1x1x64xf32>
    %47 = vector.shape_cast %46 : vector<1x1x64xf32> to vector<1x64xf32>
    %48 = vector.shape_cast %47 : vector<1x64xf32> to vector<1x1x64xf32>
    %49 = vector.broadcast %48 : vector<1x1x64xf32> to vector<2x16x64xf32>
    %50 = arith.mulf %45, %49 : vector<2x16x64xf32>
    %51 = arith.addf %44, %50 : vector<2x16x64xf32>
    %52 = vector.extract_strided_slice %9 {offsets = [0, 0, 7], sizes = [2, 16, 64], strides = [1, 1, 1]} : vector<2x16x80xf32> to vector<2x16x64xf32>
    %53 = vector.extract_strided_slice %6 {offsets = [0, 6, 0], sizes = [1, 1, 64], strides = [1, 1, 1]} : vector<3x15x64xf32> to vector<1x1x64xf32>
    %54 = vector.shape_cast %53 : vector<1x1x64xf32> to vector<1x64xf32>
    %55 = vector.shape_cast %54 : vector<1x64xf32> to vector<1x1x64xf32>
    %56 = vector.broadcast %55 : vector<1x1x64xf32> to vector<2x16x64xf32>
    %57 = arith.mulf %52, %56 : vector<2x16x64xf32>
    %58 = arith.addf %51, %57 : vector<2x16x64xf32>
    %59 = vector.extract_strided_slice %9 {offsets = [0, 0, 8], sizes = [2, 16, 64], strides = [1, 1, 1]} : vector<2x16x80xf32> to vector<2x16x64xf32>
    %60 = vector.extract_strided_slice %6 {offsets = [0, 7, 0], sizes = [1, 1, 64], strides = [1, 1, 1]} : vector<3x15x64xf32> to vector<1x1x64xf32>
    %61 = vector.shape_cast %60 : vector<1x1x64xf32> to vector<1x64xf32>
    %62 = vector.shape_cast %61 : vector<1x64xf32> to vector<1x1x64xf32>
    %63 = vector.broadcast %62 : vector<1x1x64xf32> to vector<2x16x64xf32>
    %64 = arith.mulf %59, %63 : vector<2x16x64xf32>
    %65 = arith.addf %58, %64 : vector<2x16x64xf32>
    %66 = vector.extract_strided_slice %9 {offsets = [0, 0, 9], sizes = [2, 16, 64], strides = [1, 1, 1]} : vector<2x16x80xf32> to vector<2x16x64xf32>
    %67 = vector.extract_strided_slice %6 {offsets = [0, 8, 0], sizes = [1, 1, 64], strides = [1, 1, 1]} : vector<3x15x64xf32> to vector<1x1x64xf32>
    %68 = vector.shape_cast %67 : vector<1x1x64xf32> to vector<1x64xf32>
    %69 = vector.shape_cast %68 : vector<1x64xf32> to vector<1x1x64xf32>
    %70 = vector.broadcast %69 : vector<1x1x64xf32> to vector<2x16x64xf32>
    %71 = arith.mulf %66, %70 : vector<2x16x64xf32>
    %72 = arith.addf %65, %71 : vector<2x16x64xf32>
    %73 = vector.extract_strided_slice %9 {offsets = [0, 0, 10], sizes = [2, 16, 64], strides = [1, 1, 1]} : vector<2x16x80xf32> to vector<2x16x64xf32>
    %74 = vector.extract_strided_slice %6 {offsets = [0, 9, 0], sizes = [1, 1, 64], strides = [1, 1, 1]} : vector<3x15x64xf32> to vector<1x1x64xf32>
    %75 = vector.shape_cast %74 : vector<1x1x64xf32> to vector<1x64xf32>
    %76 = vector.shape_cast %75 : vector<1x64xf32> to vector<1x1x64xf32>
    %77 = vector.broadcast %76 : vector<1x1x64xf32> to vector<2x16x64xf32>
    %78 = arith.mulf %73, %77 : vector<2x16x64xf32>
    %79 = arith.addf %72, %78 : vector<2x16x64xf32>
    %80 = vector.extract_strided_slice %9 {offsets = [0, 0, 11], sizes = [2, 16, 64], strides = [1, 1, 1]} : vector<2x16x80xf32> to vector<2x16x64xf32>
    %81 = vector.extract_strided_slice %6 {offsets = [0, 10, 0], sizes = [1, 1, 64], strides = [1, 1, 1]} : vector<3x15x64xf32> to vector<1x1x64xf32>
    %82 = vector.shape_cast %81 : vector<1x1x64xf32> to vector<1x64xf32>
    %83 = vector.shape_cast %82 : vector<1x64xf32> to vector<1x1x64xf32>
    %84 = vector.broadcast %83 : vector<1x1x64xf32> to vector<2x16x64xf32>
    %85 = arith.mulf %80, %84 : vector<2x16x64xf32>
    %86 = arith.addf %79, %85 : vector<2x16x64xf32>
    %87 = vector.extract_strided_slice %9 {offsets = [0, 0, 12], sizes = [2, 16, 64], strides = [1, 1, 1]} : vector<2x16x80xf32> to vector<2x16x64xf32>
    %88 = vector.extract_strided_slice %6 {offsets = [0, 11, 0], sizes = [1, 1, 64], strides = [1, 1, 1]} : vector<3x15x64xf32> to vector<1x1x64xf32>
    %89 = vector.shape_cast %88 : vector<1x1x64xf32> to vector<1x64xf32>
    %90 = vector.shape_cast %89 : vector<1x64xf32> to vector<1x1x64xf32>
    %91 = vector.broadcast %90 : vector<1x1x64xf32> to vector<2x16x64xf32>
    %92 = arith.mulf %87, %91 : vector<2x16x64xf32>
    %93 = arith.addf %86, %92 : vector<2x16x64xf32>
    %94 = vector.extract_strided_slice %9 {offsets = [0, 0, 13], sizes = [2, 16, 64], strides = [1, 1, 1]} : vector<2x16x80xf32> to vector<2x16x64xf32>
    %95 = vector.extract_strided_slice %6 {offsets = [0, 12, 0], sizes = [1, 1, 64], strides = [1, 1, 1]} : vector<3x15x64xf32> to vector<1x1x64xf32>
    %96 = vector.shape_cast %95 : vector<1x1x64xf32> to vector<1x64xf32>
    %97 = vector.shape_cast %96 : vector<1x64xf32> to vector<1x1x64xf32>
    %98 = vector.broadcast %97 : vector<1x1x64xf32> to vector<2x16x64xf32>
    %99 = arith.mulf %94, %98 : vector<2x16x64xf32>
    %100 = arith.addf %93, %99 : vector<2x16x64xf32>
    %101 = vector.extract_strided_slice %9 {offsets = [0, 0, 14], sizes = [2, 16, 64], strides = [1, 1, 1]} : vector<2x16x80xf32> to vector<2x16x64xf32>
    %102 = vector.extract_strided_slice %6 {offsets = [0, 13, 0], sizes = [1, 1, 64], strides = [1, 1, 1]} : vector<3x15x64xf32> to vector<1x1x64xf32>
    %103 = vector.shape_cast %102 : vector<1x1x64xf32> to vector<1x64xf32>
    %104 = vector.shape_cast %103 : vector<1x64xf32> to vector<1x1x64xf32>
    %105 = vector.broadcast %104 : vector<1x1x64xf32> to vector<2x16x64xf32>
    %106 = arith.mulf %101, %105 : vector<2x16x64xf32>
    %107 = arith.addf %100, %106 : vector<2x16x64xf32>
    %108 = vector.extract_strided_slice %9 {offsets = [0, 0, 15], sizes = [2, 16, 64], strides = [1, 1, 1]} : vector<2x16x80xf32> to vector<2x16x64xf32>
    %109 = vector.extract_strided_slice %6 {offsets = [0, 14, 0], sizes = [1, 1, 64], strides = [1, 1, 1]} : vector<3x15x64xf32> to vector<1x1x64xf32>
    %110 = vector.shape_cast %109 : vector<1x1x64xf32> to vector<1x64xf32>
    %111 = vector.shape_cast %110 : vector<1x64xf32> to vector<1x1x64xf32>
    %112 = vector.broadcast %111 : vector<1x1x64xf32> to vector<2x16x64xf32>
    %113 = arith.mulf %108, %112 : vector<2x16x64xf32>
    %114 = arith.addf %107, %113 : vector<2x16x64xf32>
    %115 = vector.extract_strided_slice %7 {offsets = [0, 1, 0], sizes = [2, 16, 80], strides = [1, 1, 1]} : vector<2x18x80xf32> to vector<2x16x80xf32>
    %116 = vector.extract_strided_slice %115 {offsets = [0, 0, 1], sizes = [2, 16, 64], strides = [1, 1, 1]} : vector<2x16x80xf32> to vector<2x16x64xf32>
    %117 = vector.extract_strided_slice %6 {offsets = [1, 0, 0], sizes = [1, 1, 64], strides = [1, 1, 1]} : vector<3x15x64xf32> to vector<1x1x64xf32>
    %118 = vector.shape_cast %117 : vector<1x1x64xf32> to vector<1x64xf32>
    %119 = vector.shape_cast %118 : vector<1x64xf32> to vector<1x1x64xf32>
    %120 = vector.broadcast %119 : vector<1x1x64xf32> to vector<2x16x64xf32>
    %121 = arith.mulf %116, %120 : vector<2x16x64xf32>
    %122 = arith.addf %114, %121 : vector<2x16x64xf32>
    %123 = vector.extract_strided_slice %115 {offsets = [0, 0, 2], sizes = [2, 16, 64], strides = [1, 1, 1]} : vector<2x16x80xf32> to vector<2x16x64xf32>
    %124 = vector.extract_strided_slice %6 {offsets = [1, 1, 0], sizes = [1, 1, 64], strides = [1, 1, 1]} : vector<3x15x64xf32> to vector<1x1x64xf32>
    %125 = vector.shape_cast %124 : vector<1x1x64xf32> to vector<1x64xf32>
    %126 = vector.shape_cast %125 : vector<1x64xf32> to vector<1x1x64xf32>
    %127 = vector.broadcast %126 : vector<1x1x64xf32> to vector<2x16x64xf32>
    %128 = arith.mulf %123, %127 : vector<2x16x64xf32>
    %129 = arith.addf %122, %128 : vector<2x16x64xf32>
    %130 = vector.extract_strided_slice %115 {offsets = [0, 0, 3], sizes = [2, 16, 64], strides = [1, 1, 1]} : vector<2x16x80xf32> to vector<2x16x64xf32>
    %131 = vector.extract_strided_slice %6 {offsets = [1, 2, 0], sizes = [1, 1, 64], strides = [1, 1, 1]} : vector<3x15x64xf32> to vector<1x1x64xf32>
    %132 = vector.shape_cast %131 : vector<1x1x64xf32> to vector<1x64xf32>
    %133 = vector.shape_cast %132 : vector<1x64xf32> to vector<1x1x64xf32>
    %134 = vector.broadcast %133 : vector<1x1x64xf32> to vector<2x16x64xf32>
    %135 = arith.mulf %130, %134 : vector<2x16x64xf32>
    %136 = arith.addf %129, %135 : vector<2x16x64xf32>
    %137 = vector.extract_strided_slice %115 {offsets = [0, 0, 4], sizes = [2, 16, 64], strides = [1, 1, 1]} : vector<2x16x80xf32> to vector<2x16x64xf32>
    %138 = vector.extract_strided_slice %6 {offsets = [1, 3, 0], sizes = [1, 1, 64], strides = [1, 1, 1]} : vector<3x15x64xf32> to vector<1x1x64xf32>
    %139 = vector.shape_cast %138 : vector<1x1x64xf32> to vector<1x64xf32>
    %140 = vector.shape_cast %139 : vector<1x64xf32> to vector<1x1x64xf32>
    %141 = vector.broadcast %140 : vector<1x1x64xf32> to vector<2x16x64xf32>
    %142 = arith.mulf %137, %141 : vector<2x16x64xf32>
    %143 = arith.addf %136, %142 : vector<2x16x64xf32>
    %144 = vector.extract_strided_slice %115 {offsets = [0, 0, 5], sizes = [2, 16, 64], strides = [1, 1, 1]} : vector<2x16x80xf32> to vector<2x16x64xf32>
    %145 = vector.extract_strided_slice %6 {offsets = [1, 4, 0], sizes = [1, 1, 64], strides = [1, 1, 1]} : vector<3x15x64xf32> to vector<1x1x64xf32>
    %146 = vector.shape_cast %145 : vector<1x1x64xf32> to vector<1x64xf32>
    %147 = vector.shape_cast %146 : vector<1x64xf32> to vector<1x1x64xf32>
    %148 = vector.broadcast %147 : vector<1x1x64xf32> to vector<2x16x64xf32>
    %149 = arith.mulf %144, %148 : vector<2x16x64xf32>
    %150 = arith.addf %143, %149 : vector<2x16x64xf32>
    %151 = vector.extract_strided_slice %115 {offsets = [0, 0, 6], sizes = [2, 16, 64], strides = [1, 1, 1]} : vector<2x16x80xf32> to vector<2x16x64xf32>
    %152 = vector.extract_strided_slice %6 {offsets = [1, 5, 0], sizes = [1, 1, 64], strides = [1, 1, 1]} : vector<3x15x64xf32> to vector<1x1x64xf32>
    %153 = vector.shape_cast %152 : vector<1x1x64xf32> to vector<1x64xf32>
    %154 = vector.shape_cast %153 : vector<1x64xf32> to vector<1x1x64xf32>
    %155 = vector.broadcast %154 : vector<1x1x64xf32> to vector<2x16x64xf32>
    %156 = arith.mulf %151, %155 : vector<2x16x64xf32>
    %157 = arith.addf %150, %156 : vector<2x16x64xf32>
    %158 = vector.extract_strided_slice %115 {offsets = [0, 0, 7], sizes = [2, 16, 64], strides = [1, 1, 1]} : vector<2x16x80xf32> to vector<2x16x64xf32>
    %159 = vector.extract_strided_slice %6 {offsets = [1, 6, 0], sizes = [1, 1, 64], strides = [1, 1, 1]} : vector<3x15x64xf32> to vector<1x1x64xf32>
    %160 = vector.shape_cast %159 : vector<1x1x64xf32> to vector<1x64xf32>
    %161 = vector.shape_cast %160 : vector<1x64xf32> to vector<1x1x64xf32>
    %162 = vector.broadcast %161 : vector<1x1x64xf32> to vector<2x16x64xf32>
    %163 = arith.mulf %158, %162 : vector<2x16x64xf32>
    %164 = arith.addf %157, %163 : vector<2x16x64xf32>
    %165 = vector.extract_strided_slice %115 {offsets = [0, 0, 8], sizes = [2, 16, 64], strides = [1, 1, 1]} : vector<2x16x80xf32> to vector<2x16x64xf32>
    %166 = vector.extract_strided_slice %6 {offsets = [1, 7, 0], sizes = [1, 1, 64], strides = [1, 1, 1]} : vector<3x15x64xf32> to vector<1x1x64xf32>
    %167 = vector.shape_cast %166 : vector<1x1x64xf32> to vector<1x64xf32>
    %168 = vector.shape_cast %167 : vector<1x64xf32> to vector<1x1x64xf32>
    %169 = vector.broadcast %168 : vector<1x1x64xf32> to vector<2x16x64xf32>
    %170 = arith.mulf %165, %169 : vector<2x16x64xf32>
    %171 = arith.addf %164, %170 : vector<2x16x64xf32>
    %172 = vector.extract_strided_slice %115 {offsets = [0, 0, 9], sizes = [2, 16, 64], strides = [1, 1, 1]} : vector<2x16x80xf32> to vector<2x16x64xf32>
    %173 = vector.extract_strided_slice %6 {offsets = [1, 8, 0], sizes = [1, 1, 64], strides = [1, 1, 1]} : vector<3x15x64xf32> to vector<1x1x64xf32>
    %174 = vector.shape_cast %173 : vector<1x1x64xf32> to vector<1x64xf32>
    %175 = vector.shape_cast %174 : vector<1x64xf32> to vector<1x1x64xf32>
    %176 = vector.broadcast %175 : vector<1x1x64xf32> to vector<2x16x64xf32>
    %177 = arith.mulf %172, %176 : vector<2x16x64xf32>
    %178 = arith.addf %171, %177 : vector<2x16x64xf32>
    %179 = vector.extract_strided_slice %115 {offsets = [0, 0, 10], sizes = [2, 16, 64], strides = [1, 1, 1]} : vector<2x16x80xf32> to vector<2x16x64xf32>
    %180 = vector.extract_strided_slice %6 {offsets = [1, 9, 0], sizes = [1, 1, 64], strides = [1, 1, 1]} : vector<3x15x64xf32> to vector<1x1x64xf32>
    %181 = vector.shape_cast %180 : vector<1x1x64xf32> to vector<1x64xf32>
    %182 = vector.shape_cast %181 : vector<1x64xf32> to vector<1x1x64xf32>
    %183 = vector.broadcast %182 : vector<1x1x64xf32> to vector<2x16x64xf32>
    %184 = arith.mulf %179, %183 : vector<2x16x64xf32>
    %185 = arith.addf %178, %184 : vector<2x16x64xf32>
    %186 = vector.extract_strided_slice %115 {offsets = [0, 0, 11], sizes = [2, 16, 64], strides = [1, 1, 1]} : vector<2x16x80xf32> to vector<2x16x64xf32>
    %187 = vector.extract_strided_slice %6 {offsets = [1, 10, 0], sizes = [1, 1, 64], strides = [1, 1, 1]} : vector<3x15x64xf32> to vector<1x1x64xf32>
    %188 = vector.shape_cast %187 : vector<1x1x64xf32> to vector<1x64xf32>
    %189 = vector.shape_cast %188 : vector<1x64xf32> to vector<1x1x64xf32>
    %190 = vector.broadcast %189 : vector<1x1x64xf32> to vector<2x16x64xf32>
    %191 = arith.mulf %186, %190 : vector<2x16x64xf32>
    %192 = arith.addf %185, %191 : vector<2x16x64xf32>
    %193 = vector.extract_strided_slice %115 {offsets = [0, 0, 12], sizes = [2, 16, 64], strides = [1, 1, 1]} : vector<2x16x80xf32> to vector<2x16x64xf32>
    %194 = vector.extract_strided_slice %6 {offsets = [1, 11, 0], sizes = [1, 1, 64], strides = [1, 1, 1]} : vector<3x15x64xf32> to vector<1x1x64xf32>
    %195 = vector.shape_cast %194 : vector<1x1x64xf32> to vector<1x64xf32>
    %196 = vector.shape_cast %195 : vector<1x64xf32> to vector<1x1x64xf32>
    %197 = vector.broadcast %196 : vector<1x1x64xf32> to vector<2x16x64xf32>
    %198 = arith.mulf %193, %197 : vector<2x16x64xf32>
    %199 = arith.addf %192, %198 : vector<2x16x64xf32>
    %200 = vector.extract_strided_slice %115 {offsets = [0, 0, 13], sizes = [2, 16, 64], strides = [1, 1, 1]} : vector<2x16x80xf32> to vector<2x16x64xf32>
    %201 = vector.extract_strided_slice %6 {offsets = [1, 12, 0], sizes = [1, 1, 64], strides = [1, 1, 1]} : vector<3x15x64xf32> to vector<1x1x64xf32>
    %202 = vector.shape_cast %201 : vector<1x1x64xf32> to vector<1x64xf32>
    %203 = vector.shape_cast %202 : vector<1x64xf32> to vector<1x1x64xf32>
    %204 = vector.broadcast %203 : vector<1x1x64xf32> to vector<2x16x64xf32>
    %205 = arith.mulf %200, %204 : vector<2x16x64xf32>
    %206 = arith.addf %199, %205 : vector<2x16x64xf32>
    %207 = vector.extract_strided_slice %115 {offsets = [0, 0, 14], sizes = [2, 16, 64], strides = [1, 1, 1]} : vector<2x16x80xf32> to vector<2x16x64xf32>
    %208 = vector.extract_strided_slice %6 {offsets = [1, 13, 0], sizes = [1, 1, 64], strides = [1, 1, 1]} : vector<3x15x64xf32> to vector<1x1x64xf32>
    %209 = vector.shape_cast %208 : vector<1x1x64xf32> to vector<1x64xf32>
    %210 = vector.shape_cast %209 : vector<1x64xf32> to vector<1x1x64xf32>
    %211 = vector.broadcast %210 : vector<1x1x64xf32> to vector<2x16x64xf32>
    %212 = arith.mulf %207, %211 : vector<2x16x64xf32>
    %213 = arith.addf %206, %212 : vector<2x16x64xf32>
    %214 = vector.extract_strided_slice %115 {offsets = [0, 0, 15], sizes = [2, 16, 64], strides = [1, 1, 1]} : vector<2x16x80xf32> to vector<2x16x64xf32>
    %215 = vector.extract_strided_slice %6 {offsets = [1, 14, 0], sizes = [1, 1, 64], strides = [1, 1, 1]} : vector<3x15x64xf32> to vector<1x1x64xf32>
    %216 = vector.shape_cast %215 : vector<1x1x64xf32> to vector<1x64xf32>
    %217 = vector.shape_cast %216 : vector<1x64xf32> to vector<1x1x64xf32>
    %218 = vector.broadcast %217 : vector<1x1x64xf32> to vector<2x16x64xf32>
    %219 = arith.mulf %214, %218 : vector<2x16x64xf32>
    %220 = arith.addf %213, %219 : vector<2x16x64xf32>
    %221 = vector.extract_strided_slice %7 {offsets = [0, 2, 0], sizes = [2, 16, 80], strides = [1, 1, 1]} : vector<2x18x80xf32> to vector<2x16x80xf32>
    %222 = vector.extract_strided_slice %221 {offsets = [0, 0, 1], sizes = [2, 16, 64], strides = [1, 1, 1]} : vector<2x16x80xf32> to vector<2x16x64xf32>
    %223 = vector.extract_strided_slice %6 {offsets = [2, 0, 0], sizes = [1, 1, 64], strides = [1, 1, 1]} : vector<3x15x64xf32> to vector<1x1x64xf32>
    %224 = vector.shape_cast %223 : vector<1x1x64xf32> to vector<1x64xf32>
    %225 = vector.shape_cast %224 : vector<1x64xf32> to vector<1x1x64xf32>
    %226 = vector.broadcast %225 : vector<1x1x64xf32> to vector<2x16x64xf32>
    %227 = arith.mulf %222, %226 : vector<2x16x64xf32>
    %228 = arith.addf %220, %227 : vector<2x16x64xf32>
    %229 = vector.extract_strided_slice %221 {offsets = [0, 0, 2], sizes = [2, 16, 64], strides = [1, 1, 1]} : vector<2x16x80xf32> to vector<2x16x64xf32>
    %230 = vector.extract_strided_slice %6 {offsets = [2, 1, 0], sizes = [1, 1, 64], strides = [1, 1, 1]} : vector<3x15x64xf32> to vector<1x1x64xf32>
    %231 = vector.shape_cast %230 : vector<1x1x64xf32> to vector<1x64xf32>
    %232 = vector.shape_cast %231 : vector<1x64xf32> to vector<1x1x64xf32>
    %233 = vector.broadcast %232 : vector<1x1x64xf32> to vector<2x16x64xf32>
    %234 = arith.mulf %229, %233 : vector<2x16x64xf32>
    %235 = arith.addf %228, %234 : vector<2x16x64xf32>
    %236 = vector.extract_strided_slice %221 {offsets = [0, 0, 3], sizes = [2, 16, 64], strides = [1, 1, 1]} : vector<2x16x80xf32> to vector<2x16x64xf32>
    %237 = vector.extract_strided_slice %6 {offsets = [2, 2, 0], sizes = [1, 1, 64], strides = [1, 1, 1]} : vector<3x15x64xf32> to vector<1x1x64xf32>
    %238 = vector.shape_cast %237 : vector<1x1x64xf32> to vector<1x64xf32>
    %239 = vector.shape_cast %238 : vector<1x64xf32> to vector<1x1x64xf32>
    %240 = vector.broadcast %239 : vector<1x1x64xf32> to vector<2x16x64xf32>
    %241 = arith.mulf %236, %240 : vector<2x16x64xf32>
    %242 = arith.addf %235, %241 : vector<2x16x64xf32>
    %243 = vector.extract_strided_slice %221 {offsets = [0, 0, 4], sizes = [2, 16, 64], strides = [1, 1, 1]} : vector<2x16x80xf32> to vector<2x16x64xf32>
    %244 = vector.extract_strided_slice %6 {offsets = [2, 3, 0], sizes = [1, 1, 64], strides = [1, 1, 1]} : vector<3x15x64xf32> to vector<1x1x64xf32>
    %245 = vector.shape_cast %244 : vector<1x1x64xf32> to vector<1x64xf32>
    %246 = vector.shape_cast %245 : vector<1x64xf32> to vector<1x1x64xf32>
    %247 = vector.broadcast %246 : vector<1x1x64xf32> to vector<2x16x64xf32>
    %248 = arith.mulf %243, %247 : vector<2x16x64xf32>
    %249 = arith.addf %242, %248 : vector<2x16x64xf32>
    %250 = vector.extract_strided_slice %221 {offsets = [0, 0, 5], sizes = [2, 16, 64], strides = [1, 1, 1]} : vector<2x16x80xf32> to vector<2x16x64xf32>
    %251 = vector.extract_strided_slice %6 {offsets = [2, 4, 0], sizes = [1, 1, 64], strides = [1, 1, 1]} : vector<3x15x64xf32> to vector<1x1x64xf32>
    %252 = vector.shape_cast %251 : vector<1x1x64xf32> to vector<1x64xf32>
    %253 = vector.shape_cast %252 : vector<1x64xf32> to vector<1x1x64xf32>
    %254 = vector.broadcast %253 : vector<1x1x64xf32> to vector<2x16x64xf32>
    %255 = arith.mulf %250, %254 : vector<2x16x64xf32>
    %256 = arith.addf %249, %255 : vector<2x16x64xf32>
    %257 = vector.extract_strided_slice %221 {offsets = [0, 0, 6], sizes = [2, 16, 64], strides = [1, 1, 1]} : vector<2x16x80xf32> to vector<2x16x64xf32>
    %258 = vector.extract_strided_slice %6 {offsets = [2, 5, 0], sizes = [1, 1, 64], strides = [1, 1, 1]} : vector<3x15x64xf32> to vector<1x1x64xf32>
    %259 = vector.shape_cast %258 : vector<1x1x64xf32> to vector<1x64xf32>
    %260 = vector.shape_cast %259 : vector<1x64xf32> to vector<1x1x64xf32>
    %261 = vector.broadcast %260 : vector<1x1x64xf32> to vector<2x16x64xf32>
    %262 = arith.mulf %257, %261 : vector<2x16x64xf32>
    %263 = arith.addf %256, %262 : vector<2x16x64xf32>
    %264 = vector.extract_strided_slice %221 {offsets = [0, 0, 7], sizes = [2, 16, 64], strides = [1, 1, 1]} : vector<2x16x80xf32> to vector<2x16x64xf32>
    %265 = vector.extract_strided_slice %6 {offsets = [2, 6, 0], sizes = [1, 1, 64], strides = [1, 1, 1]} : vector<3x15x64xf32> to vector<1x1x64xf32>
    %266 = vector.shape_cast %265 : vector<1x1x64xf32> to vector<1x64xf32>
    %267 = vector.shape_cast %266 : vector<1x64xf32> to vector<1x1x64xf32>
    %268 = vector.broadcast %267 : vector<1x1x64xf32> to vector<2x16x64xf32>
    %269 = arith.mulf %264, %268 : vector<2x16x64xf32>
    %270 = arith.addf %263, %269 : vector<2x16x64xf32>
    %271 = vector.extract_strided_slice %221 {offsets = [0, 0, 8], sizes = [2, 16, 64], strides = [1, 1, 1]} : vector<2x16x80xf32> to vector<2x16x64xf32>
    %272 = vector.extract_strided_slice %6 {offsets = [2, 7, 0], sizes = [1, 1, 64], strides = [1, 1, 1]} : vector<3x15x64xf32> to vector<1x1x64xf32>
    %273 = vector.shape_cast %272 : vector<1x1x64xf32> to vector<1x64xf32>
    %274 = vector.shape_cast %273 : vector<1x64xf32> to vector<1x1x64xf32>
    %275 = vector.broadcast %274 : vector<1x1x64xf32> to vector<2x16x64xf32>
    %276 = arith.mulf %271, %275 : vector<2x16x64xf32>
    %277 = arith.addf %270, %276 : vector<2x16x64xf32>
    %278 = vector.extract_strided_slice %221 {offsets = [0, 0, 9], sizes = [2, 16, 64], strides = [1, 1, 1]} : vector<2x16x80xf32> to vector<2x16x64xf32>
    %279 = vector.extract_strided_slice %6 {offsets = [2, 8, 0], sizes = [1, 1, 64], strides = [1, 1, 1]} : vector<3x15x64xf32> to vector<1x1x64xf32>
    %280 = vector.shape_cast %279 : vector<1x1x64xf32> to vector<1x64xf32>
    %281 = vector.shape_cast %280 : vector<1x64xf32> to vector<1x1x64xf32>
    %282 = vector.broadcast %281 : vector<1x1x64xf32> to vector<2x16x64xf32>
    %283 = arith.mulf %278, %282 : vector<2x16x64xf32>
    %284 = arith.addf %277, %283 : vector<2x16x64xf32>
    %285 = vector.extract_strided_slice %221 {offsets = [0, 0, 10], sizes = [2, 16, 64], strides = [1, 1, 1]} : vector<2x16x80xf32> to vector<2x16x64xf32>
    %286 = vector.extract_strided_slice %6 {offsets = [2, 9, 0], sizes = [1, 1, 64], strides = [1, 1, 1]} : vector<3x15x64xf32> to vector<1x1x64xf32>
    %287 = vector.shape_cast %286 : vector<1x1x64xf32> to vector<1x64xf32>
    %288 = vector.shape_cast %287 : vector<1x64xf32> to vector<1x1x64xf32>
    %289 = vector.broadcast %288 : vector<1x1x64xf32> to vector<2x16x64xf32>
    %290 = arith.mulf %285, %289 : vector<2x16x64xf32>
    %291 = arith.addf %284, %290 : vector<2x16x64xf32>
    %292 = vector.extract_strided_slice %221 {offsets = [0, 0, 11], sizes = [2, 16, 64], strides = [1, 1, 1]} : vector<2x16x80xf32> to vector<2x16x64xf32>
    %293 = vector.extract_strided_slice %6 {offsets = [2, 10, 0], sizes = [1, 1, 64], strides = [1, 1, 1]} : vector<3x15x64xf32> to vector<1x1x64xf32>
    %294 = vector.shape_cast %293 : vector<1x1x64xf32> to vector<1x64xf32>
    %295 = vector.shape_cast %294 : vector<1x64xf32> to vector<1x1x64xf32>
    %296 = vector.broadcast %295 : vector<1x1x64xf32> to vector<2x16x64xf32>
    %297 = arith.mulf %292, %296 : vector<2x16x64xf32>
    %298 = arith.addf %291, %297 : vector<2x16x64xf32>
    %299 = vector.extract_strided_slice %221 {offsets = [0, 0, 12], sizes = [2, 16, 64], strides = [1, 1, 1]} : vector<2x16x80xf32> to vector<2x16x64xf32>
    %300 = vector.extract_strided_slice %6 {offsets = [2, 11, 0], sizes = [1, 1, 64], strides = [1, 1, 1]} : vector<3x15x64xf32> to vector<1x1x64xf32>
    %301 = vector.shape_cast %300 : vector<1x1x64xf32> to vector<1x64xf32>
    %302 = vector.shape_cast %301 : vector<1x64xf32> to vector<1x1x64xf32>
    %303 = vector.broadcast %302 : vector<1x1x64xf32> to vector<2x16x64xf32>
    %304 = arith.mulf %299, %303 : vector<2x16x64xf32>
    %305 = arith.addf %298, %304 : vector<2x16x64xf32>
    %306 = vector.extract_strided_slice %221 {offsets = [0, 0, 13], sizes = [2, 16, 64], strides = [1, 1, 1]} : vector<2x16x80xf32> to vector<2x16x64xf32>
    %307 = vector.extract_strided_slice %6 {offsets = [2, 12, 0], sizes = [1, 1, 64], strides = [1, 1, 1]} : vector<3x15x64xf32> to vector<1x1x64xf32>
    %308 = vector.shape_cast %307 : vector<1x1x64xf32> to vector<1x64xf32>
    %309 = vector.shape_cast %308 : vector<1x64xf32> to vector<1x1x64xf32>
    %310 = vector.broadcast %309 : vector<1x1x64xf32> to vector<2x16x64xf32>
    %311 = arith.mulf %306, %310 : vector<2x16x64xf32>
    %312 = arith.addf %305, %311 : vector<2x16x64xf32>
    %313 = vector.extract_strided_slice %221 {offsets = [0, 0, 14], sizes = [2, 16, 64], strides = [1, 1, 1]} : vector<2x16x80xf32> to vector<2x16x64xf32>
    %314 = vector.extract_strided_slice %6 {offsets = [2, 13, 0], sizes = [1, 1, 64], strides = [1, 1, 1]} : vector<3x15x64xf32> to vector<1x1x64xf32>
    %315 = vector.shape_cast %314 : vector<1x1x64xf32> to vector<1x64xf32>
    %316 = vector.shape_cast %315 : vector<1x64xf32> to vector<1x1x64xf32>
    %317 = vector.broadcast %316 : vector<1x1x64xf32> to vector<2x16x64xf32>
    %318 = arith.mulf %313, %317 : vector<2x16x64xf32>
    %319 = arith.addf %312, %318 : vector<2x16x64xf32>
    %320 = vector.extract_strided_slice %221 {offsets = [0, 0, 15], sizes = [2, 16, 64], strides = [1, 1, 1]} : vector<2x16x80xf32> to vector<2x16x64xf32>
    %321 = vector.extract_strided_slice %6 {offsets = [2, 14, 0], sizes = [1, 1, 64], strides = [1, 1, 1]} : vector<3x15x64xf32> to vector<1x1x64xf32>
    %322 = vector.shape_cast %321 : vector<1x1x64xf32> to vector<1x64xf32>
    %323 = vector.shape_cast %322 : vector<1x64xf32> to vector<1x1x64xf32>
    %324 = vector.broadcast %323 : vector<1x1x64xf32> to vector<2x16x64xf32>
    %325 = arith.mulf %320, %324 : vector<2x16x64xf32>
    %326 = arith.addf %319, %325 : vector<2x16x64xf32>
    %c0_17 = arith.constant 0 : index
    %c0_18 = arith.constant 0 : index
    %327 = vector.load %arg3[%c0_17, %c0_18] : memref<1x64xf32, #tpu.memory_space<vmem>>, vector<1x64xf32>
    %328 = vector.shape_cast %327 : vector<1x64xf32> to vector<1x1x64xf32>
    %329 = vector.broadcast %328 : vector<1x1x64xf32> to vector<2x16x64xf32>
    %330 = arith.addf %326, %329 : vector<2x16x64xf32>
    %cst_19 = arith.constant 0.000000e+00 : f32
    %331 = vector.broadcast %cst_19 : f32 to vector<2x16x64xf32>
    %332 = arith.maximumf %330, %331 : vector<2x16x64xf32>
    %c0_20 = arith.constant 0 : index
    %c1_21 = arith.constant 1 : index
    %c8_22 = arith.constant 8 : index
    %333 = vector.load %arg8[%c0_20, %c1_21, %c8_22] : memref<2x18x80xf32, #tpu.memory_space<vmem>>, vector<2x16x64xf32>
    tpu.vector_store %arg8[%c0_20, %c1_21, %c8_22], %332 {strides = array<i32>} : memref<2x18x80xf32, #tpu.memory_space<vmem>>, vector<2x16x64xf32>,
    %c0_23 = arith.constant 0 : index
    %c0_24 = arith.constant 0 : index
    %c0_25 = arith.constant 0 : index
    %334 = vector.load %arg4[%c0_23, %c0_24, %c0_25] : memref<3x15x64xf32, #tpu.memory_space<vmem>>, vector<3x15x64xf32>
    %c0_26 = arith.constant 0 : index
    %c0_27 = arith.constant 0 : index
    %c0_28 = arith.constant 0 : index
    %335 = vector.load %arg8[%c0_26, %c0_27, %c0_28] : memref<2x18x80xf32, #tpu.memory_space<vmem>>, vector<2x18x80xf32>
    %cst_29 = arith.constant 0.000000e+00 : f32
    %336 = vector.broadcast %cst_29 : f32 to vector<2x16x64xf32>
    %337 = vector.extract_strided_slice %335 {offsets = [0, 0, 0], sizes = [2, 16, 80], strides = [1, 1, 1]} : vector<2x18x80xf32> to vector<2x16x80xf32>
    %338 = vector.extract_strided_slice %337 {offsets = [0, 0, 1], sizes = [2, 16, 64], strides = [1, 1, 1]} : vector<2x16x80xf32> to vector<2x16x64xf32>
    %339 = vector.extract_strided_slice %334 {offsets = [0, 0, 0], sizes = [1, 1, 64], strides = [1, 1, 1]} : vector<3x15x64xf32> to vector<1x1x64xf32>
    %340 = vector.shape_cast %339 : vector<1x1x64xf32> to vector<1x64xf32>
    %341 = vector.shape_cast %340 : vector<1x64xf32> to vector<1x1x64xf32>
    %342 = vector.broadcast %341 : vector<1x1x64xf32> to vector<2x16x64xf32>
    %343 = arith.mulf %338, %342 : vector<2x16x64xf32>
    %344 = arith.addf %336, %343 : vector<2x16x64xf32>
    %345 = vector.extract_strided_slice %337 {offsets = [0, 0, 2], sizes = [2, 16, 64], strides = [1, 1, 1]} : vector<2x16x80xf32> to vector<2x16x64xf32>
    %346 = vector.extract_strided_slice %334 {offsets = [0, 1, 0], sizes = [1, 1, 64], strides = [1, 1, 1]} : vector<3x15x64xf32> to vector<1x1x64xf32>
    %347 = vector.shape_cast %346 : vector<1x1x64xf32> to vector<1x64xf32>
    %348 = vector.shape_cast %347 : vector<1x64xf32> to vector<1x1x64xf32>
    %349 = vector.broadcast %348 : vector<1x1x64xf32> to vector<2x16x64xf32>
    %350 = arith.mulf %345, %349 : vector<2x16x64xf32>
    %351 = arith.addf %344, %350 : vector<2x16x64xf32>
    %352 = vector.extract_strided_slice %337 {offsets = [0, 0, 3], sizes = [2, 16, 64], strides = [1, 1, 1]} : vector<2x16x80xf32> to vector<2x16x64xf32>
    %353 = vector.extract_strided_slice %334 {offsets = [0, 2, 0], sizes = [1, 1, 64], strides = [1, 1, 1]} : vector<3x15x64xf32> to vector<1x1x64xf32>
    %354 = vector.shape_cast %353 : vector<1x1x64xf32> to vector<1x64xf32>
    %355 = vector.shape_cast %354 : vector<1x64xf32> to vector<1x1x64xf32>
    %356 = vector.broadcast %355 : vector<1x1x64xf32> to vector<2x16x64xf32>
    %357 = arith.mulf %352, %356 : vector<2x16x64xf32>
    %358 = arith.addf %351, %357 : vector<2x16x64xf32>
    %359 = vector.extract_strided_slice %337 {offsets = [0, 0, 4], sizes = [2, 16, 64], strides = [1, 1, 1]} : vector<2x16x80xf32> to vector<2x16x64xf32>
    %360 = vector.extract_strided_slice %334 {offsets = [0, 3, 0], sizes = [1, 1, 64], strides = [1, 1, 1]} : vector<3x15x64xf32> to vector<1x1x64xf32>
    %361 = vector.shape_cast %360 : vector<1x1x64xf32> to vector<1x64xf32>
    %362 = vector.shape_cast %361 : vector<1x64xf32> to vector<1x1x64xf32>
    %363 = vector.broadcast %362 : vector<1x1x64xf32> to vector<2x16x64xf32>
    %364 = arith.mulf %359, %363 : vector<2x16x64xf32>
    %365 = arith.addf %358, %364 : vector<2x16x64xf32>
    %366 = vector.extract_strided_slice %337 {offsets = [0, 0, 5], sizes = [2, 16, 64], strides = [1, 1, 1]} : vector<2x16x80xf32> to vector<2x16x64xf32>
    %367 = vector.extract_strided_slice %334 {offsets = [0, 4, 0], sizes = [1, 1, 64], strides = [1, 1, 1]} : vector<3x15x64xf32> to vector<1x1x64xf32>
    %368 = vector.shape_cast %367 : vector<1x1x64xf32> to vector<1x64xf32>
    %369 = vector.shape_cast %368 : vector<1x64xf32> to vector<1x1x64xf32>
    %370 = vector.broadcast %369 : vector<1x1x64xf32> to vector<2x16x64xf32>
    %371 = arith.mulf %366, %370 : vector<2x16x64xf32>
    %372 = arith.addf %365, %371 : vector<2x16x64xf32>
    %373 = vector.extract_strided_slice %337 {offsets = [0, 0, 6], sizes = [2, 16, 64], strides = [1, 1, 1]} : vector<2x16x80xf32> to vector<2x16x64xf32>
    %374 = vector.extract_strided_slice %334 {offsets = [0, 5, 0], sizes = [1, 1, 64], strides = [1, 1, 1]} : vector<3x15x64xf32> to vector<1x1x64xf32>
    %375 = vector.shape_cast %374 : vector<1x1x64xf32> to vector<1x64xf32>
    %376 = vector.shape_cast %375 : vector<1x64xf32> to vector<1x1x64xf32>
    %377 = vector.broadcast %376 : vector<1x1x64xf32> to vector<2x16x64xf32>
    %378 = arith.mulf %373, %377 : vector<2x16x64xf32>
    %379 = arith.addf %372, %378 : vector<2x16x64xf32>
    %380 = vector.extract_strided_slice %337 {offsets = [0, 0, 7], sizes = [2, 16, 64], strides = [1, 1, 1]} : vector<2x16x80xf32> to vector<2x16x64xf32>
    %381 = vector.extract_strided_slice %334 {offsets = [0, 6, 0], sizes = [1, 1, 64], strides = [1, 1, 1]} : vector<3x15x64xf32> to vector<1x1x64xf32>
    %382 = vector.shape_cast %381 : vector<1x1x64xf32> to vector<1x64xf32>
    %383 = vector.shape_cast %382 : vector<1x64xf32> to vector<1x1x64xf32>
    %384 = vector.broadcast %383 : vector<1x1x64xf32> to vector<2x16x64xf32>
    %385 = arith.mulf %380, %384 : vector<2x16x64xf32>
    %386 = arith.addf %379, %385 : vector<2x16x64xf32>
    %387 = vector.extract_strided_slice %337 {offsets = [0, 0, 8], sizes = [2, 16, 64], strides = [1, 1, 1]} : vector<2x16x80xf32> to vector<2x16x64xf32>
    %388 = vector.extract_strided_slice %334 {offsets = [0, 7, 0], sizes = [1, 1, 64], strides = [1, 1, 1]} : vector<3x15x64xf32> to vector<1x1x64xf32>
    %389 = vector.shape_cast %388 : vector<1x1x64xf32> to vector<1x64xf32>
    %390 = vector.shape_cast %389 : vector<1x64xf32> to vector<1x1x64xf32>
    %391 = vector.broadcast %390 : vector<1x1x64xf32> to vector<2x16x64xf32>
    %392 = arith.mulf %387, %391 : vector<2x16x64xf32>
    %393 = arith.addf %386, %392 : vector<2x16x64xf32>
    %394 = vector.extract_strided_slice %337 {offsets = [0, 0, 9], sizes = [2, 16, 64], strides = [1, 1, 1]} : vector<2x16x80xf32> to vector<2x16x64xf32>
    %395 = vector.extract_strided_slice %334 {offsets = [0, 8, 0], sizes = [1, 1, 64], strides = [1, 1, 1]} : vector<3x15x64xf32> to vector<1x1x64xf32>
    %396 = vector.shape_cast %395 : vector<1x1x64xf32> to vector<1x64xf32>
    %397 = vector.shape_cast %396 : vector<1x64xf32> to vector<1x1x64xf32>
    %398 = vector.broadcast %397 : vector<1x1x64xf32> to vector<2x16x64xf32>
    %399 = arith.mulf %394, %398 : vector<2x16x64xf32>
    %400 = arith.addf %393, %399 : vector<2x16x64xf32>
    %401 = vector.extract_strided_slice %337 {offsets = [0, 0, 10], sizes = [2, 16, 64], strides = [1, 1, 1]} : vector<2x16x80xf32> to vector<2x16x64xf32>
    %402 = vector.extract_strided_slice %334 {offsets = [0, 9, 0], sizes = [1, 1, 64], strides = [1, 1, 1]} : vector<3x15x64xf32> to vector<1x1x64xf32>
    %403 = vector.shape_cast %402 : vector<1x1x64xf32> to vector<1x64xf32>
    %404 = vector.shape_cast %403 : vector<1x64xf32> to vector<1x1x64xf32>
    %405 = vector.broadcast %404 : vector<1x1x64xf32> to vector<2x16x64xf32>
    %406 = arith.mulf %401, %405 : vector<2x16x64xf32>
    %407 = arith.addf %400, %406 : vector<2x16x64xf32>
    %408 = vector.extract_strided_slice %337 {offsets = [0, 0, 11], sizes = [2, 16, 64], strides = [1, 1, 1]} : vector<2x16x80xf32> to vector<2x16x64xf32>
    %409 = vector.extract_strided_slice %334 {offsets = [0, 10, 0], sizes = [1, 1, 64], strides = [1, 1, 1]} : vector<3x15x64xf32> to vector<1x1x64xf32>
    %410 = vector.shape_cast %409 : vector<1x1x64xf32> to vector<1x64xf32>
    %411 = vector.shape_cast %410 : vector<1x64xf32> to vector<1x1x64xf32>
    %412 = vector.broadcast %411 : vector<1x1x64xf32> to vector<2x16x64xf32>
    %413 = arith.mulf %408, %412 : vector<2x16x64xf32>
    %414 = arith.addf %407, %413 : vector<2x16x64xf32>
    %415 = vector.extract_strided_slice %337 {offsets = [0, 0, 12], sizes = [2, 16, 64], strides = [1, 1, 1]} : vector<2x16x80xf32> to vector<2x16x64xf32>
    %416 = vector.extract_strided_slice %334 {offsets = [0, 11, 0], sizes = [1, 1, 64], strides = [1, 1, 1]} : vector<3x15x64xf32> to vector<1x1x64xf32>
    %417 = vector.shape_cast %416 : vector<1x1x64xf32> to vector<1x64xf32>
    %418 = vector.shape_cast %417 : vector<1x64xf32> to vector<1x1x64xf32>
    %419 = vector.broadcast %418 : vector<1x1x64xf32> to vector<2x16x64xf32>
    %420 = arith.mulf %415, %419 : vector<2x16x64xf32>
    %421 = arith.addf %414, %420 : vector<2x16x64xf32>
    %422 = vector.extract_strided_slice %337 {offsets = [0, 0, 13], sizes = [2, 16, 64], strides = [1, 1, 1]} : vector<2x16x80xf32> to vector<2x16x64xf32>
    %423 = vector.extract_strided_slice %334 {offsets = [0, 12, 0], sizes = [1, 1, 64], strides = [1, 1, 1]} : vector<3x15x64xf32> to vector<1x1x64xf32>
    %424 = vector.shape_cast %423 : vector<1x1x64xf32> to vector<1x64xf32>
    %425 = vector.shape_cast %424 : vector<1x64xf32> to vector<1x1x64xf32>
    %426 = vector.broadcast %425 : vector<1x1x64xf32> to vector<2x16x64xf32>
    %427 = arith.mulf %422, %426 : vector<2x16x64xf32>
    %428 = arith.addf %421, %427 : vector<2x16x64xf32>
    %429 = vector.extract_strided_slice %337 {offsets = [0, 0, 14], sizes = [2, 16, 64], strides = [1, 1, 1]} : vector<2x16x80xf32> to vector<2x16x64xf32>
    %430 = vector.extract_strided_slice %334 {offsets = [0, 13, 0], sizes = [1, 1, 64], strides = [1, 1, 1]} : vector<3x15x64xf32> to vector<1x1x64xf32>
    %431 = vector.shape_cast %430 : vector<1x1x64xf32> to vector<1x64xf32>
    %432 = vector.shape_cast %431 : vector<1x64xf32> to vector<1x1x64xf32>
    %433 = vector.broadcast %432 : vector<1x1x64xf32> to vector<2x16x64xf32>
    %434 = arith.mulf %429, %433 : vector<2x16x64xf32>
    %435 = arith.addf %428, %434 : vector<2x16x64xf32>
    %436 = vector.extract_strided_slice %337 {offsets = [0, 0, 15], sizes = [2, 16, 64], strides = [1, 1, 1]} : vector<2x16x80xf32> to vector<2x16x64xf32>
    %437 = vector.extract_strided_slice %334 {offsets = [0, 14, 0], sizes = [1, 1, 64], strides = [1, 1, 1]} : vector<3x15x64xf32> to vector<1x1x64xf32>
    %438 = vector.shape_cast %437 : vector<1x1x64xf32> to vector<1x64xf32>
    %439 = vector.shape_cast %438 : vector<1x64xf32> to vector<1x1x64xf32>
    %440 = vector.broadcast %439 : vector<1x1x64xf32> to vector<2x16x64xf32>
    %441 = arith.mulf %436, %440 : vector<2x16x64xf32>
    %442 = arith.addf %435, %441 : vector<2x16x64xf32>
    %443 = vector.extract_strided_slice %335 {offsets = [0, 1, 0], sizes = [2, 16, 80], strides = [1, 1, 1]} : vector<2x18x80xf32> to vector<2x16x80xf32>
    %444 = vector.extract_strided_slice %443 {offsets = [0, 0, 1], sizes = [2, 16, 64], strides = [1, 1, 1]} : vector<2x16x80xf32> to vector<2x16x64xf32>
    %445 = vector.extract_strided_slice %334 {offsets = [1, 0, 0], sizes = [1, 1, 64], strides = [1, 1, 1]} : vector<3x15x64xf32> to vector<1x1x64xf32>
    %446 = vector.shape_cast %445 : vector<1x1x64xf32> to vector<1x64xf32>
    %447 = vector.shape_cast %446 : vector<1x64xf32> to vector<1x1x64xf32>
    %448 = vector.broadcast %447 : vector<1x1x64xf32> to vector<2x16x64xf32>
    %449 = arith.mulf %444, %448 : vector<2x16x64xf32>
    %450 = arith.addf %442, %449 : vector<2x16x64xf32>
    %451 = vector.extract_strided_slice %443 {offsets = [0, 0, 2], sizes = [2, 16, 64], strides = [1, 1, 1]} : vector<2x16x80xf32> to vector<2x16x64xf32>
    %452 = vector.extract_strided_slice %334 {offsets = [1, 1, 0], sizes = [1, 1, 64], strides = [1, 1, 1]} : vector<3x15x64xf32> to vector<1x1x64xf32>
    %453 = vector.shape_cast %452 : vector<1x1x64xf32> to vector<1x64xf32>
    %454 = vector.shape_cast %453 : vector<1x64xf32> to vector<1x1x64xf32>
    %455 = vector.broadcast %454 : vector<1x1x64xf32> to vector<2x16x64xf32>
    %456 = arith.mulf %451, %455 : vector<2x16x64xf32>
    %457 = arith.addf %450, %456 : vector<2x16x64xf32>
    %458 = vector.extract_strided_slice %443 {offsets = [0, 0, 3], sizes = [2, 16, 64], strides = [1, 1, 1]} : vector<2x16x80xf32> to vector<2x16x64xf32>
    %459 = vector.extract_strided_slice %334 {offsets = [1, 2, 0], sizes = [1, 1, 64], strides = [1, 1, 1]} : vector<3x15x64xf32> to vector<1x1x64xf32>
    %460 = vector.shape_cast %459 : vector<1x1x64xf32> to vector<1x64xf32>
    %461 = vector.shape_cast %460 : vector<1x64xf32> to vector<1x1x64xf32>
    %462 = vector.broadcast %461 : vector<1x1x64xf32> to vector<2x16x64xf32>
    %463 = arith.mulf %458, %462 : vector<2x16x64xf32>
    %464 = arith.addf %457, %463 : vector<2x16x64xf32>
    %465 = vector.extract_strided_slice %443 {offsets = [0, 0, 4], sizes = [2, 16, 64], strides = [1, 1, 1]} : vector<2x16x80xf32> to vector<2x16x64xf32>
    %466 = vector.extract_strided_slice %334 {offsets = [1, 3, 0], sizes = [1, 1, 64], strides = [1, 1, 1]} : vector<3x15x64xf32> to vector<1x1x64xf32>
    %467 = vector.shape_cast %466 : vector<1x1x64xf32> to vector<1x64xf32>
    %468 = vector.shape_cast %467 : vector<1x64xf32> to vector<1x1x64xf32>
    %469 = vector.broadcast %468 : vector<1x1x64xf32> to vector<2x16x64xf32>
    %470 = arith.mulf %465, %469 : vector<2x16x64xf32>
    %471 = arith.addf %464, %470 : vector<2x16x64xf32>
    %472 = vector.extract_strided_slice %443 {offsets = [0, 0, 5], sizes = [2, 16, 64], strides = [1, 1, 1]} : vector<2x16x80xf32> to vector<2x16x64xf32>
    %473 = vector.extract_strided_slice %334 {offsets = [1, 4, 0], sizes = [1, 1, 64], strides = [1, 1, 1]} : vector<3x15x64xf32> to vector<1x1x64xf32>
    %474 = vector.shape_cast %473 : vector<1x1x64xf32> to vector<1x64xf32>
    %475 = vector.shape_cast %474 : vector<1x64xf32> to vector<1x1x64xf32>
    %476 = vector.broadcast %475 : vector<1x1x64xf32> to vector<2x16x64xf32>
    %477 = arith.mulf %472, %476 : vector<2x16x64xf32>
    %478 = arith.addf %471, %477 : vector<2x16x64xf32>
    %479 = vector.extract_strided_slice %443 {offsets = [0, 0, 6], sizes = [2, 16, 64], strides = [1, 1, 1]} : vector<2x16x80xf32> to vector<2x16x64xf32>
    %480 = vector.extract_strided_slice %334 {offsets = [1, 5, 0], sizes = [1, 1, 64], strides = [1, 1, 1]} : vector<3x15x64xf32> to vector<1x1x64xf32>
    %481 = vector.shape_cast %480 : vector<1x1x64xf32> to vector<1x64xf32>
    %482 = vector.shape_cast %481 : vector<1x64xf32> to vector<1x1x64xf32>
    %483 = vector.broadcast %482 : vector<1x1x64xf32> to vector<2x16x64xf32>
    %484 = arith.mulf %479, %483 : vector<2x16x64xf32>
    %485 = arith.addf %478, %484 : vector<2x16x64xf32>
    %486 = vector.extract_strided_slice %443 {offsets = [0, 0, 7], sizes = [2, 16, 64], strides = [1, 1, 1]} : vector<2x16x80xf32> to vector<2x16x64xf32>
    %487 = vector.extract_strided_slice %334 {offsets = [1, 6, 0], sizes = [1, 1, 64], strides = [1, 1, 1]} : vector<3x15x64xf32> to vector<1x1x64xf32>
    %488 = vector.shape_cast %487 : vector<1x1x64xf32> to vector<1x64xf32>
    %489 = vector.shape_cast %488 : vector<1x64xf32> to vector<1x1x64xf32>
    %490 = vector.broadcast %489 : vector<1x1x64xf32> to vector<2x16x64xf32>
    %491 = arith.mulf %486, %490 : vector<2x16x64xf32>
    %492 = arith.addf %485, %491 : vector<2x16x64xf32>
    %493 = vector.extract_strided_slice %443 {offsets = [0, 0, 8], sizes = [2, 16, 64], strides = [1, 1, 1]} : vector<2x16x80xf32> to vector<2x16x64xf32>
    %494 = vector.extract_strided_slice %334 {offsets = [1, 7, 0], sizes = [1, 1, 64], strides = [1, 1, 1]} : vector<3x15x64xf32> to vector<1x1x64xf32>
    %495 = vector.shape_cast %494 : vector<1x1x64xf32> to vector<1x64xf32>
    %496 = vector.shape_cast %495 : vector<1x64xf32> to vector<1x1x64xf32>
    %497 = vector.broadcast %496 : vector<1x1x64xf32> to vector<2x16x64xf32>
    %498 = arith.mulf %493, %497 : vector<2x16x64xf32>
    %499 = arith.addf %492, %498 : vector<2x16x64xf32>
    %500 = vector.extract_strided_slice %443 {offsets = [0, 0, 9], sizes = [2, 16, 64], strides = [1, 1, 1]} : vector<2x16x80xf32> to vector<2x16x64xf32>
    %501 = vector.extract_strided_slice %334 {offsets = [1, 8, 0], sizes = [1, 1, 64], strides = [1, 1, 1]} : vector<3x15x64xf32> to vector<1x1x64xf32>
    %502 = vector.shape_cast %501 : vector<1x1x64xf32> to vector<1x64xf32>
    %503 = vector.shape_cast %502 : vector<1x64xf32> to vector<1x1x64xf32>
    %504 = vector.broadcast %503 : vector<1x1x64xf32> to vector<2x16x64xf32>
    %505 = arith.mulf %500, %504 : vector<2x16x64xf32>
    %506 = arith.addf %499, %505 : vector<2x16x64xf32>
    %507 = vector.extract_strided_slice %443 {offsets = [0, 0, 10], sizes = [2, 16, 64], strides = [1, 1, 1]} : vector<2x16x80xf32> to vector<2x16x64xf32>
    %508 = vector.extract_strided_slice %334 {offsets = [1, 9, 0], sizes = [1, 1, 64], strides = [1, 1, 1]} : vector<3x15x64xf32> to vector<1x1x64xf32>
    %509 = vector.shape_cast %508 : vector<1x1x64xf32> to vector<1x64xf32>
    %510 = vector.shape_cast %509 : vector<1x64xf32> to vector<1x1x64xf32>
    %511 = vector.broadcast %510 : vector<1x1x64xf32> to vector<2x16x64xf32>
    %512 = arith.mulf %507, %511 : vector<2x16x64xf32>
    %513 = arith.addf %506, %512 : vector<2x16x64xf32>
    %514 = vector.extract_strided_slice %443 {offsets = [0, 0, 11], sizes = [2, 16, 64], strides = [1, 1, 1]} : vector<2x16x80xf32> to vector<2x16x64xf32>
    %515 = vector.extract_strided_slice %334 {offsets = [1, 10, 0], sizes = [1, 1, 64], strides = [1, 1, 1]} : vector<3x15x64xf32> to vector<1x1x64xf32>
    %516 = vector.shape_cast %515 : vector<1x1x64xf32> to vector<1x64xf32>
    %517 = vector.shape_cast %516 : vector<1x64xf32> to vector<1x1x64xf32>
    %518 = vector.broadcast %517 : vector<1x1x64xf32> to vector<2x16x64xf32>
    %519 = arith.mulf %514, %518 : vector<2x16x64xf32>
    %520 = arith.addf %513, %519 : vector<2x16x64xf32>
    %521 = vector.extract_strided_slice %443 {offsets = [0, 0, 12], sizes = [2, 16, 64], strides = [1, 1, 1]} : vector<2x16x80xf32> to vector<2x16x64xf32>
    %522 = vector.extract_strided_slice %334 {offsets = [1, 11, 0], sizes = [1, 1, 64], strides = [1, 1, 1]} : vector<3x15x64xf32> to vector<1x1x64xf32>
    %523 = vector.shape_cast %522 : vector<1x1x64xf32> to vector<1x64xf32>
    %524 = vector.shape_cast %523 : vector<1x64xf32> to vector<1x1x64xf32>
    %525 = vector.broadcast %524 : vector<1x1x64xf32> to vector<2x16x64xf32>
    %526 = arith.mulf %521, %525 : vector<2x16x64xf32>
    %527 = arith.addf %520, %526 : vector<2x16x64xf32>
    %528 = vector.extract_strided_slice %443 {offsets = [0, 0, 13], sizes = [2, 16, 64], strides = [1, 1, 1]} : vector<2x16x80xf32> to vector<2x16x64xf32>
    %529 = vector.extract_strided_slice %334 {offsets = [1, 12, 0], sizes = [1, 1, 64], strides = [1, 1, 1]} : vector<3x15x64xf32> to vector<1x1x64xf32>
    %530 = vector.shape_cast %529 : vector<1x1x64xf32> to vector<1x64xf32>
    %531 = vector.shape_cast %530 : vector<1x64xf32> to vector<1x1x64xf32>
    %532 = vector.broadcast %531 : vector<1x1x64xf32> to vector<2x16x64xf32>
    %533 = arith.mulf %528, %532 : vector<2x16x64xf32>
    %534 = arith.addf %527, %533 : vector<2x16x64xf32>
    %535 = vector.extract_strided_slice %443 {offsets = [0, 0, 14], sizes = [2, 16, 64], strides = [1, 1, 1]} : vector<2x16x80xf32> to vector<2x16x64xf32>
    %536 = vector.extract_strided_slice %334 {offsets = [1, 13, 0], sizes = [1, 1, 64], strides = [1, 1, 1]} : vector<3x15x64xf32> to vector<1x1x64xf32>
    %537 = vector.shape_cast %536 : vector<1x1x64xf32> to vector<1x64xf32>
    %538 = vector.shape_cast %537 : vector<1x64xf32> to vector<1x1x64xf32>
    %539 = vector.broadcast %538 : vector<1x1x64xf32> to vector<2x16x64xf32>
    %540 = arith.mulf %535, %539 : vector<2x16x64xf32>
    %541 = arith.addf %534, %540 : vector<2x16x64xf32>
    %542 = vector.extract_strided_slice %443 {offsets = [0, 0, 15], sizes = [2, 16, 64], strides = [1, 1, 1]} : vector<2x16x80xf32> to vector<2x16x64xf32>
    %543 = vector.extract_strided_slice %334 {offsets = [1, 14, 0], sizes = [1, 1, 64], strides = [1, 1, 1]} : vector<3x15x64xf32> to vector<1x1x64xf32>
    %544 = vector.shape_cast %543 : vector<1x1x64xf32> to vector<1x64xf32>
    %545 = vector.shape_cast %544 : vector<1x64xf32> to vector<1x1x64xf32>
    %546 = vector.broadcast %545 : vector<1x1x64xf32> to vector<2x16x64xf32>
    %547 = arith.mulf %542, %546 : vector<2x16x64xf32>
    %548 = arith.addf %541, %547 : vector<2x16x64xf32>
    %549 = vector.extract_strided_slice %335 {offsets = [0, 2, 0], sizes = [2, 16, 80], strides = [1, 1, 1]} : vector<2x18x80xf32> to vector<2x16x80xf32>
    %550 = vector.extract_strided_slice %549 {offsets = [0, 0, 1], sizes = [2, 16, 64], strides = [1, 1, 1]} : vector<2x16x80xf32> to vector<2x16x64xf32>
    %551 = vector.extract_strided_slice %334 {offsets = [2, 0, 0], sizes = [1, 1, 64], strides = [1, 1, 1]} : vector<3x15x64xf32> to vector<1x1x64xf32>
    %552 = vector.shape_cast %551 : vector<1x1x64xf32> to vector<1x64xf32>
    %553 = vector.shape_cast %552 : vector<1x64xf32> to vector<1x1x64xf32>
    %554 = vector.broadcast %553 : vector<1x1x64xf32> to vector<2x16x64xf32>
    %555 = arith.mulf %550, %554 : vector<2x16x64xf32>
    %556 = arith.addf %548, %555 : vector<2x16x64xf32>
    %557 = vector.extract_strided_slice %549 {offsets = [0, 0, 2], sizes = [2, 16, 64], strides = [1, 1, 1]} : vector<2x16x80xf32> to vector<2x16x64xf32>
    %558 = vector.extract_strided_slice %334 {offsets = [2, 1, 0], sizes = [1, 1, 64], strides = [1, 1, 1]} : vector<3x15x64xf32> to vector<1x1x64xf32>
    %559 = vector.shape_cast %558 : vector<1x1x64xf32> to vector<1x64xf32>
    %560 = vector.shape_cast %559 : vector<1x64xf32> to vector<1x1x64xf32>
    %561 = vector.broadcast %560 : vector<1x1x64xf32> to vector<2x16x64xf32>
    %562 = arith.mulf %557, %561 : vector<2x16x64xf32>
    %563 = arith.addf %556, %562 : vector<2x16x64xf32>
    %564 = vector.extract_strided_slice %549 {offsets = [0, 0, 3], sizes = [2, 16, 64], strides = [1, 1, 1]} : vector<2x16x80xf32> to vector<2x16x64xf32>
    %565 = vector.extract_strided_slice %334 {offsets = [2, 2, 0], sizes = [1, 1, 64], strides = [1, 1, 1]} : vector<3x15x64xf32> to vector<1x1x64xf32>
    %566 = vector.shape_cast %565 : vector<1x1x64xf32> to vector<1x64xf32>
    %567 = vector.shape_cast %566 : vector<1x64xf32> to vector<1x1x64xf32>
    %568 = vector.broadcast %567 : vector<1x1x64xf32> to vector<2x16x64xf32>
    %569 = arith.mulf %564, %568 : vector<2x16x64xf32>
    %570 = arith.addf %563, %569 : vector<2x16x64xf32>
    %571 = vector.extract_strided_slice %549 {offsets = [0, 0, 4], sizes = [2, 16, 64], strides = [1, 1, 1]} : vector<2x16x80xf32> to vector<2x16x64xf32>
    %572 = vector.extract_strided_slice %334 {offsets = [2, 3, 0], sizes = [1, 1, 64], strides = [1, 1, 1]} : vector<3x15x64xf32> to vector<1x1x64xf32>
    %573 = vector.shape_cast %572 : vector<1x1x64xf32> to vector<1x64xf32>
    %574 = vector.shape_cast %573 : vector<1x64xf32> to vector<1x1x64xf32>
    %575 = vector.broadcast %574 : vector<1x1x64xf32> to vector<2x16x64xf32>
    %576 = arith.mulf %571, %575 : vector<2x16x64xf32>
    %577 = arith.addf %570, %576 : vector<2x16x64xf32>
    %578 = vector.extract_strided_slice %549 {offsets = [0, 0, 5], sizes = [2, 16, 64], strides = [1, 1, 1]} : vector<2x16x80xf32> to vector<2x16x64xf32>
    %579 = vector.extract_strided_slice %334 {offsets = [2, 4, 0], sizes = [1, 1, 64], strides = [1, 1, 1]} : vector<3x15x64xf32> to vector<1x1x64xf32>
    %580 = vector.shape_cast %579 : vector<1x1x64xf32> to vector<1x64xf32>
    %581 = vector.shape_cast %580 : vector<1x64xf32> to vector<1x1x64xf32>
    %582 = vector.broadcast %581 : vector<1x1x64xf32> to vector<2x16x64xf32>
    %583 = arith.mulf %578, %582 : vector<2x16x64xf32>
    %584 = arith.addf %577, %583 : vector<2x16x64xf32>
    %585 = vector.extract_strided_slice %549 {offsets = [0, 0, 6], sizes = [2, 16, 64], strides = [1, 1, 1]} : vector<2x16x80xf32> to vector<2x16x64xf32>
    %586 = vector.extract_strided_slice %334 {offsets = [2, 5, 0], sizes = [1, 1, 64], strides = [1, 1, 1]} : vector<3x15x64xf32> to vector<1x1x64xf32>
    %587 = vector.shape_cast %586 : vector<1x1x64xf32> to vector<1x64xf32>
    %588 = vector.shape_cast %587 : vector<1x64xf32> to vector<1x1x64xf32>
    %589 = vector.broadcast %588 : vector<1x1x64xf32> to vector<2x16x64xf32>
    %590 = arith.mulf %585, %589 : vector<2x16x64xf32>
    %591 = arith.addf %584, %590 : vector<2x16x64xf32>
    %592 = vector.extract_strided_slice %549 {offsets = [0, 0, 7], sizes = [2, 16, 64], strides = [1, 1, 1]} : vector<2x16x80xf32> to vector<2x16x64xf32>
    %593 = vector.extract_strided_slice %334 {offsets = [2, 6, 0], sizes = [1, 1, 64], strides = [1, 1, 1]} : vector<3x15x64xf32> to vector<1x1x64xf32>
    %594 = vector.shape_cast %593 : vector<1x1x64xf32> to vector<1x64xf32>
    %595 = vector.shape_cast %594 : vector<1x64xf32> to vector<1x1x64xf32>
    %596 = vector.broadcast %595 : vector<1x1x64xf32> to vector<2x16x64xf32>
    %597 = arith.mulf %592, %596 : vector<2x16x64xf32>
    %598 = arith.addf %591, %597 : vector<2x16x64xf32>
    %599 = vector.extract_strided_slice %549 {offsets = [0, 0, 8], sizes = [2, 16, 64], strides = [1, 1, 1]} : vector<2x16x80xf32> to vector<2x16x64xf32>
    %600 = vector.extract_strided_slice %334 {offsets = [2, 7, 0], sizes = [1, 1, 64], strides = [1, 1, 1]} : vector<3x15x64xf32> to vector<1x1x64xf32>
    %601 = vector.shape_cast %600 : vector<1x1x64xf32> to vector<1x64xf32>
    %602 = vector.shape_cast %601 : vector<1x64xf32> to vector<1x1x64xf32>
    %603 = vector.broadcast %602 : vector<1x1x64xf32> to vector<2x16x64xf32>
    %604 = arith.mulf %599, %603 : vector<2x16x64xf32>
    %605 = arith.addf %598, %604 : vector<2x16x64xf32>
    %606 = vector.extract_strided_slice %549 {offsets = [0, 0, 9], sizes = [2, 16, 64], strides = [1, 1, 1]} : vector<2x16x80xf32> to vector<2x16x64xf32>
    %607 = vector.extract_strided_slice %334 {offsets = [2, 8, 0], sizes = [1, 1, 64], strides = [1, 1, 1]} : vector<3x15x64xf32> to vector<1x1x64xf32>
    %608 = vector.shape_cast %607 : vector<1x1x64xf32> to vector<1x64xf32>
    %609 = vector.shape_cast %608 : vector<1x64xf32> to vector<1x1x64xf32>
    %610 = vector.broadcast %609 : vector<1x1x64xf32> to vector<2x16x64xf32>
    %611 = arith.mulf %606, %610 : vector<2x16x64xf32>
    %612 = arith.addf %605, %611 : vector<2x16x64xf32>
    %613 = vector.extract_strided_slice %549 {offsets = [0, 0, 10], sizes = [2, 16, 64], strides = [1, 1, 1]} : vector<2x16x80xf32> to vector<2x16x64xf32>
    %614 = vector.extract_strided_slice %334 {offsets = [2, 9, 0], sizes = [1, 1, 64], strides = [1, 1, 1]} : vector<3x15x64xf32> to vector<1x1x64xf32>
    %615 = vector.shape_cast %614 : vector<1x1x64xf32> to vector<1x64xf32>
    %616 = vector.shape_cast %615 : vector<1x64xf32> to vector<1x1x64xf32>
    %617 = vector.broadcast %616 : vector<1x1x64xf32> to vector<2x16x64xf32>
    %618 = arith.mulf %613, %617 : vector<2x16x64xf32>
    %619 = arith.addf %612, %618 : vector<2x16x64xf32>
    %620 = vector.extract_strided_slice %549 {offsets = [0, 0, 11], sizes = [2, 16, 64], strides = [1, 1, 1]} : vector<2x16x80xf32> to vector<2x16x64xf32>
    %621 = vector.extract_strided_slice %334 {offsets = [2, 10, 0], sizes = [1, 1, 64], strides = [1, 1, 1]} : vector<3x15x64xf32> to vector<1x1x64xf32>
    %622 = vector.shape_cast %621 : vector<1x1x64xf32> to vector<1x64xf32>
    %623 = vector.shape_cast %622 : vector<1x64xf32> to vector<1x1x64xf32>
    %624 = vector.broadcast %623 : vector<1x1x64xf32> to vector<2x16x64xf32>
    %625 = arith.mulf %620, %624 : vector<2x16x64xf32>
    %626 = arith.addf %619, %625 : vector<2x16x64xf32>
    %627 = vector.extract_strided_slice %549 {offsets = [0, 0, 12], sizes = [2, 16, 64], strides = [1, 1, 1]} : vector<2x16x80xf32> to vector<2x16x64xf32>
    %628 = vector.extract_strided_slice %334 {offsets = [2, 11, 0], sizes = [1, 1, 64], strides = [1, 1, 1]} : vector<3x15x64xf32> to vector<1x1x64xf32>
    %629 = vector.shape_cast %628 : vector<1x1x64xf32> to vector<1x64xf32>
    %630 = vector.shape_cast %629 : vector<1x64xf32> to vector<1x1x64xf32>
    %631 = vector.broadcast %630 : vector<1x1x64xf32> to vector<2x16x64xf32>
    %632 = arith.mulf %627, %631 : vector<2x16x64xf32>
    %633 = arith.addf %626, %632 : vector<2x16x64xf32>
    %634 = vector.extract_strided_slice %549 {offsets = [0, 0, 13], sizes = [2, 16, 64], strides = [1, 1, 1]} : vector<2x16x80xf32> to vector<2x16x64xf32>
    %635 = vector.extract_strided_slice %334 {offsets = [2, 12, 0], sizes = [1, 1, 64], strides = [1, 1, 1]} : vector<3x15x64xf32> to vector<1x1x64xf32>
    %636 = vector.shape_cast %635 : vector<1x1x64xf32> to vector<1x64xf32>
    %637 = vector.shape_cast %636 : vector<1x64xf32> to vector<1x1x64xf32>
    %638 = vector.broadcast %637 : vector<1x1x64xf32> to vector<2x16x64xf32>
    %639 = arith.mulf %634, %638 : vector<2x16x64xf32>
    %640 = arith.addf %633, %639 : vector<2x16x64xf32>
    %641 = vector.extract_strided_slice %549 {offsets = [0, 0, 14], sizes = [2, 16, 64], strides = [1, 1, 1]} : vector<2x16x80xf32> to vector<2x16x64xf32>
    %642 = vector.extract_strided_slice %334 {offsets = [2, 13, 0], sizes = [1, 1, 64], strides = [1, 1, 1]} : vector<3x15x64xf32> to vector<1x1x64xf32>
    %643 = vector.shape_cast %642 : vector<1x1x64xf32> to vector<1x64xf32>
    %644 = vector.shape_cast %643 : vector<1x64xf32> to vector<1x1x64xf32>
    %645 = vector.broadcast %644 : vector<1x1x64xf32> to vector<2x16x64xf32>
    %646 = arith.mulf %641, %645 : vector<2x16x64xf32>
    %647 = arith.addf %640, %646 : vector<2x16x64xf32>
    %648 = vector.extract_strided_slice %549 {offsets = [0, 0, 15], sizes = [2, 16, 64], strides = [1, 1, 1]} : vector<2x16x80xf32> to vector<2x16x64xf32>
    %649 = vector.extract_strided_slice %334 {offsets = [2, 14, 0], sizes = [1, 1, 64], strides = [1, 1, 1]} : vector<3x15x64xf32> to vector<1x1x64xf32>
    %650 = vector.shape_cast %649 : vector<1x1x64xf32> to vector<1x64xf32>
    %651 = vector.shape_cast %650 : vector<1x64xf32> to vector<1x1x64xf32>
    %652 = vector.broadcast %651 : vector<1x1x64xf32> to vector<2x16x64xf32>
    %653 = arith.mulf %648, %652 : vector<2x16x64xf32>
    %654 = arith.addf %647, %653 : vector<2x16x64xf32>
    %c0_30 = arith.constant 0 : index
    %c0_31 = arith.constant 0 : index
    %655 = vector.load %arg5[%c0_30, %c0_31] : memref<1x64xf32, #tpu.memory_space<vmem>>, vector<1x64xf32>
    %656 = vector.shape_cast %655 : vector<1x64xf32> to vector<1x1x64xf32>
    %657 = vector.broadcast %656 : vector<1x1x64xf32> to vector<2x16x64xf32>
    %658 = arith.addf %654, %657 : vector<2x16x64xf32>
    %cst_32 = arith.constant 0.000000e+00 : f32
    %659 = vector.broadcast %cst_32 : f32 to vector<2x16x64xf32>
    %660 = arith.maximumf %658, %659 : vector<2x16x64xf32>
    %661 = arith.addf %4, %660 : vector<2x16x64xf32>
    %c0_33 = arith.constant 0 : index
    %c0_34 = arith.constant 0 : index
    %c0_35 = arith.constant 0 : index
    %662 = vector.load %arg6[%c0_33, %c0_34, %c0_35] : memref<2x16x64xf32, #tpu.memory_space<vmem>>, vector<2x16x64xf32>
    tpu.vector_store %arg6[%c0_33, %c0_34, %c0_35], %661 {strides = array<i32>} : memref<2x16x64xf32, #tpu.memory_space<vmem>>, vector<2x16x64xf32>,
    return
  }
  func.func @transform_0(%arg0: i32) -> (i32, i32, i32) {
    %c0_i32 = arith.constant 0 : i32
    %c0_i32_0 = arith.constant 0 : i32
    %c0_i32_1 = arith.constant 0 : i32
    return %arg0, %c0_i32, %c0_i32_0 : i32, i32, i32
  }
  func.func @transform_1(%arg0: i32) -> (i32, i32, i32) {
    %c0_i32 = arith.constant 0 : i32
    %c0_i32_0 = arith.constant 0 : i32
    %c0_i32_1 = arith.constant 0 : i32
    %c0_i32_2 = arith.constant 0 : i32
    return %c0_i32, %c0_i32_0, %c0_i32_1 : i32, i32, i32
  }
  func.func @transform_2(%arg0: i32) -> (i32, i32) {
    %c0_i32 = arith.constant 0 : i32
    %c0_i32_0 = arith.constant 0 : i32
    %c0_i32_1 = arith.constant 0 : i32
    return %c0_i32, %c0_i32_0 : i32, i32
  }
  func.func @transform_3(%arg0: i32) -> (i32, i32, i32) {
    %c0_i32 = arith.constant 0 : i32
    %c0_i32_0 = arith.constant 0 : i32
    %c0_i32_1 = arith.constant 0 : i32
    %c0_i32_2 = arith.constant 0 : i32
    return %c0_i32, %c0_i32_0, %c0_i32_1 : i32, i32, i32
  }
  func.func @transform_4(%arg0: i32) -> (i32, i32) {
    %c0_i32 = arith.constant 0 : i32
    %c0_i32_0 = arith.constant 0 : i32
    %c0_i32_1 = arith.constant 0 : i32
    return %c0_i32, %c0_i32_0 : i32, i32
  }
  func.func @transform_5(%arg0: i32) -> (i32, i32, i32) {
    %c0_i32 = arith.constant 0 : i32
    %c0_i32_0 = arith.constant 0 : i32
    %c0_i32_1 = arith.constant 0 : i32
    return %arg0, %c0_i32, %c0_i32_0 : i32, i32, i32
  }
}

</mosaic_0001>

<bundles_post_ra>
// kernel: tpu_custom_call.1
= control target key start
LH: loop header
LB: loop body
LE: loop exit
PB: predicated region body
PF: predicated region fallthrough
CT: control target
= control target key end

     0   :  { %10 = vsyncpa [#allocation5], 0  ;;  %s6658_s0 = inlined_call_operand.hbm [shape: f32[2,16,64], index: 0, kind: input, shape index: {}]   ;;  %s6659_s1 = inlined_call_operand.hbm [shape: f32[3,15,64], index: 1, kind: input, shape index: {}]   ;;  %s6660_s2 = inlined_call_operand.vmem [shape: f32[1,64], index: 2, kind: input, shape index: {}]   ;;  %s6661_s3 = inlined_call_operand.hbm [shape: f32[3,15,64], index: 3, kind: input, shape index: {}]   ;;  %s6662_s4 = inlined_call_operand.vmem [shape: f32[1,64], index: 4, kind: input, shape index: {}]   ;;  %s6663_s5 = inlined_call_operand.hbm [shape: f32[2,16,64], index: 5, kind: output, shape index: {}]  }
   0x1   :  { %11 = vsyncpa [#allocation8], 0 }
   0x2   :  { %12 = vsyncpa [#allocation6], 0  ;;  %s4035_s18 = smov [#allocation7]   ;;  %s4036_s20 = smov [#allocation4]  }
   0x3   :  { %s30_s19 = sshll.u32 %s4035_s18, 4  ;;  %s18_s21 = sshll.u32 %s4036_s20, 4  ;;  %s31_s19 = int_to_ptr.vmem [resolvable:$true] %s30_s19  ;;  %s4100_s21 = int_to_ptr.vmem [resolvable:$true] %s18_s21 }
   0x4   :  { %s3941_s24 = scalar_lea.hbm %s6659_s1, 768 }
   0x5   :  { %p3942_p0 = scmp.ne.s32.totalorder %s6659_s1, %s3941_s24  ;;  %p3945_p1 = scmp.lt.u32.totalorder %s3941_s24, %s6659_s1 }
   0x7   :  { %p3947_p2 = pnand %p3945_p1, %p3942_p0 }
   0x9   :  { %3950 = shalt.err (!%p3947_p2)
}
   0xa   :  { %s3951_s29 = scalar_lea.vmem %s31_s19, 768  ;;  %p3956_p4 = scmp.lt.s32.totalorder %s31_s19, %s31_s19 }
   0xb   :  { %p3952_p3 = scmp.ne.s32.totalorder %s31_s19, %s3951_s29  ;;  %p3957_p5 = scmp.lt.s32.totalorder %s3951_s29, %s3951_s29 }
   0xd   :  { %p3958_p6 = por %p3957_p5, %p3956_p4 }
   0xf   :  { %p3959_p7 = pnand %p3958_p6, %p3952_p3 }
  0x11   :  { %3962 = shalt.err (!%p3959_p7)
}
  0x12   :  { %s6664_s30 = smov 128   ;;  %s4038_s6 = smov 8  }
  0x13   :  { %36 = dma.hbm_to_vmem [thread:$0]  %s6659_s1, 768, %s31_s19, [#allocation8], %s6664_s30, %s6664_s30, %s4038_s6  }
  0x14   :  { %s3963_s11 = scalar_lea.hbm %s6658_s0, 512 }
  0x15   :  { %p3964_p8 = scmp.ne.s32.totalorder %s6658_s0, %s3963_s11  ;;  %p3967_p9 = scmp.lt.u32.totalorder %s3963_s11, %s6658_s0 }
  0x17   :  { %p3969_p10 = pnand %p3967_p9, %p3964_p8 }
  0x19   :  { %3972 = shalt.err (!%p3969_p10)
}
  0x1a   :  { %s3973_s16 = scalar_lea.vmem %s4100_s21, 512  ;;  %p3978_p12 = scmp.lt.s32.totalorder %s4100_s21, %s4100_s21 }
  0x1b   :  { %p3974_p11 = scmp.ne.s32.totalorder %s4100_s21, %s3973_s16  ;;  %p3979_p13 = scmp.lt.s32.totalorder %s3973_s16, %s3973_s16 }
  0x1d   :  { %p3980_p0 = por %p3979_p13, %p3978_p12 }
  0x1f   :  { %p3981_p1 = pnand %p3980_p0, %p3974_p11 }
  0x21   :  { %3984 = shalt.err (!%p3981_p1)
}
  0x22   :  { %24 = dma.hbm_to_vmem [thread:$0]  %s6658_s0, 512, %s4100_s21, [#allocation5], %s6664_s30, %s6664_s30, %s4038_s6  }
  0x23   :  { %s4039_s18 = smov [#allocation9]   ;;  %s3985_s23 = scalar_lea.hbm %s6661_s3, 768 }
  0x24   :  { %s44_s19 = sshll.u32 %s4039_s18, 4  ;;  %p3986_p2 = scmp.ne.s32.totalorder %s6661_s3, %s3985_s23  ;;  %s45_s19 = int_to_ptr.vmem [resolvable:$true] %s44_s19 }
  0x25   :  { %p3989_p3 = scmp.lt.u32.totalorder %s3985_s23, %s6661_s3 }
  0x27   :  { %p3991_p4 = pnand %p3989_p3, %p3986_p2 }
  0x29   :  { %3994 = shalt.err (!%p3991_p4)
}
  0x2a   :  { %s3995_s28 = scalar_lea.vmem %s45_s19, 768  ;;  %p4000_p6 = scmp.lt.s32.totalorder %s45_s19, %s45_s19 }
  0x2b   :  { %p3996_p5 = scmp.ne.s32.totalorder %s45_s19, %s3995_s28  ;;  %p4001_p7 = scmp.lt.s32.totalorder %s3995_s28, %s3995_s28 }
  0x2d   :  { %p4002_p8 = por %p4001_p7, %p4000_p6 }
  0x2f   :  { %p4003_p9 = pnand %p4002_p8, %p3996_p5 }
  0x31   :  { %4006 = shalt.err (!%p4003_p9)
}
  0x32   :  { %50 = dma.hbm_to_vmem [thread:$0]  %s6661_s3, 768, %s45_s19, [#allocation8], %s6664_s30, %s6664_s30, %s4038_s6  }
  0x33   :  { %4029 = dma.done.wait [#allocation5], 512  }
  0x34   :  { %4030 = vsyncadd [#allocation5], 4294966784 }
  0x35   :  { %4031 = dma.done.wait [#allocation8], 1536  }
  0x36   :  { %4032 = vsyncadd [#allocation8], 4294965760  ;;  %v113_v0 = vlaneseq  ;;  %vm62_vm0 = vcmask 654336   ;;  %v4040_v1 = vmov 0.0   ;;  %vm65_vm1 = vcmask 648192   ;;  %v78_v3 = vld [vmem:[#allocation4 + $0x10] sm:$0xff] }
  0x37   :  { %67 = vst.msk [vmem:[#allocation2 + $0x18] sm:$0xff] %vm62_vm0, %v4040_v1  ;;  %68 = vst.msk [vmem:[#allocation2 + $0x20] sm:$0xff] %vm62_vm0, %v4040_v1  ;;  %v76_v4 = vld [vmem:[#allocation4] sm:$0xff]  ;;  %88 = vrot.lane.b32.xlu1 %v78_v3, %s4038_s6  ;;  %v79_v7 = vld [vmem:[#allocation4 + $0x18] sm:$0xff]  ;;  %s4041_s3 = smov 2   ;;  %s4042_s29 = smov 1  }
  0x38   :  { %63 = vst.msk [vmem:[#allocation2] sm:$0xff] %vm62_vm0, %v4040_v1  ;;  %64 = vst.msk [vmem:[#allocation2 + $0x8] sm:$0xff] %vm62_vm0, %v4040_v1  ;;  %v114_v2 = vshrl.u32 %v113_v0, 7  ;;  %84 = vrot.lane.b32.xlu0 %v76_v4, %s4038_s6  ;;  %v77_v8 = vld [vmem:[#allocation4 + $0x8] sm:$0xff]  ;;  %v101_v9 = vld [vmem:[#allocation7] sm:$0xff]  ;;  %s4043_s7 = smov 4  }
  0x39   :  { %70 = vst.msk [vmem:[#allocation3] sm:$0xff] %vm62_vm0, %v4040_v1  ;;  %71 = vst.msk [vmem:[#allocation3 + $0x8] sm:$0xff] %vm62_vm0, %v4040_v1  ;;  %s4044_s8 = smov 3   ;;  %s4045_s9 = smov 6   ;;  %v4186_v24 = vld [vmem:[#allocation7 + $0x8] sm:$0x7f] }
  0x3a   :  { %73 = vst.msk [vmem:[#allocation3 + $0x18] sm:$0xff] %vm62_vm0, %v4040_v1  ;;  %74 = vst.msk [vmem:[#allocation3 + $0x20] sm:$0xff] %vm62_vm0, %v4040_v1  ;;  %v4154_v5 = vsub.s32 1, %v114_v2  ;;  %v4156_v6 = vsub.s32 0, %v114_v2  ;;  %v4162_v12 = vsub.s32 3, %v114_v2  ;;  %v4164_v13 = vsub.s32 2, %v114_v2 }
  0x3b   :  { %69 = vst.msk [vmem:[#allocation2 + $0x28] sm:$0x3] %vm65_vm1, %v4040_v1  ;;  %66 = vst.msk [vmem:[#allocation2 + $0x10] sm:$0x3] %vm65_vm1, %v4040_v1  ;;  %90 = vrot.lane.b32.xlu1 %v79_v7, %s4038_s6  ;;  %v4170_v16 = vsub.s32 5, %v114_v2  ;;  %v4172_v17 = vsub.s32 4, %v114_v2 }
  0x3c   :  { %72 = vst.msk [vmem:[#allocation3 + $0x10] sm:$0x3] %vm65_vm1, %v4040_v1  ;;  %75 = vst.msk [vmem:[#allocation3 + $0x28] sm:$0x3] %vm65_vm1, %v4040_v1  ;;  %86 = vrot.lane.b32.xlu0 %v77_v8, %s4038_s6  ;;  %v132_v10 = vrot.slane %v101_v9, %v4154_v5  ;;  %v116_v11 = vrot.slane %v101_v9, %v4156_v6  ;;  %v196_v14 = vrot.slane %v101_v9, %v4162_v12  ;;  %s4046_s10 = smov 5   ;;  %s4047_s11 = smov 7  }
  0x3d   :  { %6706 = vst [vmem:[#allocation14_spill] sm:$0xff] %v4154_v5  ;;  %6707 = vst [vmem:[#allocation15_spill] sm:$0xff] %v4156_v6  ;;  %v164_v15 = vrot.slane %v101_v9, %v4164_v13  ;;  %v260_v18 = vrot.slane %v101_v9, %v4170_v16  ;;  %v228_v19 = vrot.slane %v101_v9, %v4172_v17  ;;  %v4178_v20 = vsub.s32 7, %v114_v2  ;;  %s4048_s12 = smov 10   ;;  %s4049_s13 = smov 9  }
  0x3e   :  { %6708 = vst [vmem:[#allocation16_spill] sm:$0xff] %v4162_v12  ;;  %6709 = vst [vmem:[#allocation17_spill] sm:$0xff] %v4164_v13  ;;  %v4180_v21 = vsub.s32 6, %v114_v2  ;;  %v388_v25 = vrot.slane %v4186_v24, %v4154_v5  ;;  %v356_v26 = vrot.slane %v4186_v24, %v4156_v6  ;;  %v452_v27 = vrot.slane %v4186_v24, %v4162_v12  ;;  %s4050_s14 = smov 12   ;;  %s4051_s15 = smov 11  }
  0x3f   :  { %134 = vrot.lane.b32.xlu1 %v132_v10, %s4041_s3  ;;  %6710 = vst [vmem:[#allocation18_spill] sm:$0xff] %v4170_v16  ;;  %6711 = vst [vmem:[#allocation19_spill] sm:$0xff] %v4172_v17  ;;  %v324_v22 = vrot.slane %v101_v9, %v4178_v20  ;;  %v420_v28 = vrot.slane %v4186_v24, %v4164_v13  ;;  %v516_v29 = vrot.slane %v4186_v24, %v4170_v16  ;;  %s6668_s16 = smov 14   ;;  %s6683_s1 = smov 13   ;;  %vm96_vm2 = vcmask 588864  }
  0x40   :  { %118 = vrot.lane.b32.xlu0 %v116_v11, %s4042_s29  ;;  %6712 = vst [vmem:[#allocation20_spill] sm:$0xff] %v4178_v20  ;;  %6713 = vst [vmem:[#allocation21_spill] sm:$0xff] %v4180_v21  ;;  %v292_v23 = vrot.slane %v101_v9, %v4180_v21  ;;  %v484_v30 = vrot.slane %v4186_v24, %v4172_v17  ;;  %s4054_s17 = smov 127   ;;  %s4055_s18 = smov 126   ;;  %vm597_vm3 = vcmask 1046528   ;;  %vm1280_vm4 = vcmask 1045504  }
  0x41   :  { %s4056_s19 = smov 125   ;;  %s4057_s20 = smov 124   ;;  %vm3857_vm5 = vcmask 523264  }
  0x42   :  { %s4058_s22 = smov 123   ;;  %s4059_s23 = smov 122  }
  0x43   :  { %198 = vrot.lane.b32.xlu1 %v196_v14, %s4043_s7  ;;  %s4060_s24 = smov 121   ;;  %s4061_s25 = smov 120  }
  0x44   :  { %166 = vrot.lane.b32.xlu0 %v164_v15, %s4044_s8  ;;  %s4062_s26 = smov 119   ;;  %s4063_s27 = smov 118  }
  0x45   :  { %s4064_s28 = smov 117   ;;  %s6691_s0 = smov 116  }
  0x46   :  { %s6689_s21 = smov 115   ;;  %s6665_s30 = smov 15  }
  0x47   :  { %262 = vrot.lane.b32.xlu1 %v260_v18, %s4045_s9 }
  0x48   :  { %230 = vrot.lane.b32.xlu0 %v228_v19, %s4046_s10 }
  0x4b   :  { %326 = vrot.lane.b32.xlu1 %v324_v22, %s4038_s6 }
  0x4c   :  { %294 = vrot.lane.b32.xlu0 %v292_v23, %s4047_s11 }
  0x4f   :  { %390 = vrot.lane.b32.xlu1 %v388_v25, %s4048_s12 }
  0x50   :  { %358 = vrot.lane.b32.xlu0 %v356_v26, %s4049_s13 }
  0x53   :  { %454 = vrot.lane.b32.xlu1 %v452_v27, %s4050_s14 }
  0x54   :  { %422 = vrot.lane.b32.xlu0 %v420_v28, %s4051_s15 }
  0x57   :  { %518 = vrot.lane.b32.xlu1 %v516_v29, %s6668_s16 }
  0x58   :  { %486 = vrot.lane.b32.xlu0 %v484_v30, %s6683_s1 }
  0xa9   :  { %v89_v31 = vpop.permute.xlu1 %88 }
  0xaa   :  { %v85_v32 = vpop.permute.xlu0 %84  ;;  %99 = vst.msk [vmem:[#allocation2 + $0x19] sm:$0xff] %vm96_vm2, %v89_v31 }
  0xab   :  { %97 = vst.msk [vmem:[#allocation2 + $0x1] sm:$0xff] %vm96_vm2, %v85_v32 }
  0xad   :  { %v91_v33 = vpop.permute.xlu1 %90 }
  0xae   :  { %v87_v34 = vpop.permute.xlu0 %86  ;;  %100 = vst.msk [vmem:[#allocation2 + $0x21] sm:$0xff] %vm96_vm2, %v91_v33 }
  0xaf   :  { %98 = vst.msk [vmem:[#allocation2 + $0x9] sm:$0xff] %vm96_vm2, %v87_v34 }
  0xb1   :  { %v135_v36 = vpop.permute.xlu1 %134  ;;  %v4217_v39 = vld [vmem:[#allocation2 + $0x18] sm:$0xff] }
  0xb2   :  { %v4212_v35 = vld [vmem:[#allocation2] sm:$0xff]  ;;  %v4214_v37 = vpop.permute.xlu0 %118  ;;  %v139_v42 = vmul.f32 %v135_v36, %v4217_v39 }
  0xb3   :  { %v137_v38 = vmul.f32 %v135_v36, %v4212_v35 }
  0xb5   :  { %145 = vrot.lane.b32.xlu0 %v137_v38, %s4054_s17  ;;  %v4224_v43 = vld [vmem:[#allocation2 + $0x20] sm:$0xff]  ;;  %v199_v49 = vpop.permute.xlu1 %198 }
  0xb6   :  { %v4220_v40 = vld [vmem:[#allocation2 + $0x8] sm:$0xff]  ;;  %v167_v44 = vpop.permute.xlu0 %166  ;;  %v140_v45 = vmul.f32 %v135_v36, %v4224_v43  ;;  %v201_v51 = vmul.f32 %v199_v49, %v4212_v35  ;;  %v203_v53 = vmul.f32 %v199_v49, %v4217_v39  ;;  %v204_v55 = vmul.f32 %v199_v49, %v4224_v43 }
  0xb7   :  { %v138_v41 = vmul.f32 %v135_v36, %v4220_v40  ;;  %v170_v46 = vmul.f32 %v167_v44, %v4220_v40  ;;  %v169_v47 = vmul.f32 %v167_v44, %v4212_v35  ;;  %v172_v48 = vmul.f32 %v167_v44, %v4224_v43 }
  0xb8   :  { %v171_v50 = vmul.f32 %v167_v44, %v4217_v39  ;;  %v202_v52 = vmul.f32 %v199_v49, %v4220_v40 }
  0xb9   :  { %147 = vrot.lane.b32.xlu1 %v138_v41, %s4054_s17  ;;  %149 = vrot.lane.b32.xlu0 %v139_v42, %s4054_s17  ;;  %v263_v59 = vpop.permute.xlu1 %262 }
  0xba   :  { %v231_v54 = vpop.permute.xlu0 %230  ;;  %v265_v61 = vmul.f32 %v263_v59, %v4212_v35  ;;  %v266_v62 = vmul.f32 %v263_v59, %v4220_v40  ;;  %v267_v63 = vmul.f32 %v263_v59, %v4217_v39  ;;  %v268_v1 = vmul.f32 %v263_v59, %v4224_v43 }
  0xbb   :  { %v234_v56 = vmul.f32 %v231_v54, %v4220_v40  ;;  %v233_v57 = vmul.f32 %v231_v54, %v4212_v35  ;;  %v236_v58 = vmul.f32 %v231_v54, %v4224_v43  ;;  %v235_v60 = vmul.f32 %v231_v54, %v4217_v39 }
  0xbc   :  { %v548_v54 = vrot.slane %v4186_v24, %v4180_v21 }
  0xbd   :  { %151 = vrot.lane.b32.xlu1 %v140_v45, %s4054_s17  ;;  %179 = vrot.lane.b32.xlu0 %v170_v46, %s4055_s18  ;;  %v327_v7 = vpop.permute.xlu1 %326 }
  0xbe   :  { %v295_v0 = vpop.permute.xlu0 %294  ;;  %v329_v9 = vmul.f32 %v327_v7, %v4212_v35  ;;  %v330_v10 = vmul.f32 %v327_v7, %v4220_v40  ;;  %v331_v11 = vmul.f32 %v327_v7, %v4217_v39  ;;  %v332_v15 = vmul.f32 %v327_v7, %v4224_v43 }
  0xbf   :  { %v298_v2 = vmul.f32 %v295_v0, %v4220_v40  ;;  %v297_v3 = vmul.f32 %v295_v0, %v4212_v35  ;;  %v300_v4 = vmul.f32 %v295_v0, %v4224_v43  ;;  %v299_v8 = vmul.f32 %v295_v0, %v4217_v39 }
  0xc1   :  { %177 = vrot.lane.b32.xlu1 %v169_v47, %s4055_s18  ;;  %183 = vrot.lane.b32.xlu0 %v172_v48, %s4055_s18  ;;  %v391_v23 = vpop.permute.xlu1 %390 }
  0xc2   :  { %v359_v14 = vpop.permute.xlu0 %358  ;;  %v393_v26 = vmul.f32 %v391_v23, %v4212_v35  ;;  %v394_v27 = vmul.f32 %v391_v23, %v4220_v40  ;;  %v395_v28 = vmul.f32 %v391_v23, %v4217_v39  ;;  %v396_v30 = vmul.f32 %v391_v23, %v4224_v43 }
  0xc3   :  { %v362_v18 = vmul.f32 %v359_v14, %v4220_v40  ;;  %v361_v19 = vmul.f32 %v359_v14, %v4212_v35  ;;  %v364_v22 = vmul.f32 %v359_v14, %v4224_v43  ;;  %v363_v25 = vmul.f32 %v359_v14, %v4217_v39 }
  0xc5   :  { %181 = vrot.lane.b32.xlu1 %v171_v50, %s4055_s18  ;;  %209 = vrot.lane.b32.xlu0 %v201_v51, %s4056_s19  ;;  %v455_v34 = vpop.permute.xlu1 %454 }
  0xc6   :  { %v423_v29 = vpop.permute.xlu0 %422  ;;  %v457_v38 = vmul.f32 %v455_v34, %v4212_v35  ;;  %v458_v41 = vmul.f32 %v455_v34, %v4220_v40  ;;  %v459_v42 = vmul.f32 %v455_v34, %v4217_v39  ;;  %v460_v45 = vmul.f32 %v455_v34, %v4224_v43 }
  0xc7   :  { %v426_v31 = vmul.f32 %v423_v29, %v4220_v40  ;;  %v425_v32 = vmul.f32 %v423_v29, %v4212_v35  ;;  %v428_v33 = vmul.f32 %v423_v29, %v4224_v43  ;;  %v427_v36 = vmul.f32 %v423_v29, %v4217_v39  ;;  %v4385_v29 = vld [vmem:[#allocation7 + $0x10] sm:$0xff] }
  0xc9   :  { %211 = vrot.lane.b32.xlu1 %v202_v52, %s4056_s19  ;;  %213 = vrot.lane.b32.xlu0 %v203_v53, %s4056_s19  ;;  %v519_v49 = vpop.permute.xlu1 %518 }
  0xca   :  { %v487_v44 = vpop.permute.xlu0 %486  ;;  %v521_v51 = vmul.f32 %v519_v49, %v4212_v35  ;;  %v522_v52 = vmul.f32 %v519_v49, %v4220_v40  ;;  %v523_v53 = vmul.f32 %v519_v49, %v4217_v39 }
  0xcb   :  { %v490_v46 = vmul.f32 %v487_v44, %v4220_v40  ;;  %v489_v47 = vmul.f32 %v487_v44, %v4212_v35  ;;  %v492_v48 = vmul.f32 %v487_v44, %v4224_v43  ;;  %v491_v50 = vmul.f32 %v487_v44, %v4217_v39 }
  0xcd   :  { %215 = vrot.lane.b32.xlu1 %v204_v55, %s4056_s19  ;;  %243 = vrot.lane.b32.xlu0 %v234_v56, %s4057_s20  ;;  %v524_v55 = vmul.f32 %v519_v49, %v4224_v43 }
  0xd1   :  { %241 = vrot.lane.b32.xlu1 %v233_v57, %s4057_s20  ;;  %247 = vrot.lane.b32.xlu0 %v236_v58, %s4057_s20 }
  0xd5   :  { %245 = vrot.lane.b32.xlu1 %v235_v60, %s4057_s20  ;;  %273 = vrot.lane.b32.xlu0 %v265_v61, %s4058_s22 }
  0xd9   :  { %275 = vrot.lane.b32.xlu1 %v266_v62, %s4058_s22  ;;  %277 = vrot.lane.b32.xlu0 %v267_v63, %s4058_s22 }
  0xdd   :  { %279 = vrot.lane.b32.xlu1 %v268_v1, %s4058_s22  ;;  %307 = vrot.lane.b32.xlu0 %v298_v2, %s4059_s23 }
  0xe1   :  { %305 = vrot.lane.b32.xlu1 %v297_v3, %s4059_s23  ;;  %311 = vrot.lane.b32.xlu0 %v300_v4, %s4059_s23 }
  0xe5   :  { %309 = vrot.lane.b32.xlu1 %v299_v8, %s4059_s23  ;;  %337 = vrot.lane.b32.xlu0 %v329_v9, %s4060_s24 }
  0xe9   :  { %339 = vrot.lane.b32.xlu1 %v330_v10, %s4060_s24  ;;  %341 = vrot.lane.b32.xlu0 %v331_v11, %s4060_s24 }
  0xed   :  { %343 = vrot.lane.b32.xlu1 %v332_v15, %s4060_s24  ;;  %371 = vrot.lane.b32.xlu0 %v362_v18, %s4061_s25 }
  0xf1   :  { %369 = vrot.lane.b32.xlu1 %v361_v19, %s4061_s25  ;;  %375 = vrot.lane.b32.xlu0 %v364_v22, %s4061_s25 }
  0xf5   :  { %373 = vrot.lane.b32.xlu1 %v363_v25, %s4061_s25  ;;  %401 = vrot.lane.b32.xlu0 %v393_v26, %s4062_s26 }
  0xf9   :  { %403 = vrot.lane.b32.xlu1 %v394_v27, %s4062_s26  ;;  %405 = vrot.lane.b32.xlu0 %v395_v28, %s4062_s26 }
  0xfd   :  { %407 = vrot.lane.b32.xlu1 %v396_v30, %s4062_s26  ;;  %435 = vrot.lane.b32.xlu0 %v426_v31, %s4063_s27 }
 0x101   :  { %433 = vrot.lane.b32.xlu1 %v425_v32, %s4063_s27  ;;  %439 = vrot.lane.b32.xlu0 %v428_v33, %s4063_s27  ;;  %v619_v32 = vrot.slane %v4385_v29, %v4154_v5  ;;  %v580_v33 = vrot.slane %v4385_v29, %v4156_v6 }
 0x105   :  { %437 = vrot.lane.b32.xlu1 %v427_v36, %s4063_s27  ;;  %465 = vrot.lane.b32.xlu0 %v457_v38, %s4064_s28 }
 0x109   :  { %467 = vrot.lane.b32.xlu1 %v458_v41, %s4064_s28  ;;  %469 = vrot.lane.b32.xlu0 %v459_v42, %s4064_s28 }
 0x10d   :  { %471 = vrot.lane.b32.xlu1 %v460_v45, %s4064_s28  ;;  %499 = vrot.lane.b32.xlu0 %v490_v46, %s6691_s0 }
 0x111   :  { %497 = vrot.lane.b32.xlu1 %v489_v47, %s6691_s0  ;;  %503 = vrot.lane.b32.xlu0 %v492_v48, %s6691_s0 }
 0x115   :  { %501 = vrot.lane.b32.xlu1 %v491_v50, %s6691_s0  ;;  %529 = vrot.lane.b32.xlu0 %v521_v51, %s6689_s21  ;;  %v4419_v50 = vld [vmem:[#allocation2 + $0x10] sm:$0x3] }
 0x119   :  { %531 = vrot.lane.b32.xlu1 %v522_v52, %s6689_s21  ;;  %533 = vrot.lane.b32.xlu0 %v523_v53, %s6689_s21  ;;  %v4421_v52 = vld [vmem:[#allocation2 + $0x28] sm:$0x3] }
 0x11d   :  { %535 = vrot.lane.b32.xlu1 %v524_v55, %s6689_s21  ;;  %550 = vrot.lane.b32.xlu0 %v548_v54, %s6665_s30  ;;  %s4068_s30 = smov 114  }
 0x127   :  { %v4329_v56 = vpop.permute.xlu0 %145 }
 0x12b   :  { %v4331_v57 = vpop.permute.xlu0 %149  ;;  %v4397_v34 = vpop.permute.xlu1 %147 }
 0x12f   :  { %v4333_v58 = vpop.permute.xlu0 %179  ;;  %v4399_v36 = vpop.permute.xlu1 %151 }
 0x133   :  { %v4335_v59 = vpop.permute.xlu0 %183  ;;  %v4401_v38 = vpop.permute.xlu1 %177 }
 0x137   :  { %v4337_v60 = vpop.permute.xlu0 %209  ;;  %v4403_v41 = vpop.permute.xlu1 %181 }
 0x13b   :  { %v4339_v61 = vpop.permute.xlu0 %213  ;;  %v4405_v42 = vpop.permute.xlu1 %211 }
 0x13f   :  { %v4341_v24 = vpop.permute.xlu0 %243  ;;  %v4407_v44 = vpop.permute.xlu1 %215 }
 0x143   :  { %v4343_v62 = vpop.permute.xlu0 %247  ;;  %v4409_v45 = vpop.permute.xlu1 %241 }
 0x147   :  { %v4345_v63 = vpop.permute.xlu0 %273  ;;  %v4413_v47 = vpop.permute.xlu1 %245 }
 0x14b   :  { %v4347_v0 = vpop.permute.xlu0 %277  ;;  %v4417_v49 = vpop.permute.xlu1 %275 }
 0x14f   :  { %v4349_v1 = vpop.permute.xlu0 %307 }
 0x153   :  { %v4351_v2 = vpop.permute.xlu0 %311 }
 0x157   :  { %v4353_v3 = vpop.permute.xlu0 %337 }
 0x15b   :  { %v4355_v4 = vpop.permute.xlu0 %341 }
 0x15f   :  { %v4357_v7 = vpop.permute.xlu0 %371 }
 0x163   :  { %v4359_v8 = vpop.permute.xlu0 %375 }
 0x167   :  { %v4361_v9 = vpop.permute.xlu0 %401 }
 0x168   :  { %6714 = vst [vmem:[#allocation22_spill] sm:$0xff] %v4361_v9 }
 0x16b   :  { %v4363_v10 = vpop.permute.xlu0 %405 }
 0x16c   :  { %6715 = vst [vmem:[#allocation23_spill] sm:$0xff] %v4363_v10 }
 0x16f   :  { %v4365_v11 = vpop.permute.xlu0 %435 }
 0x170   :  { %6716 = vst [vmem:[#allocation24_spill] sm:$0xff] %v4365_v11 }
 0x173   :  { %v4367_v14 = vpop.permute.xlu0 %439 }
 0x174   :  { %6717 = vst [vmem:[#allocation25_spill] sm:$0xff] %v4367_v14 }
 0x177   :  { %v4369_v15 = vpop.permute.xlu0 %465 }
 0x178   :  { %6718 = vst [vmem:[#allocation26_spill] sm:$0xff] %v4369_v15 }
 0x17b   :  { %v4371_v18 = vpop.permute.xlu0 %469 }
 0x17c   :  { %6719 = vst [vmem:[#allocation27_spill] sm:$0xff] %v4371_v18 }
 0x17f   :  { %v4373_v19 = vpop.permute.xlu0 %499 }
 0x180   :  { %6720 = vst [vmem:[#allocation28_spill] sm:$0xff] %v4373_v19 }
 0x183   :  { %v4375_v22 = vpop.permute.xlu0 %503 }
 0x184   :  { %6721 = vst [vmem:[#allocation29_spill] sm:$0xff] %v4375_v22 }
 0x187   :  { %v4377_v23 = vpop.permute.xlu0 %529 }
 0x188   :  { %6722 = vst [vmem:[#allocation30_spill] sm:$0xff] %v4377_v23 }
 0x18b   :  { %v4379_v25 = vpop.permute.xlu0 %533 }
 0x18c   :  { %6723 = vst [vmem:[#allocation31_spill] sm:$0xff] %v4379_v25 }
 0x18f   :  { %v551_v26 = vpop.permute.xlu0 %550 }
 0x190   :  { %v554_v27 = vmul.f32 %v551_v26, %v4220_v40  ;;  %v553_v28 = vmul.f32 %v551_v26, %v4212_v35  ;;  %v556_v30 = vmul.f32 %v551_v26, %v4224_v43  ;;  %v555_v31 = vmul.f32 %v551_v26, %v4217_v39 }
 0x192   :  { %563 = vrot.lane.b32.xlu0 %v554_v27, %s4068_s30  ;;  %561 = vrot.lane.b32.xlu1 %v553_v28, %s4068_s30 }
 0x196   :  { %567 = vrot.lane.b32.xlu0 %v556_v30, %s4068_s30  ;;  %565 = vrot.lane.b32.xlu1 %v555_v31, %s4068_s30 }
 0x19a   :  { %621 = vrot.lane.b32.xlu0 %v619_v32, %s4041_s3  ;;  %582 = vrot.lane.b32.xlu1 %v580_v33, %s4042_s29  ;;  %v4429_v33 = vpop.permute.xlu1 %279 }
 0x204   :  { %v4411_v46 = vpop.permute.xlu0 %563 }
 0x205   :  { %6724 = vst [vmem:[#allocation32_spill] sm:$0xff] %v4411_v46 }
 0x208   :  { %v4415_v48 = vpop.permute.xlu0 %567 }
 0x209   :  { %6725 = vst [vmem:[#allocation33_spill] sm:$0xff] %v4415_v48 }
 0x20c   :  { %v622_v51 = vpop.permute.xlu0 %621 }
 0x20d   :  { %v625_v53 = vmul.f32 %v622_v51, %v4220_v40  ;;  %v626_v54 = vmul.f32 %v622_v51, %v4419_v50  ;;  %v624_v55 = vmul.f32 %v622_v51, %v4212_v35  ;;  %v628_v26 = vmul.f32 %v622_v51, %v4224_v43 }
 0x20e   :  { %v629_v27 = vmul.f32 %v622_v51, %v4421_v52  ;;  %v627_v28 = vmul.f32 %v622_v51, %v4217_v39 }
 0x20f   :  { %v637_v30 = vrot.slane %v625_v53, 1  ;;  %v639_v31 = vrot.slane %v626_v54, 1  ;;  %v636_v32 = vrot.slane %v624_v55, 1  ;;  %v642_v46 = vrot.slane %v628_v26, 1  ;;  %v4438_v53 = vpop.permute.xlu1 %305 }
 0x210   :  { %v644_v25 = vrot.slane %v629_v27, 1  ;;  %v641_v22 = vrot.slane %v627_v28, 1  ;;  %v665_v54 = vrot.slane %v4385_v29, %v4164_v13 }
 0x211   :  { %v640_v48 = vsel %vm597_vm3, %v637_v30, %v639_v31  ;;  %v638_v23 = vsel %vm597_vm3, %v636_v32, %v637_v30 }
 0x212   :  { %648 = vrot.lane.b32.xlu0 %v640_v48, %s4054_s17  ;;  %646 = vrot.lane.b32.xlu1 %v638_v23, %s4054_s17  ;;  %v645_v19 = vsel %vm597_vm3, %v642_v46, %v644_v25  ;;  %v643_v51 = vsel %vm597_vm3, %v641_v22, %v642_v46 }
 0x213   :  { %v4444_v48 = vpop.permute.xlu1 %309 }
 0x216   :  { %652 = vrot.lane.b32.xlu0 %v645_v19, %s4054_s17  ;;  %650 = vrot.lane.b32.xlu1 %v643_v51, %s4054_s17 }
 0x217   :  { %v4446_v55 = vpop.permute.xlu1 %339 }
 0x21a   :  { %667 = vrot.lane.b32.xlu1 %v665_v54, %s4044_s8 }
 0x21b   :  { %v4448_v23 = vpop.permute.xlu1 %343 }
 0x21f   :  { %v4450_v25 = vpop.permute.xlu1 %369 }
 0x223   :  { %v4452_v19 = vpop.permute.xlu1 %373 }
 0x224   :  { %6726 = vst [vmem:[#allocation34_spill] sm:$0xff] %v4452_v19 }
 0x227   :  { %v4454_v22 = vpop.permute.xlu1 %403 }
 0x228   :  { %6727 = vst [vmem:[#allocation35_spill] sm:$0xff] %v4454_v22 }
 0x22b   :  { %v4456_v46 = vpop.permute.xlu1 %407 }
 0x22c   :  { %6728 = vst [vmem:[#allocation36_spill] sm:$0xff] %v4456_v46 }
 0x22f   :  { %v4458_v26 = vpop.permute.xlu1 %433 }
 0x230   :  { %6729 = vst [vmem:[#allocation37_spill] sm:$0xff] %v4458_v26 }
 0x233   :  { %v4460_v27 = vpop.permute.xlu1 %437 }
 0x234   :  { %6730 = vst [vmem:[#allocation38_spill] sm:$0xff] %v4460_v27 }
 0x237   :  { %v4462_v28 = vpop.permute.xlu1 %467 }
 0x238   :  { %6731 = vst [vmem:[#allocation39_spill] sm:$0xff] %v4462_v28 }
 0x23b   :  { %v4464_v30 = vpop.permute.xlu1 %471 }
 0x23c   :  { %6732 = vst [vmem:[#allocation40_spill] sm:$0xff] %v4464_v30 }
 0x23f   :  { %v4466_v31 = vpop.permute.xlu1 %497 }
 0x240   :  { %6733 = vst [vmem:[#allocation41_spill] sm:$0xff] %v4466_v31 }
 0x243   :  { %v4468_v32 = vpop.permute.xlu1 %501 }
 0x244   :  { %6734 = vst [vmem:[#allocation42_spill] sm:$0xff] %v4468_v32 }
 0x247   :  { %v4470_v51 = vpop.permute.xlu1 %531 }
 0x248   :  { %6735 = vst [vmem:[#allocation43_spill] sm:$0xff] %v4470_v51 }
 0x24b   :  { %v4472_v54 = vpop.permute.xlu1 %535 }
 0x24c   :  { %6736 = vst [vmem:[#allocation44_spill] sm:$0xff] %v4472_v54 }
 0x24f   :  { %v4474_v18 = vpop.permute.xlu1 %561 }
 0x250   :  { %6737 = vst [vmem:[#allocation45_spill] sm:$0xff] %v4474_v18 }
 0x253   :  { %v4476_v15 = vpop.permute.xlu1 %565 }
 0x254   :  { %6738 = vst [vmem:[#allocation46_spill] sm:$0xff] %v4476_v15 }
 0x257   :  { %v4478_v14 = vpop.permute.xlu1 %582 }
 0x258   :  { %6739 = vst [vmem:[#allocation47_spill] sm:$0xff] %v4478_v14 }
 0x284   :  { %v4480_v26 = vpop.permute.xlu1 %646 }
 0x285   :  { %6740 = vst [vmem:[#allocation48_spill] sm:$0xff] %v4480_v26 }
 0x288   :  { %v4482_v27 = vpop.permute.xlu1 %650 }
 0x289   :  { %6741 = vst [vmem:[#allocation49_spill] sm:$0xff] %v4482_v27 }
 0x28c   :  { %v668_v28 = vpop.permute.xlu1 %667 }
 0x28d   :  { %v671_v30 = vmul.f32 %v668_v28, %v4220_v40  ;;  %v672_v31 = vmul.f32 %v668_v28, %v4419_v50  ;;  %v670_v32 = vmul.f32 %v668_v28, %v4212_v35  ;;  %v674_v51 = vmul.f32 %v668_v28, %v4224_v43 }
 0x28e   :  { %v675_v54 = vmul.f32 %v668_v28, %v4421_v52  ;;  %v673_v18 = vmul.f32 %v668_v28, %v4217_v39  ;;  %v711_v28 = vrot.slane %v4385_v29, %v4162_v12 }
 0x28f   :  { %v683_v15 = vrot.slane %v671_v30, 1  ;;  %v685_v11 = vrot.slane %v672_v31, 1  ;;  %v682_v46 = vrot.slane %v670_v32, 1  ;;  %v688_v10 = vrot.slane %v674_v51, 1 }
 0x290   :  { %v690_v14 = vrot.slane %v675_v54, 1  ;;  %v687_v22 = vrot.slane %v673_v18, 1 }
 0x291   :  { %v686_v26 = vsel %vm597_vm3, %v683_v15, %v685_v11  ;;  %v684_v27 = vsel %vm597_vm3, %v682_v46, %v683_v15  ;;  %v4501_v11 = vpop.permute.xlu0 %648 }
 0x292   :  { %694 = vrot.lane.b32.xlu1 %v686_v26, %s4055_s18  ;;  %692 = vrot.lane.b32.xlu0 %v684_v27, %s4055_s18  ;;  %v691_v9 = vsel %vm597_vm3, %v688_v10, %v690_v14  ;;  %v689_v19 = vsel %vm597_vm3, %v687_v22, %v688_v10  ;;  %6742 = vst [vmem:[#allocation50_spill] sm:$0xff] %v4501_v11 }
 0x295   :  { %v4503_v15 = vpop.permute.xlu0 %652 }
 0x296   :  { %698 = vrot.lane.b32.xlu1 %v691_v9, %s4055_s18  ;;  %696 = vrot.lane.b32.xlu0 %v689_v19, %s4055_s18  ;;  %6743 = vst [vmem:[#allocation51_spill] sm:$0xff] %v4503_v15 }
 0x29a   :  { %713 = vrot.lane.b32.xlu0 %v711_v28, %s4043_s7 }
 0x304   :  { %v4505_v18 = vpop.permute.xlu0 %692 }
 0x305   :  { %6744 = vst [vmem:[#allocation52_spill] sm:$0xff] %v4505_v18 }
 0x308   :  { %v4507_v46 = vpop.permute.xlu0 %696 }
 0x309   :  { %6745 = vst [vmem:[#allocation53_spill] sm:$0xff] %v4507_v46 }
 0x30c   :  { %v714_v14 = vpop.permute.xlu0 %713 }
 0x30d   :  { %v717_v10 = vmul.f32 %v714_v14, %v4220_v40  ;;  %v718_v9 = vmul.f32 %v714_v14, %v4419_v50  ;;  %v716_v19 = vmul.f32 %v714_v14, %v4212_v35  ;;  %v720_v22 = vmul.f32 %v714_v14, %v4224_v43 }
 0x30e   :  { %v721_v26 = vmul.f32 %v714_v14, %v4421_v52  ;;  %v719_v27 = vmul.f32 %v714_v14, %v4217_v39  ;;  %v757_v14 = vrot.slane %v4385_v29, %v4172_v17 }
 0x30f   :  { %v729_v30 = vrot.slane %v717_v10, 1  ;;  %v731_v31 = vrot.slane %v718_v9, 1  ;;  %v728_v32 = vrot.slane %v716_v19, 1  ;;  %v734_v51 = vrot.slane %v720_v22, 1  ;;  %v4526_v10 = vpop.permute.xlu1 %694 }
 0x310   :  { %v736_v46 = vrot.slane %v721_v26, 1  ;;  %v733_v18 = vrot.slane %v719_v27, 1  ;;  %6746 = vst [vmem:[#allocation54_spill] sm:$0xff] %v4526_v10 }
 0x311   :  { %v732_v54 = vsel %vm597_vm3, %v729_v30, %v731_v31  ;;  %v730_v28 = vsel %vm597_vm3, %v728_v32, %v729_v30 }
 0x312   :  { %740 = vrot.lane.b32.xlu0 %v732_v54, %s4056_s19  ;;  %738 = vrot.lane.b32.xlu1 %v730_v28, %s4056_s19  ;;  %v737_v15 = vsel %vm597_vm3, %v734_v51, %v736_v46  ;;  %v735_v11 = vsel %vm597_vm3, %v733_v18, %v734_v51 }
 0x313   :  { %v4528_v9 = vpop.permute.xlu1 %698 }
 0x314   :  { %6747 = vst [vmem:[#allocation55_spill] sm:$0xff] %v4528_v9 }
 0x316   :  { %744 = vrot.lane.b32.xlu0 %v737_v15, %s4056_s19  ;;  %742 = vrot.lane.b32.xlu1 %v735_v11, %s4056_s19 }
 0x31a   :  { %759 = vrot.lane.b32.xlu1 %v757_v14, %s4046_s10 }
 0x384   :  { %v4530_v19 = vpop.permute.xlu1 %738 }
 0x385   :  { %6748 = vst [vmem:[#allocation56_spill] sm:$0xff] %v4530_v19 }
 0x388   :  { %v4532_v22 = vpop.permute.xlu1 %742 }
 0x389   :  { %6749 = vst [vmem:[#allocation57_spill] sm:$0xff] %v4532_v22 }
 0x38c   :  { %v760_v46 = vpop.permute.xlu1 %759 }
 0x38d   :  { %v763_v18 = vmul.f32 %v760_v46, %v4220_v40  ;;  %v764_v15 = vmul.f32 %v760_v46, %v4419_v50  ;;  %v762_v11 = vmul.f32 %v760_v46, %v4212_v35  ;;  %v766_v26 = vmul.f32 %v760_v46, %v4224_v43 }
 0x38e   :  { %v767_v27 = vmul.f32 %v760_v46, %v4421_v52  ;;  %v765_v30 = vmul.f32 %v760_v46, %v4217_v39  ;;  %v803_v46 = vrot.slane %v4385_v29, %v4170_v16 }
 0x38f   :  { %v775_v31 = vrot.slane %v763_v18, 1  ;;  %v777_v32 = vrot.slane %v764_v15, 1  ;;  %v774_v51 = vrot.slane %v762_v11, 1  ;;  %v780_v54 = vrot.slane %v766_v26, 1  ;;  %v4551_v18 = vpop.permute.xlu0 %740 }
 0x390   :  { %v782_v22 = vrot.slane %v767_v27, 1  ;;  %v779_v19 = vrot.slane %v765_v30, 1  ;;  %6750 = vst [vmem:[#allocation58_spill] sm:$0xff] %v4551_v18 }
 0x391   :  { %v778_v28 = vsel %vm597_vm3, %v775_v31, %v777_v32  ;;  %v776_v14 = vsel %vm597_vm3, %v774_v51, %v775_v31 }
 0x392   :  { %786 = vrot.lane.b32.xlu1 %v778_v28, %s4057_s20  ;;  %784 = vrot.lane.b32.xlu0 %v776_v14, %s4057_s20  ;;  %v783_v9 = vsel %vm597_vm3, %v780_v54, %v782_v22  ;;  %v781_v10 = vsel %vm597_vm3, %v779_v19, %v780_v54 }
 0x393   :  { %v4553_v15 = vpop.permute.xlu0 %744 }
 0x394   :  { %6751 = vst [vmem:[#allocation59_spill] sm:$0xff] %v4553_v15 }
 0x396   :  { %790 = vrot.lane.b32.xlu1 %v783_v9, %s4057_s20  ;;  %788 = vrot.lane.b32.xlu0 %v781_v10, %s4057_s20 }
 0x39a   :  { %805 = vrot.lane.b32.xlu0 %v803_v46, %s4045_s9 }
 0x404   :  { %v4555_v11 = vpop.permute.xlu0 %784 }
 0x405   :  { %6752 = vst [vmem:[#allocation60_spill] sm:$0xff] %v4555_v11 }
 0x408   :  { %v4557_v26 = vpop.permute.xlu0 %788 }
 0x409   :  { %6753 = vst [vmem:[#allocation61_spill] sm:$0xff] %v4557_v26 }
 0x40c   :  { %v806_v22 = vpop.permute.xlu0 %805 }
 0x40d   :  { %v809_v19 = vmul.f32 %v806_v22, %v4220_v40  ;;  %v810_v9 = vmul.f32 %v806_v22, %v4419_v50  ;;  %v808_v10 = vmul.f32 %v806_v22, %v4212_v35  ;;  %v812_v27 = vmul.f32 %v806_v22, %v4224_v43 }
 0x40e   :  { %v813_v30 = vmul.f32 %v806_v22, %v4421_v52  ;;  %v811_v31 = vmul.f32 %v806_v22, %v4217_v39  ;;  %v849_v22 = vrot.slane %v4385_v29, %v4180_v21 }
 0x40f   :  { %v821_v32 = vrot.slane %v809_v19, 1  ;;  %v823_v51 = vrot.slane %v810_v9, 1  ;;  %v820_v54 = vrot.slane %v808_v10, 1  ;;  %v826_v28 = vrot.slane %v812_v27, 1  ;;  %v4576_v19 = vpop.permute.xlu1 %786 }
 0x410   :  { %v828_v26 = vrot.slane %v813_v30, 1  ;;  %v825_v11 = vrot.slane %v811_v31, 1  ;;  %6754 = vst [vmem:[#allocation62_spill] sm:$0xff] %v4576_v19 }
 0x411   :  { %v824_v14 = vsel %vm597_vm3, %v821_v32, %v823_v51  ;;  %v822_v46 = vsel %vm597_vm3, %v820_v54, %v821_v32 }
 0x412   :  { %832 = vrot.lane.b32.xlu0 %v824_v14, %s4058_s22  ;;  %830 = vrot.lane.b32.xlu1 %v822_v46, %s4058_s22  ;;  %v829_v15 = vsel %vm597_vm3, %v826_v28, %v828_v26  ;;  %v827_v18 = vsel %vm597_vm3, %v825_v11, %v826_v28 }
 0x413   :  { %v4578_v9 = vpop.permute.xlu1 %790 }
 0x414   :  { %6755 = vst [vmem:[#allocation63_spill] sm:$0xff] %v4578_v9 }
 0x416   :  { %836 = vrot.lane.b32.xlu0 %v829_v15, %s4058_s22  ;;  %834 = vrot.lane.b32.xlu1 %v827_v18, %s4058_s22 }
 0x41a   :  { %851 = vrot.lane.b32.xlu1 %v849_v22, %s4047_s11 }
 0x484   :  { %v4580_v10 = vpop.permute.xlu1 %830 }
 0x485   :  { %6756 = vst [vmem:[#allocation64_spill] sm:$0xff] %v4580_v10 }
 0x488   :  { %v4582_v27 = vpop.permute.xlu1 %834 }
 0x489   :  { %6757 = vst [vmem:[#allocation65_spill] sm:$0xff] %v4582_v27 }
 0x48c   :  { %v852_v26 = vpop.permute.xlu1 %851 }
 0x48d   :  { %v855_v11 = vmul.f32 %v852_v26, %v4220_v40  ;;  %v856_v15 = vmul.f32 %v852_v26, %v4419_v50  ;;  %v854_v18 = vmul.f32 %v852_v26, %v4212_v35  ;;  %v858_v30 = vmul.f32 %v852_v26, %v4224_v43 }
 0x48e   :  { %v859_v31 = vmul.f32 %v852_v26, %v4421_v52  ;;  %v857_v32 = vmul.f32 %v852_v26, %v4217_v39  ;;  %v895_v26 = vrot.slane %v4385_v29, %v4178_v20 }
 0x48f   :  { %v867_v51 = vrot.slane %v855_v11, 1  ;;  %v869_v54 = vrot.slane %v856_v15, 1  ;;  %v866_v28 = vrot.slane %v854_v18, 1  ;;  %v872_v14 = vrot.slane %v858_v30, 1  ;;  %v4601_v11 = vpop.permute.xlu0 %832 }
 0x490   :  { %v874_v27 = vrot.slane %v859_v31, 1  ;;  %v871_v10 = vrot.slane %v857_v32, 1  ;;  %6758 = vst [vmem:[#allocation66_spill] sm:$0xff] %v4601_v11 }
 0x491   :  { %v870_v46 = vsel %vm597_vm3, %v867_v51, %v869_v54  ;;  %v868_v22 = vsel %vm597_vm3, %v866_v28, %v867_v51 }
 0x492   :  { %878 = vrot.lane.b32.xlu1 %v870_v46, %s4059_s23  ;;  %876 = vrot.lane.b32.xlu0 %v868_v22, %s4059_s23  ;;  %v875_v9 = vsel %vm597_vm3, %v872_v14, %v874_v27  ;;  %v873_v19 = vsel %vm597_vm3, %v871_v10, %v872_v14 }
 0x493   :  { %v4603_v15 = vpop.permute.xlu0 %836 }
 0x494   :  { %6759 = vst [vmem:[#allocation67_spill] sm:$0xff] %v4603_v15 }
 0x496   :  { %882 = vrot.lane.b32.xlu1 %v875_v9, %s4059_s23  ;;  %880 = vrot.lane.b32.xlu0 %v873_v19, %s4059_s23 }
 0x49a   :  { %897 = vrot.lane.b32.xlu0 %v895_v26, %s4038_s6 }
 0x504   :  { %v4605_v18 = vpop.permute.xlu0 %876 }
 0x505   :  { %6760 = vst [vmem:[#allocation68_spill] sm:$0xff] %v4605_v18  ;;  %v4619_v18 = vld [vmem:[#allocation7 + $0x18] sm:$0x7f] }
 0x508   :  { %v4607_v30 = vpop.permute.xlu0 %880 }
 0x509   :  { %6761 = vst [vmem:[#allocation69_spill] sm:$0xff] %v4607_v30 }
 0x50c   :  { %v898_v27 = vpop.permute.xlu0 %897 }
 0x50d   :  { %v901_v10 = vmul.f32 %v898_v27, %v4220_v40  ;;  %v902_v9 = vmul.f32 %v898_v27, %v4419_v50  ;;  %v900_v19 = vmul.f32 %v898_v27, %v4212_v35  ;;  %v904_v31 = vmul.f32 %v898_v27, %v4224_v43 }
 0x50e   :  { %v905_v29 = vmul.f32 %v898_v27, %v4421_v52  ;;  %v903_v32 = vmul.f32 %v898_v27, %v4217_v39 }
 0x50f   :  { %v913_v51 = vrot.slane %v901_v10, 1  ;;  %v915_v54 = vrot.slane %v902_v9, 1  ;;  %v912_v28 = vrot.slane %v900_v19, 1  ;;  %v918_v14 = vrot.slane %v904_v31, 1  ;;  %v4628_v9 = vpop.permute.xlu1 %878 }
 0x510   :  { %v920_v26 = vrot.slane %v905_v29, 1  ;;  %v917_v30 = vrot.slane %v903_v32, 1  ;;  %v941_v10 = vrot.slane %v4619_v18, %v4156_v6  ;;  %6762 = vst [vmem:[#allocation70_spill] sm:$0xff] %v4628_v9 }
 0x511   :  { %v916_v46 = vsel %vm597_vm3, %v913_v51, %v915_v54  ;;  %v914_v22 = vsel %vm597_vm3, %v912_v28, %v913_v51 }
 0x512   :  { %924 = vrot.lane.b32.xlu0 %v916_v46, %s4060_s24  ;;  %922 = vrot.lane.b32.xlu1 %v914_v22, %s4060_s24  ;;  %v921_v15 = vsel %vm597_vm3, %v918_v14, %v920_v26  ;;  %v919_v27 = vsel %vm597_vm3, %v917_v30, %v918_v14 }
 0x513   :  { %v4630_v19 = vpop.permute.xlu1 %882 }
 0x514   :  { %6763 = vst [vmem:[#allocation71_spill] sm:$0xff] %v4630_v19 }
 0x516   :  { %928 = vrot.lane.b32.xlu0 %v921_v15, %s4060_s24  ;;  %926 = vrot.lane.b32.xlu1 %v919_v27, %s4060_s24 }
 0x51a   :  { %943 = vrot.lane.b32.xlu1 %v941_v10, %s4049_s13 }
 0x584   :  { %v4632_v31 = vpop.permute.xlu1 %922 }
 0x585   :  { %6764 = vst [vmem:[#allocation72_spill] sm:$0xff] %v4632_v31 }
 0x588   :  { %v4634_v29 = vpop.permute.xlu1 %926 }
 0x589   :  { %6765 = vst [vmem:[#allocation73_spill] sm:$0xff] %v4634_v29 }
 0x58c   :  { %v944_v32 = vpop.permute.xlu1 %943 }
 0x58d   :  { %v947_v30 = vmul.f32 %v944_v32, %v4220_v40  ;;  %v948_v15 = vmul.f32 %v944_v32, %v4419_v50  ;;  %v946_v51 = vmul.f32 %v944_v32, %v4212_v35  ;;  %v950_v54 = vmul.f32 %v944_v32, %v4224_v43 }
 0x58e   :  { %v951_v28 = vmul.f32 %v944_v32, %v4421_v52  ;;  %v949_v14 = vmul.f32 %v944_v32, %v4217_v39  ;;  %v987_v32 = vrot.slane %v4619_v18, %v4154_v5 }
 0x58f   :  { %v959_v46 = vrot.slane %v947_v30, 1  ;;  %v961_v22 = vrot.slane %v948_v15, 1  ;;  %v958_v26 = vrot.slane %v946_v51, 1  ;;  %v964_v27 = vrot.slane %v950_v54, 1  ;;  %v4653_v30 = vpop.permute.xlu0 %924 }
 0x590   :  { %v966_v31 = vrot.slane %v951_v28, 1  ;;  %v963_v19 = vrot.slane %v949_v14, 1  ;;  %6766 = vst [vmem:[#allocation74_spill] sm:$0xff] %v4653_v30 }
 0x591   :  { %v962_v10 = vsel %vm597_vm3, %v959_v46, %v961_v22  ;;  %v960_v29 = vsel %vm597_vm3, %v958_v26, %v959_v46 }
 0x592   :  { %970 = vrot.lane.b32.xlu1 %v962_v10, %s4061_s25  ;;  %968 = vrot.lane.b32.xlu0 %v960_v29, %s4061_s25  ;;  %v967_v9 = vsel %vm597_vm3, %v964_v27, %v966_v31  ;;  %v965_v11 = vsel %vm597_vm3, %v963_v19, %v964_v27 }
 0x593   :  { %v4655_v15 = vpop.permute.xlu0 %928 }
 0x594   :  { %6767 = vst [vmem:[#allocation75_spill] sm:$0xff] %v4655_v15 }
 0x596   :  { %974 = vrot.lane.b32.xlu1 %v967_v9, %s4061_s25  ;;  %972 = vrot.lane.b32.xlu0 %v965_v11, %s4061_s25 }
 0x59a   :  { %989 = vrot.lane.b32.xlu0 %v987_v32, %s4048_s12 }
 0x604   :  { %v4657_v51 = vpop.permute.xlu0 %968 }
 0x605   :  { %6768 = vst [vmem:[#allocation76_spill] sm:$0xff] %v4657_v51 }
 0x608   :  { %v4659_v29 = vpop.permute.xlu0 %972 }
 0x609   :  { %6769 = vst [vmem:[#allocation77_spill] sm:$0xff] %v4659_v29 }
 0x60c   :  { %v990_v31 = vpop.permute.xlu0 %989 }
 0x60d   :  { %v993_v19 = vmul.f32 %v990_v31, %v4220_v40  ;;  %v994_v9 = vmul.f32 %v990_v31, %v4419_v50  ;;  %v992_v11 = vmul.f32 %v990_v31, %v4212_v35  ;;  %v996_v54 = vmul.f32 %v990_v31, %v4224_v43 }
 0x60e   :  { %v997_v28 = vmul.f32 %v990_v31, %v4421_v52  ;;  %v995_v14 = vmul.f32 %v990_v31, %v4217_v39  ;;  %v1033_v31 = vrot.slane %v4619_v18, %v4164_v13 }
 0x60f   :  { %v1005_v46 = vrot.slane %v993_v19, 1  ;;  %v1007_v22 = vrot.slane %v994_v9, 1  ;;  %v1004_v26 = vrot.slane %v992_v11, 1  ;;  %v1010_v27 = vrot.slane %v996_v54, 1  ;;  %v4678_v19 = vpop.permute.xlu1 %970 }
 0x610   :  { %v1012_v29 = vrot.slane %v997_v28, 1  ;;  %v1009_v51 = vrot.slane %v995_v14, 1  ;;  %6770 = vst [vmem:[#allocation78_spill] sm:$0xff] %v4678_v19 }
 0x611   :  { %v1008_v10 = vsel %vm597_vm3, %v1005_v46, %v1007_v22  ;;  %v1006_v32 = vsel %vm597_vm3, %v1004_v26, %v1005_v46 }
 0x612   :  { %1016 = vrot.lane.b32.xlu0 %v1008_v10, %s4062_s26  ;;  %1014 = vrot.lane.b32.xlu1 %v1006_v32, %s4062_s26  ;;  %v1013_v15 = vsel %vm597_vm3, %v1010_v27, %v1012_v29  ;;  %v1011_v30 = vsel %vm597_vm3, %v1009_v51, %v1010_v27 }
 0x613   :  { %v4680_v9 = vpop.permute.xlu1 %974 }
 0x614   :  { %6771 = vst [vmem:[#allocation79_spill] sm:$0xff] %v4680_v9 }
 0x616   :  { %1020 = vrot.lane.b32.xlu0 %v1013_v15, %s4062_s26  ;;  %1018 = vrot.lane.b32.xlu1 %v1011_v30, %s4062_s26 }
 0x61a   :  { %1035 = vrot.lane.b32.xlu1 %v1033_v31, %s4051_s15 }
 0x684   :  { %v4682_v11 = vpop.permute.xlu1 %1014 }
 0x685   :  { %6772 = vst [vmem:[#allocation80_spill] sm:$0xff] %v4682_v11 }
 0x688   :  { %v4684_v54 = vpop.permute.xlu1 %1018 }
 0x689   :  { %6773 = vst [vmem:[#allocation81_spill] sm:$0xff] %v4684_v54 }
 0x68c   :  { %v1036_v29 = vpop.permute.xlu1 %1035 }
 0x68d   :  { %v1039_v51 = vmul.f32 %v1036_v29, %v4220_v40  ;;  %v1040_v15 = vmul.f32 %v1036_v29, %v4419_v50  ;;  %v1038_v30 = vmul.f32 %v1036_v29, %v4212_v35  ;;  %v1042_v28 = vmul.f32 %v1036_v29, %v4224_v43 }
 0x68e   :  { %v1043_v14 = vmul.f32 %v1036_v29, %v4421_v52  ;;  %v1041_v46 = vmul.f32 %v1036_v29, %v4217_v39  ;;  %v1079_v29 = vrot.slane %v4619_v18, %v4162_v12 }
 0x68f   :  { %v1051_v22 = vrot.slane %v1039_v51, 1  ;;  %v1053_v26 = vrot.slane %v1040_v15, 1  ;;  %v1050_v27 = vrot.slane %v1038_v30, 1  ;;  %v1056_v10 = vrot.slane %v1042_v28, 1  ;;  %v4703_v51 = vpop.permute.xlu0 %1016 }
 0x690   :  { %v1058_v54 = vrot.slane %v1043_v14, 1  ;;  %v1055_v11 = vrot.slane %v1041_v46, 1  ;;  %6774 = vst [vmem:[#allocation82_spill] sm:$0xff] %v4703_v51 }
 0x691   :  { %v1054_v32 = vsel %vm597_vm3, %v1051_v22, %v1053_v26  ;;  %v1052_v31 = vsel %vm597_vm3, %v1050_v27, %v1051_v22 }
 0x692   :  { %1062 = vrot.lane.b32.xlu1 %v1054_v32, %s4063_s27  ;;  %1060 = vrot.lane.b32.xlu0 %v1052_v31, %s4063_s27  ;;  %v1059_v9 = vsel %vm597_vm3, %v1056_v10, %v1058_v54  ;;  %v1057_v19 = vsel %vm597_vm3, %v1055_v11, %v1056_v10 }
 0x693   :  { %v4705_v15 = vpop.permute.xlu0 %1020 }
 0x694   :  { %6775 = vst [vmem:[#allocation83_spill] sm:$0xff] %v4705_v15 }
 0x696   :  { %1066 = vrot.lane.b32.xlu1 %v1059_v9, %s4063_s27  ;;  %1064 = vrot.lane.b32.xlu0 %v1057_v19, %s4063_s27 }
 0x69a   :  { %1081 = vrot.lane.b32.xlu0 %v1079_v29, %s4050_s14 }
 0x704   :  { %v4707_v30 = vpop.permute.xlu0 %1060 }
 0x705   :  { %6776 = vst [vmem:[#allocation84_spill] sm:$0xff] %v4707_v30 }
 0x708   :  { %v4709_v28 = vpop.permute.xlu0 %1064 }
 0x709   :  { %6777 = vst [vmem:[#allocation85_spill] sm:$0xff] %v4709_v28 }
 0x70c   :  { %v1082_v54 = vpop.permute.xlu0 %1081 }
 0x70d   :  { %v1085_v11 = vmul.f32 %v1082_v54, %v4220_v40  ;;  %v1086_v9 = vmul.f32 %v1082_v54, %v4419_v50  ;;  %v1084_v19 = vmul.f32 %v1082_v54, %v4212_v35  ;;  %v1088_v14 = vmul.f32 %v1082_v54, %v4224_v43 }
 0x70e   :  { %v1089_v46 = vmul.f32 %v1082_v54, %v4421_v52  ;;  %v1087_v22 = vmul.f32 %v1082_v54, %v4217_v39  ;;  %v1125_v54 = vrot.slane %v4619_v18, %v4172_v17 }
 0x70f   :  { %v1097_v26 = vrot.slane %v1085_v11, 1  ;;  %v1099_v27 = vrot.slane %v1086_v9, 1  ;;  %v1096_v10 = vrot.slane %v1084_v19, 1  ;;  %v1102_v32 = vrot.slane %v1088_v14, 1  ;;  %v4728_v11 = vpop.permute.xlu1 %1062 }
 0x710   :  { %v1104_v28 = vrot.slane %v1089_v46, 1  ;;  %v1101_v30 = vrot.slane %v1087_v22, 1  ;;  %6778 = vst [vmem:[#allocation86_spill] sm:$0xff] %v4728_v11  ;;  %v4738_v22 = vld [vmem:[#allocation2] sm:$0xff] }
 0x711   :  { %v1100_v31 = vsel %vm597_vm3, %v1097_v26, %v1099_v27  ;;  %v1098_v29 = vsel %vm597_vm3, %v1096_v10, %v1097_v26 }
 0x712   :  { %1108 = vrot.lane.b32.xlu0 %v1100_v31, %s4064_s28  ;;  %1106 = vrot.lane.b32.xlu1 %v1098_v29, %s4064_s28  ;;  %v1105_v35 = vsel %vm597_vm3, %v1102_v32, %v1104_v28  ;;  %v1103_v15 = vsel %vm597_vm3, %v1101_v30, %v1102_v32 }
 0x713   :  { %v4730_v9 = vpop.permute.xlu1 %1066 }
 0x714   :  { %6779 = vst [vmem:[#allocation87_spill] sm:$0xff] %v4730_v9 }
 0x716   :  { %1112 = vrot.lane.b32.xlu0 %v1105_v35, %s4064_s28  ;;  %1110 = vrot.lane.b32.xlu1 %v1103_v15, %s4064_s28 }
 0x71a   :  { %1127 = vrot.lane.b32.xlu1 %v1125_v54, %s6683_s1 }
 0x784   :  { %v4732_v19 = vpop.permute.xlu1 %1106 }
 0x785   :  { %6780 = vst [vmem:[#allocation88_spill] sm:$0xff] %v4732_v19 }
 0x788   :  { %v4734_v14 = vpop.permute.xlu1 %1110 }
 0x789   :  { %6781 = vst [vmem:[#allocation89_spill] sm:$0xff] %v4734_v14 }
 0x78c   :  { %v1128_v28 = vpop.permute.xlu1 %1127 }
 0x78d   :  { %v1131_v30 = vmul.f32 %v1128_v28, %v4220_v40  ;;  %v1132_v46 = vmul.f32 %v1128_v28, %v4419_v50  ;;  %v1130_v15 = vmul.f32 %v4738_v22, %v1128_v28  ;;  %v1134_v26 = vmul.f32 %v1128_v28, %v4224_v43 }
 0x78e   :  { %v1135_v27 = vmul.f32 %v1128_v28, %v4421_v52  ;;  %v1133_v10 = vmul.f32 %v1128_v28, %v4217_v39  ;;  %v1171_v39 = vrot.slane %v4619_v18, %v4170_v16  ;;  %v4755_v28 = vpop.permute.xlu0 %1108 }
 0x78f   :  { %v1143_v32 = vrot.slane %v1131_v30, 1  ;;  %v1145_v31 = vrot.slane %v1132_v46, 1  ;;  %v1142_v29 = vrot.slane %v1130_v15, 1  ;;  %v1148_v35 = vrot.slane %v1134_v26, 1  ;;  %6782 = vst [vmem:[#allocation90_spill] sm:$0xff] %v4755_v28  ;;  %v4763_v26 = vld [vmem:[#allocation2 + $0x8] sm:$0xff] }
 0x790   :  { %v1150_v14 = vrot.slane %v1135_v27, 1  ;;  %v1147_v19 = vrot.slane %v1133_v10, 1  ;;  %v4768_v10 = vld [vmem:[#allocation2 + $0x20] sm:$0xff] }
 0x791   :  { %v1146_v54 = vsel %vm597_vm3, %v1143_v32, %v1145_v31  ;;  %v1144_v40 = vsel %vm597_vm3, %v1142_v29, %v1143_v32  ;;  %v4772_v29 = vld [vmem:[#allocation2 + $0x18] sm:$0xff] }
 0x792   :  { %1154 = vrot.lane.b32.xlu1 %v1146_v54, %s6691_s0  ;;  %1152 = vrot.lane.b32.xlu0 %v1144_v40, %s6691_s0  ;;  %v1151_v43 = vsel %vm597_vm3, %v1148_v35, %v1150_v14  ;;  %v1149_v9 = vsel %vm597_vm3, %v1147_v19, %v1148_v35  ;;  %v4757_v30 = vpop.permute.xlu0 %1112 }
 0x793   :  { %6783 = vst [vmem:[#allocation91_spill] sm:$0xff] %v4757_v30 }
 0x796   :  { %1158 = vrot.lane.b32.xlu1 %v1151_v43, %s6691_s0  ;;  %1156 = vrot.lane.b32.xlu0 %v1149_v9, %s6691_s0 }
 0x79a   :  { %1173 = vrot.lane.b32.xlu0 %v1171_v39, %s6668_s16  ;;  %s6786_s16 = smov 15  }
 0x804   :  { %v4759_v46 = vpop.permute.xlu0 %1152 }
 0x805   :  { %6784 = vst [vmem:[#allocation92_spill] sm:$0xff] %v4759_v46 }
 0x808   :  { %v4761_v15 = vpop.permute.xlu0 %1156 }
 0x809   :  { %6785 = vst [vmem:[#allocation93_spill] sm:$0xff] %v4761_v15 }
 0x80c   :  { %v1174_v14 = vpop.permute.xlu0 %1173 }
 0x80d   :  { %v1177_v19 = vmul.f32 %v4763_v26, %v1174_v14  ;;  %v1178_v9 = vmul.f32 %v1174_v14, %v4419_v50  ;;  %v1176_v27 = vmul.f32 %v4738_v22, %v1174_v14  ;;  %v1180_v32 = vmul.f32 %v4768_v10, %v1174_v14 }
 0x80e   :  { %v1181_v31 = vmul.f32 %v1174_v14, %v4421_v52  ;;  %v1179_v35 = vmul.f32 %v4772_v29, %v1174_v14  ;;  %v1217_v14 = vrot.slane %v4619_v18, %v4180_v21 }
 0x80f   :  { %v1189_v54 = vrot.slane %v1177_v19, 1  ;;  %v1191_v40 = vrot.slane %v1178_v9, 1  ;;  %v1188_v43 = vrot.slane %v1176_v27, 1  ;;  %v1194_v39 = vrot.slane %v1180_v32, 1  ;;  %v4786_v19 = vpop.permute.xlu1 %1154 }
 0x810   :  { %v1196_v30 = vrot.slane %v1181_v31, 1  ;;  %v1193_v28 = vrot.slane %v1179_v35, 1  ;;  %6787 = vst [vmem:[#allocation94_spill] sm:$0xff] %v4786_v19 }
 0x811   :  { %v1192_v15 = vsel %vm597_vm3, %v1189_v54, %v1191_v40  ;;  %v1190_v46 = vsel %vm597_vm3, %v1188_v43, %v1189_v54 }
 0x812   :  { %1200 = vrot.lane.b32.xlu0 %v1192_v15, %s6689_s21  ;;  %1198 = vrot.lane.b32.xlu1 %v1190_v46, %s6689_s21  ;;  %v1197_v11 = vsel %vm597_vm3, %v1194_v39, %v1196_v30  ;;  %v1195_v51 = vsel %vm597_vm3, %v1193_v28, %v1194_v39 }
 0x813   :  { %v4788_v9 = vpop.permute.xlu1 %1158 }
 0x814   :  { %6788 = vst [vmem:[#allocation95_spill] sm:$0xff] %v4788_v9 }
 0x816   :  { %1204 = vrot.lane.b32.xlu0 %v1197_v11, %s6689_s21  ;;  %1202 = vrot.lane.b32.xlu1 %v1195_v51, %s6689_s21 }
 0x81a   :  { %1219 = vrot.lane.b32.xlu1 %v1217_v14, %s6786_s16 }
 0x884   :  { %v4790_v15 = vpop.permute.xlu1 %1198 }
 0x885   :  { %6789 = vst [vmem:[#allocation96_spill] sm:$0xff] %v4790_v15  ;;  %v4804_v15 = vld [vmem:[#allocation7 + $0x20] sm:$0xff] }
 0x888   :  { %v4792_v46 = vpop.permute.xlu1 %1202 }
 0x889   :  { %6790 = vst [vmem:[#allocation97_spill] sm:$0xff] %v4792_v46 }
 0x88c   :  { %v1220_v30 = vpop.permute.xlu1 %1219 }
 0x88d   :  { %v1223_v28 = vmul.f32 %v4763_v26, %v1220_v30  ;;  %v1224_v11 = vmul.f32 %v1220_v30, %v4419_v50  ;;  %v1222_v51 = vmul.f32 %v4738_v22, %v1220_v30  ;;  %v1226_v27 = vmul.f32 %v4768_v10, %v1220_v30 }
 0x88e   :  { %v1227_v18 = vmul.f32 %v1220_v30, %v4421_v52  ;;  %v1225_v32 = vmul.f32 %v4772_v29, %v1220_v30 }
 0x88f   :  { %v1235_v31 = vrot.slane %v1223_v28, 1  ;;  %v1237_v35 = vrot.slane %v1224_v11, 1  ;;  %v1234_v54 = vrot.slane %v1222_v51, 1  ;;  %v1240_v40 = vrot.slane %v1226_v27, 1 }
 0x890   :  { %v1242_v14 = vrot.slane %v1227_v18, 1  ;;  %v1239_v46 = vrot.slane %v1225_v32, 1  ;;  %v1302_v28 = vrot.slane %v4804_v15, %v4154_v5  ;;  %v1263_v11 = vrot.slane %v4804_v15, %v4156_v6 }
 0x891   :  { %v1238_v43 = vsel %vm597_vm3, %v1235_v31, %v1237_v35  ;;  %v1236_v39 = vsel %vm597_vm3, %v1234_v54, %v1235_v31 }
 0x892   :  { %1246 = vrot.lane.b32.xlu1 %v1238_v43, %s4068_s30  ;;  %1244 = vrot.lane.b32.xlu0 %v1236_v39, %s4068_s30  ;;  %v1243_v9 = vsel %vm597_vm3, %v1240_v40, %v1242_v14  ;;  %v1241_v30 = vsel %vm597_vm3, %v1239_v46, %v1240_v40 }
 0x896   :  { %1250 = vrot.lane.b32.xlu1 %v1243_v9, %s4068_s30  ;;  %1248 = vrot.lane.b32.xlu0 %v1241_v30, %s4068_s30 }
 0x89a   :  { %1304 = vrot.lane.b32.xlu1 %v1302_v28, %s4041_s3  ;;  %1265 = vrot.lane.b32.xlu0 %v1263_v11, %s4042_s29 }
 0x904   :  { %v4816_v51 = vpop.permute.xlu1 %1246 }
 0x905   :  { %6791 = vst [vmem:[#allocation98_spill] sm:$0xff] %v4816_v51 }
 0x908   :  { %v4818_v27 = vpop.permute.xlu1 %1250 }
 0x909   :  { %6792 = vst [vmem:[#allocation99_spill] sm:$0xff] %v4818_v27 }
 0x90c   :  { %v1305_v18 = vpop.permute.xlu1 %1304 }
 0x90d   :  { %v1308_v46 = vmul.f32 %v4763_v26, %v1305_v18  ;;  %v1309_v9 = vmul.f32 %v1305_v18, %v4419_v50  ;;  %v1307_v32 = vmul.f32 %v4738_v22, %v1305_v18  ;;  %v1311_v31 = vmul.f32 %v4768_v10, %v1305_v18 }
 0x90e   :  { %v1312_v35 = vmul.f32 %v1305_v18, %v4421_v52  ;;  %v1310_v54 = vmul.f32 %v4772_v29, %v1305_v18  ;;  %v1348_v18 = vrot.slane %v4804_v15, %v4164_v13 }
 0x90f   :  { %v1320_v40 = vrot.slane %v1308_v46, 2  ;;  %v1322_v43 = vrot.slane %v1309_v9, 2  ;;  %v1319_v39 = vrot.slane %v1307_v32, 2  ;;  %v1325_v14 = vrot.slane %v1311_v31, 2  ;;  %v4837_v46 = vpop.permute.xlu0 %1200 }
 0x910   :  { %v1327_v11 = vrot.slane %v1312_v35, 2  ;;  %v1324_v27 = vrot.slane %v1310_v54, 2  ;;  %6793 = vst [vmem:[#allocation100_spill] sm:$0xff] %v4837_v46 }
 0x911   :  { %v1323_v30 = vsel %vm1280_vm4, %v1320_v40, %v1322_v43  ;;  %v1321_v28 = vsel %vm1280_vm4, %v1319_v39, %v1320_v40 }
 0x912   :  { %1331 = vrot.lane.b32.xlu1 %v1323_v30, %s4054_s17  ;;  %1329 = vrot.lane.b32.xlu0 %v1321_v28, %s4054_s17  ;;  %v1328_v51 = vsel %vm1280_vm4, %v1325_v14, %v1327_v11  ;;  %v1326_v19 = vsel %vm1280_vm4, %v1324_v27, %v1325_v14 }
 0x913   :  { %v4839_v9 = vpop.permute.xlu0 %1204 }
 0x914   :  { %6794 = vst [vmem:[#allocation101_spill] sm:$0xff] %v4839_v9 }
 0x916   :  { %1335 = vrot.lane.b32.xlu1 %v1328_v51, %s4054_s17  ;;  %1333 = vrot.lane.b32.xlu0 %v1326_v19, %s4054_s17 }
 0x917   :  { %v4841_v32 = vpop.permute.xlu0 %1244 }
 0x918   :  { %6795 = vst [vmem:[#allocation102_spill] sm:$0xff] %v4841_v32 }
 0x91a   :  { %1350 = vrot.lane.b32.xlu0 %v1348_v18, %s4044_s8 }
 0x91b   :  { %v4843_v31 = vpop.permute.xlu0 %1248 }
 0x91c   :  { %6796 = vst [vmem:[#allocation103_spill] sm:$0xff] %v4843_v31 }
 0x91f   :  { %v4845_v35 = vpop.permute.xlu0 %1265 }
 0x920   :  { %6797 = vst [vmem:[#allocation104_spill] sm:$0xff] %v4845_v35 }
 0x984   :  { %v4847_v27 = vpop.permute.xlu0 %1329 }
 0x985   :  { %6798 = vst [vmem:[#allocation105_spill] sm:$0xff] %v4847_v27 }
 0x988   :  { %v4849_v51 = vpop.permute.xlu0 %1333 }
 0x989   :  { %6799 = vst [vmem:[#allocation106_spill] sm:$0xff] %v4849_v51 }
 0x98c   :  { %v1351_v19 = vpop.permute.xlu0 %1350 }
 0x98d   :  { %v1354_v54 = vmul.f32 %v4763_v26, %v1351_v19  ;;  %v1355_v40 = vmul.f32 %v1351_v19, %v4419_v50  ;;  %v1353_v43 = vmul.f32 %v4738_v22, %v1351_v19  ;;  %v1357_v39 = vmul.f32 %v4768_v10, %v1351_v19 }
 0x98e   :  { %v1358_v14 = vmul.f32 %v1351_v19, %v4421_v52  ;;  %v1356_v30 = vmul.f32 %v4772_v29, %v1351_v19  ;;  %v1394_v19 = vrot.slane %v4804_v15, %v4162_v12 }
 0x98f   :  { %v1366_v28 = vrot.slane %v1354_v54, 2  ;;  %v1368_v11 = vrot.slane %v1355_v40, 2  ;;  %v1365_v18 = vrot.slane %v1353_v43, 2  ;;  %v1371_v31 = vrot.slane %v1357_v39, 2  ;;  %v4868_v54 = vpop.permute.xlu1 %1331 }
 0x990   :  { %v1373_v32 = vrot.slane %v1358_v14, 2  ;;  %v1370_v9 = vrot.slane %v1356_v30, 2  ;;  %6800 = vst [vmem:[#allocation107_spill] sm:$0xff] %v4868_v54 }
 0x991   :  { %v1369_v27 = vsel %vm1280_vm4, %v1366_v28, %v1368_v11  ;;  %v1367_v51 = vsel %vm1280_vm4, %v1365_v18, %v1366_v28 }
 0x992   :  { %1377 = vrot.lane.b32.xlu0 %v1369_v27, %s4055_s18  ;;  %1375 = vrot.lane.b32.xlu1 %v1367_v51, %s4055_s18  ;;  %v1374_v46 = vsel %vm1280_vm4, %v1371_v31, %v1373_v32  ;;  %v1372_v35 = vsel %vm1280_vm4, %v1370_v9, %v1371_v31 }
 0x993   :  { %v4870_v40 = vpop.permute.xlu1 %1335 }
 0x994   :  { %6801 = vst [vmem:[#allocation108_spill] sm:$0xff] %v4870_v40 }
 0x996   :  { %1381 = vrot.lane.b32.xlu0 %v1374_v46, %s4055_s18  ;;  %1379 = vrot.lane.b32.xlu1 %v1372_v35, %s4055_s18 }
 0x99a   :  { %1396 = vrot.lane.b32.xlu1 %v1394_v19, %s4043_s7 }
 0xa04   :  { %v4872_v27 = vpop.permute.xlu1 %1375 }
 0xa05   :  { %6802 = vst [vmem:[#allocation109_spill] sm:$0xff] %v4872_v27 }
 0xa08   :  { %v4874_v51 = vpop.permute.xlu1 %1379 }
 0xa09   :  { %6803 = vst [vmem:[#allocation110_spill] sm:$0xff] %v4874_v51 }
 0xa0c   :  { %v1397_v32 = vpop.permute.xlu1 %1396 }
 0xa0d   :  { %v1400_v9 = vmul.f32 %v4763_v26, %v1397_v32  ;;  %v1401_v46 = vmul.f32 %v1397_v32, %v4419_v50  ;;  %v1399_v31 = vmul.f32 %v4738_v22, %v1397_v32  ;;  %v1403_v35 = vmul.f32 %v4768_v10, %v1397_v32 }
 0xa0e   :  { %v1404_v43 = vmul.f32 %v1397_v32, %v4421_v52  ;;  %v1402_v39 = vmul.f32 %v4772_v29, %v1397_v32  ;;  %v1440_v32 = vrot.slane %v4804_v15, %v4172_v17 }
 0xa0f   :  { %v1412_v14 = vrot.slane %v1400_v9, 2  ;;  %v1414_v30 = vrot.slane %v1401_v46, 2  ;;  %v1411_v28 = vrot.slane %v1399_v31, 2  ;;  %v1417_v11 = vrot.slane %v1403_v35, 2  ;;  %v4893_v9 = vpop.permute.xlu0 %1377 }
 0xa10   :  { %v1419_v51 = vrot.slane %v1404_v43, 2  ;;  %v1416_v27 = vrot.slane %v1402_v39, 2  ;;  %6804 = vst [vmem:[#allocation111_spill] sm:$0xff] %v4893_v9 }
 0xa11   :  { %v1415_v18 = vsel %vm1280_vm4, %v1412_v14, %v1414_v30  ;;  %v1413_v19 = vsel %vm1280_vm4, %v1411_v28, %v1412_v14 }
 0xa12   :  { %1423 = vrot.lane.b32.xlu1 %v1415_v18, %s4056_s19  ;;  %1421 = vrot.lane.b32.xlu0 %v1413_v19, %s4056_s19  ;;  %v1420_v40 = vsel %vm1280_vm4, %v1417_v11, %v1419_v51  ;;  %v1418_v54 = vsel %vm1280_vm4, %v1416_v27, %v1417_v11 }
 0xa13   :  { %v4895_v46 = vpop.permute.xlu0 %1381 }
 0xa14   :  { %6805 = vst [vmem:[#allocation112_spill] sm:$0xff] %v4895_v46 }
 0xa16   :  { %1427 = vrot.lane.b32.xlu1 %v1420_v40, %s4056_s19  ;;  %1425 = vrot.lane.b32.xlu0 %v1418_v54, %s4056_s19 }
 0xa1a   :  { %1442 = vrot.lane.b32.xlu0 %v1440_v32, %s4046_s10 }
 0xa84   :  { %v4897_v31 = vpop.permute.xlu0 %1421 }
 0xa85   :  { %6806 = vst [vmem:[#allocation113_spill] sm:$0xff] %v4897_v31 }
 0xa88   :  { %v4899_v35 = vpop.permute.xlu0 %1425 }
 0xa89   :  { %6807 = vst [vmem:[#allocation114_spill] sm:$0xff] %v4899_v35 }
 0xa8c   :  { %v1443_v51 = vpop.permute.xlu0 %1442 }
 0xa8d   :  { %v1446_v27 = vmul.f32 %v4763_v26, %v1443_v51  ;;  %v1447_v40 = vmul.f32 %v1443_v51, %v4419_v50  ;;  %v1445_v54 = vmul.f32 %v4738_v22, %v1443_v51  ;;  %v1449_v43 = vmul.f32 %v4768_v10, %v1443_v51 }
 0xa8e   :  { %v1450_v39 = vmul.f32 %v1443_v51, %v4421_v52  ;;  %v1448_v14 = vmul.f32 %v4772_v29, %v1443_v51  ;;  %v1486_v51 = vrot.slane %v4804_v15, %v4170_v16 }
 0xa8f   :  { %v1458_v30 = vrot.slane %v1446_v27, 2  ;;  %v1460_v28 = vrot.slane %v1447_v40, 2  ;;  %v1457_v11 = vrot.slane %v1445_v54, 2  ;;  %v1463_v18 = vrot.slane %v1449_v43, 2  ;;  %v4918_v27 = vpop.permute.xlu1 %1423 }
 0xa90   :  { %v1465_v35 = vrot.slane %v1450_v39, 2  ;;  %v1462_v31 = vrot.slane %v1448_v14, 2  ;;  %6808 = vst [vmem:[#allocation115_spill] sm:$0xff] %v4918_v27  ;;  %v4927_v39 = vld [vmem:[#allocation2 + $0x10] sm:$0x3] }
 0xa91   :  { %v1461_v19 = vsel %vm1280_vm4, %v1458_v30, %v1460_v28  ;;  %v1459_v32 = vsel %vm1280_vm4, %v1457_v11, %v1458_v30  ;;  %v4932_v11 = vld [vmem:[#allocation2 + $0x28] sm:$0x3] }
 0xa92   :  { %1469 = vrot.lane.b32.xlu0 %v1461_v19, %s4057_s20  ;;  %1467 = vrot.lane.b32.xlu1 %v1459_v32, %s4057_s20  ;;  %v1466_v50 = vsel %vm1280_vm4, %v1463_v18, %v1465_v35  ;;  %v1464_v52 = vsel %vm1280_vm4, %v1462_v31, %v1463_v18 }
 0xa93   :  { %v4920_v40 = vpop.permute.xlu1 %1427 }
 0xa94   :  { %6809 = vst [vmem:[#allocation116_spill] sm:$0xff] %v4920_v40 }
 0xa96   :  { %1473 = vrot.lane.b32.xlu0 %v1466_v50, %s4057_s20  ;;  %1471 = vrot.lane.b32.xlu1 %v1464_v52, %s4057_s20 }
 0xa9a   :  { %1488 = vrot.lane.b32.xlu1 %v1486_v51, %s4045_s9 }
 0xb04   :  { %v4922_v54 = vpop.permute.xlu1 %1467 }
 0xb05   :  { %6810 = vst [vmem:[#allocation117_spill] sm:$0xff] %v4922_v54 }
 0xb08   :  { %v4924_v43 = vpop.permute.xlu1 %1471 }
 0xb09   :  { %6811 = vst [vmem:[#allocation118_spill] sm:$0xff] %v4924_v43 }
 0xb0c   :  { %v1489_v35 = vpop.permute.xlu1 %1488 }
 0xb0d   :  { %v1492_v31 = vmul.f32 %v4763_v26, %v1489_v35  ;;  %v1493_v14 = vmul.f32 %v4927_v39, %v1489_v35  ;;  %v1491_v30 = vmul.f32 %v4738_v22, %v1489_v35  ;;  %v1495_v28 = vmul.f32 %v4768_v10, %v1489_v35 }
 0xb0e   :  { %v1496_v18 = vmul.f32 %v4932_v11, %v1489_v35  ;;  %v1494_v19 = vmul.f32 %v4772_v29, %v1489_v35  ;;  %v1532_v35 = vrot.slane %v4804_v15, %v4180_v21 }
 0xb0f   :  { %v1504_v32 = vrot.slane %v1492_v31, 2  ;;  %v1506_v50 = vrot.slane %v1493_v14, 2  ;;  %v1503_v52 = vrot.slane %v1491_v30, 2  ;;  %v1509_v51 = vrot.slane %v1495_v28, 2  ;;  %v4947_v31 = vpop.permute.xlu0 %1469 }
 0xb10   :  { %v1511_v40 = vrot.slane %v1496_v18, 2  ;;  %v1508_v27 = vrot.slane %v1494_v19, 2  ;;  %6812 = vst [vmem:[#allocation119_spill] sm:$0xff] %v4947_v31 }
 0xb11   :  { %v1507_v43 = vsel %vm1280_vm4, %v1504_v32, %v1506_v50  ;;  %v1505_v54 = vsel %vm1280_vm4, %v1503_v52, %v1504_v32 }
 0xb12   :  { %1515 = vrot.lane.b32.xlu1 %v1507_v43, %s4058_s22  ;;  %1513 = vrot.lane.b32.xlu0 %v1505_v54, %s4058_s22  ;;  %v1512_v46 = vsel %vm1280_vm4, %v1509_v51, %v1511_v40  ;;  %v1510_v9 = vsel %vm1280_vm4, %v1508_v27, %v1509_v51 }
 0xb13   :  { %v4949_v14 = vpop.permute.xlu0 %1473 }
 0xb14   :  { %6813 = vst [vmem:[#allocation120_spill] sm:$0xff] %v4949_v14 }
 0xb16   :  { %1519 = vrot.lane.b32.xlu1 %v1512_v46, %s4058_s22  ;;  %1517 = vrot.lane.b32.xlu0 %v1510_v9, %s4058_s22 }
 0xb1a   :  { %1534 = vrot.lane.b32.xlu0 %v1532_v35, %s4047_s11 }
 0xb84   :  { %v4951_v43 = vpop.permute.xlu0 %1513 }
 0xb85   :  { %6814 = vst [vmem:[#allocation121_spill] sm:$0xff] %v4951_v43 }
 0xb88   :  { %v4953_v54 = vpop.permute.xlu0 %1517 }
 0xb89   :  { %6815 = vst [vmem:[#allocation122_spill] sm:$0xff] %v4953_v54 }
 0xb8c   :  { %v1535_v40 = vpop.permute.xlu0 %1534 }
 0xb8d   :  { %v1538_v27 = vmul.f32 %v4763_v26, %v1535_v40  ;;  %v1539_v46 = vmul.f32 %v4927_v39, %v1535_v40  ;;  %v1537_v9 = vmul.f32 %v4738_v22, %v1535_v40  ;;  %v1541_v30 = vmul.f32 %v4768_v10, %v1535_v40 }
 0xb8e   :  { %v1542_v28 = vmul.f32 %v4932_v11, %v1535_v40  ;;  %v1540_v18 = vmul.f32 %v4772_v29, %v1535_v40  ;;  %v1578_v40 = vrot.slane %v4804_v15, %v4178_v20 }
 0xb8f   :  { %v1550_v19 = vrot.slane %v1538_v27, 2  ;;  %v1552_v32 = vrot.slane %v1539_v46, 2  ;;  %v1549_v50 = vrot.slane %v1537_v9, 2  ;;  %v1555_v52 = vrot.slane %v1541_v30, 2  ;;  %v4972_v27 = vpop.permute.xlu1 %1515 }
 0xb90   :  { %v1557_v54 = vrot.slane %v1542_v28, 2  ;;  %v1554_v43 = vrot.slane %v1540_v18, 2 }
 0xb91   :  { %v1553_v51 = vsel %vm1280_vm4, %v1550_v19, %v1552_v32  ;;  %v1551_v35 = vsel %vm1280_vm4, %v1549_v50, %v1550_v19 }
 0xb92   :  { %1561 = vrot.lane.b32.xlu0 %v1553_v51, %s4059_s23  ;;  %1559 = vrot.lane.b32.xlu1 %v1551_v35, %s4059_s23  ;;  %v1558_v14 = vsel %vm1280_vm4, %v1555_v52, %v1557_v54  ;;  %v1556_v31 = vsel %vm1280_vm4, %v1554_v43, %v1555_v52 }
 0xb93   :  { %v4974_v46 = vpop.permute.xlu1 %1519 }
 0xb96   :  { %1565 = vrot.lane.b32.xlu0 %v1558_v14, %s4059_s23  ;;  %1563 = vrot.lane.b32.xlu1 %v1556_v31, %s4059_s23 }
 0xb9a   :  { %1580 = vrot.lane.b32.xlu1 %v1578_v40, %s4038_s6 }
 0xc04   :  { %v4976_v9 = vpop.permute.xlu1 %1559 }
 0xc05   :  { %6816 = vst [vmem:[#allocation123_spill] sm:$0xff] %v4976_v9 }
 0xc08   :  { %v4978_v30 = vpop.permute.xlu1 %1563 }
 0xc09   :  { %6817 = vst [vmem:[#allocation124_spill] sm:$0xff] %v4978_v30  ;;  %v4990_v30 = vld [vmem:[#allocation7 + $0x28] sm:$0x7f] }
 0xc0c   :  { %v1581_v54 = vpop.permute.xlu1 %1580 }
 0xc0d   :  { %v1584_v43 = vmul.f32 %v4763_v26, %v1581_v54  ;;  %v1585_v14 = vmul.f32 %v4927_v39, %v1581_v54  ;;  %v1583_v31 = vmul.f32 %v4738_v22, %v1581_v54  ;;  %v1587_v28 = vmul.f32 %v4768_v10, %v1581_v54 }
 0xc0e   :  { %v1588_v15 = vmul.f32 %v4932_v11, %v1581_v54  ;;  %v1586_v18 = vmul.f32 %v4772_v29, %v1581_v54 }
 0xc0f   :  { %v1596_v19 = vrot.slane %v1584_v43, 2  ;;  %v1598_v32 = vrot.slane %v1585_v14, 2  ;;  %v1595_v50 = vrot.slane %v1583_v31, 2  ;;  %v1601_v52 = vrot.slane %v1587_v28, 2  ;;  %v4999_v14 = vpop.permute.xlu0 %1561 }
 0xc10   :  { %v1603_v40 = vrot.slane %v1588_v15, 2  ;;  %v1600_v20 = vrot.slane %v1586_v18, 2  ;;  %v1624_v43 = vrot.slane %v4990_v30, %v4156_v6  ;;  %6818 = vst [vmem:[#allocation125_spill] sm:$0xff] %v4999_v14 }
 0xc11   :  { %v1599_v51 = vsel %vm1280_vm4, %v1596_v19, %v1598_v32  ;;  %v1597_v35 = vsel %vm1280_vm4, %v1595_v50, %v1596_v19 }
 0xc12   :  { %1607 = vrot.lane.b32.xlu1 %v1599_v51, %s4060_s24  ;;  %1605 = vrot.lane.b32.xlu0 %v1597_v35, %s4060_s24  ;;  %v1604_v9 = vsel %vm1280_vm4, %v1601_v52, %v1603_v40  ;;  %v1602_v54 = vsel %vm1280_vm4, %v1600_v20, %v1601_v52 }
 0xc13   :  { %v5001_v31 = vpop.permute.xlu0 %1565 }
 0xc14   :  { %6819 = vst [vmem:[#allocation126_spill] sm:$0xff] %v5001_v31 }
 0xc16   :  { %1611 = vrot.lane.b32.xlu1 %v1604_v9, %s4060_s24  ;;  %1609 = vrot.lane.b32.xlu0 %v1602_v54, %s4060_s24 }
 0xc1a   :  { %1626 = vrot.lane.b32.xlu0 %v1624_v43, %s4049_s13 }
 0xc84   :  { %v5003_v28 = vpop.permute.xlu0 %1605 }
 0xc85   :  { %6820 = vst [vmem:[#allocation127_spill] sm:$0xff] %v5003_v28 }
 0xc88   :  { %v5005_v15 = vpop.permute.xlu0 %1609 }
 0xc89   :  { %6821 = vst [vmem:[#allocation128_spill] sm:$0xff] %v5005_v15 }
 0xc8c   :  { %v1627_v18 = vpop.permute.xlu0 %1626 }
 0xc8d   :  { %v1630_v20 = vmul.f32 %v4763_v26, %v1627_v18  ;;  %v1631_v9 = vmul.f32 %v4927_v39, %v1627_v18  ;;  %v1629_v19 = vmul.f32 %v4738_v22, %v1627_v18  ;;  %v1633_v32 = vmul.f32 %v4768_v10, %v1627_v18 }
 0xc8e   :  { %v1634_v50 = vmul.f32 %v4932_v11, %v1627_v18  ;;  %v1632_v52 = vmul.f32 %v4772_v29, %v1627_v18  ;;  %v1670_v18 = vrot.slane %v4990_v30, %v4154_v5 }
 0xc8f   :  { %v1642_v51 = vrot.slane %v1630_v20, 2  ;;  %v1644_v35 = vrot.slane %v1631_v9, 2  ;;  %v1641_v40 = vrot.slane %v1629_v19, 2  ;;  %v1647_v54 = vrot.slane %v1633_v32, 2  ;;  %v5024_v20 = vpop.permute.xlu1 %1607 }
 0xc90   :  { %v1649_v15 = vrot.slane %v1634_v50, 2  ;;  %v1646_v28 = vrot.slane %v1632_v52, 2 }
 0xc91   :  { %v1645_v43 = vsel %vm1280_vm4, %v1642_v51, %v1644_v35  ;;  %v1643_v6 = vsel %vm1280_vm4, %v1641_v40, %v1642_v51 }
 0xc92   :  { %1653 = vrot.lane.b32.xlu0 %v1645_v43, %s4061_s25  ;;  %1651 = vrot.lane.b32.xlu1 %v1643_v6, %s4061_s25  ;;  %v1650_v31 = vsel %vm1280_vm4, %v1647_v54, %v1649_v15  ;;  %v1648_v14 = vsel %vm1280_vm4, %v1646_v28, %v1647_v54 }
 0xc93   :  { %v5026_v9 = vpop.permute.xlu1 %1611 }
 0xc94   :  { %6822 = vst [vmem:[#allocation129_spill] sm:$0xff] %v5026_v9 }
 0xc96   :  { %1657 = vrot.lane.b32.xlu0 %v1650_v31, %s4061_s25  ;;  %1655 = vrot.lane.b32.xlu1 %v1648_v14, %s4061_s25 }
 0xc9a   :  { %1672 = vrot.lane.b32.xlu1 %v1670_v18, %s4048_s12 }
 0xd04   :  { %v5028_v19 = vpop.permute.xlu1 %1651 }
 0xd05   :  { %6823 = vst [vmem:[#allocation130_spill] sm:$0xff] %v5028_v19 }
 0xd08   :  { %v5030_v6 = vpop.permute.xlu1 %1655 }
 0xd09   :  { %6824 = vst [vmem:[#allocation131_spill] sm:$0xff] %v5030_v6 }
 0xd0c   :  { %v1673_v15 = vpop.permute.xlu1 %1672 }
 0xd0d   :  { %v1676_v28 = vmul.f32 %v4763_v26, %v1673_v15  ;;  %v1677_v31 = vmul.f32 %v4927_v39, %v1673_v15  ;;  %v1675_v14 = vmul.f32 %v4738_v22, %v1673_v15  ;;  %v1679_v32 = vmul.f32 %v4768_v10, %v1673_v15 }
 0xd0e   :  { %v1680_v50 = vmul.f32 %v4932_v11, %v1673_v15  ;;  %v1678_v52 = vmul.f32 %v4772_v29, %v1673_v15  ;;  %v1716_v15 = vrot.slane %v4990_v30, %v4164_v13 }
 0xd0f   :  { %v1688_v51 = vrot.slane %v1676_v28, 2  ;;  %v1690_v35 = vrot.slane %v1677_v31, 2  ;;  %v1687_v40 = vrot.slane %v1675_v14, 2  ;;  %v1693_v54 = vrot.slane %v1679_v32, 2  ;;  %v5049_v28 = vpop.permute.xlu0 %1653 }
 0xd10   :  { %v1695_v5 = vrot.slane %v1680_v50, 2  ;;  %v1692_v6 = vrot.slane %v1678_v52, 2 }
 0xd11   :  { %v1691_v43 = vsel %vm1280_vm4, %v1688_v51, %v1690_v35  ;;  %v1689_v18 = vsel %vm1280_vm4, %v1687_v40, %v1688_v51 }
 0xd12   :  { %1699 = vrot.lane.b32.xlu1 %v1691_v43, %s4062_s26  ;;  %1697 = vrot.lane.b32.xlu0 %v1689_v18, %s4062_s26  ;;  %v1696_v19 = vsel %vm1280_vm4, %v1693_v54, %v1695_v5  ;;  %v1694_v9 = vsel %vm1280_vm4, %v1692_v6, %v1693_v54 }
 0xd13   :  { %v5051_v31 = vpop.permute.xlu0 %1657 }
 0xd14   :  { %6825 = vst [vmem:[#allocation132_spill] sm:$0xff] %v5051_v31 }
 0xd16   :  { %1703 = vrot.lane.b32.xlu1 %v1696_v19, %s4062_s26  ;;  %1701 = vrot.lane.b32.xlu0 %v1694_v9, %s4062_s26 }
 0xd1a   :  { %1718 = vrot.lane.b32.xlu0 %v1716_v15, %s4051_s15 }
 0xd84   :  { %v5053_v14 = vpop.permute.xlu0 %1697 }
 0xd85   :  { %6826 = vst [vmem:[#allocation133_spill] sm:$0xff] %v5053_v14 }
 0xd88   :  { %v5055_v32 = vpop.permute.xlu0 %1701 }
 0xd89   :  { %6827 = vst [vmem:[#allocation134_spill] sm:$0xff] %v5055_v32 }
 0xd8c   :  { %v1719_v5 = vpop.permute.xlu0 %1718 }
 0xd8d   :  { %v1722_v6 = vmul.f32 %v4763_v26, %v1719_v5  ;;  %v1723_v19 = vmul.f32 %v4927_v39, %v1719_v5  ;;  %v1721_v9 = vmul.f32 %v4738_v22, %v1719_v5  ;;  %v1725_v50 = vmul.f32 %v4768_v10, %v1719_v5 }
 0xd8e   :  { %v1726_v52 = vmul.f32 %v4932_v11, %v1719_v5  ;;  %v1724_v51 = vmul.f32 %v4772_v29, %v1719_v5  ;;  %v1762_v5 = vrot.slane %v4990_v30, %v4162_v12 }
 0xd8f   :  { %v1734_v35 = vrot.slane %v1722_v6, 2  ;;  %v1736_v40 = vrot.slane %v1723_v19, 2  ;;  %v1733_v54 = vrot.slane %v1721_v9, 2  ;;  %v1739_v43 = vrot.slane %v1725_v50, 2  ;;  %v5074_v6 = vpop.permute.xlu1 %1699 }
 0xd90   :  { %v1741_v13 = vrot.slane %v1726_v52, 2  ;;  %v1738_v32 = vrot.slane %v1724_v51, 2 }
 0xd91   :  { %v1737_v18 = vsel %vm1280_vm4, %v1734_v35, %v1736_v40  ;;  %v1735_v15 = vsel %vm1280_vm4, %v1733_v54, %v1734_v35 }
 0xd92   :  { %1745 = vrot.lane.b32.xlu0 %v1737_v18, %s4063_s27  ;;  %1743 = vrot.lane.b32.xlu1 %v1735_v15, %s4063_s27  ;;  %v1742_v14 = vsel %vm1280_vm4, %v1739_v43, %v1741_v13  ;;  %v1740_v31 = vsel %vm1280_vm4, %v1738_v32, %v1739_v43 }
 0xd93   :  { %v5076_v19 = vpop.permute.xlu1 %1703 }
 0xd94   :  { %6828 = vst [vmem:[#allocation135_spill] sm:$0xff] %v5076_v19 }
 0xd96   :  { %1749 = vrot.lane.b32.xlu0 %v1742_v14, %s4063_s27  ;;  %1747 = vrot.lane.b32.xlu1 %v1740_v31, %s4063_s27 }
 0xd9a   :  { %1764 = vrot.lane.b32.xlu1 %v1762_v5, %s4050_s14 }
 0xe04   :  { %v5078_v9 = vpop.permute.xlu1 %1743 }
 0xe05   :  { %6829 = vst [vmem:[#allocation136_spill] sm:$0xff] %v5078_v9 }
 0xe08   :  { %v5080_v50 = vpop.permute.xlu1 %1747 }
 0xe09   :  { %6830 = vst [vmem:[#allocation137_spill] sm:$0xff] %v5080_v50 }
 0xe0c   :  { %v1765_v13 = vpop.permute.xlu1 %1764 }
 0xe0d   :  { %v1768_v32 = vmul.f32 %v4763_v26, %v1765_v13  ;;  %v1769_v14 = vmul.f32 %v4927_v39, %v1765_v13  ;;  %v1767_v31 = vmul.f32 %v4738_v22, %v1765_v13  ;;  %v1771_v52 = vmul.f32 %v4768_v10, %v1765_v13 }
 0xe0e   :  { %v1772_v51 = vmul.f32 %v4932_v11, %v1765_v13  ;;  %v1770_v35 = vmul.f32 %v4772_v29, %v1765_v13  ;;  %v1808_v13 = vrot.slane %v4990_v30, %v4172_v17 }
 0xe0f   :  { %v1780_v40 = vrot.slane %v1768_v32, 2  ;;  %v1782_v54 = vrot.slane %v1769_v14, 2  ;;  %v1779_v43 = vrot.slane %v1767_v31, 2  ;;  %v1785_v18 = vrot.slane %v1771_v52, 2  ;;  %v5099_v32 = vpop.permute.xlu0 %1745 }
 0xe10   :  { %v1787_v12 = vrot.slane %v1772_v51, 2  ;;  %v1784_v50 = vrot.slane %v1770_v35, 2 }
 0xe11   :  { %v1783_v15 = vsel %vm1280_vm4, %v1780_v40, %v1782_v54  ;;  %v1781_v5 = vsel %vm1280_vm4, %v1779_v43, %v1780_v40 }
 0xe12   :  { %1791 = vrot.lane.b32.xlu1 %v1783_v15, %s4064_s28  ;;  %1789 = vrot.lane.b32.xlu0 %v1781_v5, %s4064_s28  ;;  %v1788_v9 = vsel %vm1280_vm4, %v1785_v18, %v1787_v12  ;;  %v1786_v19 = vsel %vm1280_vm4, %v1784_v50, %v1785_v18 }
 0xe13   :  { %v5101_v14 = vpop.permute.xlu0 %1749 }
 0xe14   :  { %6831 = vst [vmem:[#allocation138_spill] sm:$0xff] %v5101_v14 }
 0xe16   :  { %1795 = vrot.lane.b32.xlu1 %v1788_v9, %s4064_s28  ;;  %1793 = vrot.lane.b32.xlu0 %v1786_v19, %s4064_s28 }
 0xe1a   :  { %1810 = vrot.lane.b32.xlu0 %v1808_v13, %s6683_s1  ;;  %s6834_s1 = smov 14  }
 0xe84   :  { %v5103_v31 = vpop.permute.xlu0 %1789 }
 0xe85   :  { %6832 = vst [vmem:[#allocation139_spill] sm:$0xff] %v5103_v31 }
 0xe88   :  { %v5105_v52 = vpop.permute.xlu0 %1793 }
 0xe89   :  { %6833 = vst [vmem:[#allocation140_spill] sm:$0xff] %v5105_v52 }
 0xe8c   :  { %v1811_v12 = vpop.permute.xlu0 %1810 }
 0xe8d   :  { %v1814_v50 = vmul.f32 %v4763_v26, %v1811_v12  ;;  %v1815_v9 = vmul.f32 %v4927_v39, %v1811_v12  ;;  %v1813_v19 = vmul.f32 %v4738_v22, %v1811_v12  ;;  %v1817_v51 = vmul.f32 %v4768_v10, %v1811_v12 }
 0xe8e   :  { %v1818_v35 = vmul.f32 %v4932_v11, %v1811_v12  ;;  %v1816_v40 = vmul.f32 %v4772_v29, %v1811_v12  ;;  %v1854_v12 = vrot.slane %v4990_v30, %v4170_v16 }
 0xe8f   :  { %v1826_v54 = vrot.slane %v1814_v50, 2  ;;  %v1828_v43 = vrot.slane %v1815_v9, 2  ;;  %v1825_v18 = vrot.slane %v1813_v19, 2  ;;  %v1831_v15 = vrot.slane %v1817_v51, 2  ;;  %v5124_v50 = vpop.permute.xlu1 %1791 }
 0xe90   :  { %v1833_v17 = vrot.slane %v1818_v35, 2  ;;  %v1830_v52 = vrot.slane %v1816_v40, 2 }
 0xe91   :  { %v1829_v5 = vsel %vm1280_vm4, %v1826_v54, %v1828_v43  ;;  %v1827_v13 = vsel %vm1280_vm4, %v1825_v18, %v1826_v54 }
 0xe92   :  { %1837 = vrot.lane.b32.xlu0 %v1829_v5, %s6691_s0  ;;  %1835 = vrot.lane.b32.xlu1 %v1827_v13, %s6691_s0  ;;  %v1834_v31 = vsel %vm1280_vm4, %v1831_v15, %v1833_v17  ;;  %v1832_v14 = vsel %vm1280_vm4, %v1830_v52, %v1831_v15 }
 0xe93   :  { %v5126_v9 = vpop.permute.xlu1 %1795 }
 0xe94   :  { %6835 = vst [vmem:[#allocation141_spill] sm:$0xff] %v5126_v9 }
 0xe96   :  { %1841 = vrot.lane.b32.xlu0 %v1834_v31, %s6691_s0  ;;  %1839 = vrot.lane.b32.xlu1 %v1832_v14, %s6691_s0  ;;  %s6989_s0 = smov 116  }
 0xe9a   :  { %1856 = vrot.lane.b32.xlu1 %v1854_v12, %s6834_s1 }
 0xf04   :  { %v5128_v19 = vpop.permute.xlu1 %1835 }
 0xf05   :  { %6836 = vst [vmem:[#allocation142_spill] sm:$0xff] %v5128_v19 }
 0xf08   :  { %v5130_v51 = vpop.permute.xlu1 %1839 }
 0xf09   :  { %6837 = vst [vmem:[#allocation143_spill] sm:$0xff] %v5130_v51 }
 0xf0c   :  { %v1857_v17 = vpop.permute.xlu1 %1856 }
 0xf0d   :  { %v1860_v52 = vmul.f32 %v4763_v26, %v1857_v17  ;;  %v1861_v31 = vmul.f32 %v4927_v39, %v1857_v17  ;;  %v1859_v14 = vmul.f32 %v4738_v22, %v1857_v17  ;;  %v1863_v35 = vmul.f32 %v4768_v10, %v1857_v17 }
 0xf0e   :  { %v1864_v40 = vmul.f32 %v4932_v11, %v1857_v17  ;;  %v1862_v54 = vmul.f32 %v4772_v29, %v1857_v17  ;;  %v1900_v17 = vrot.slane %v4990_v30, %v4180_v21 }
 0xf0f   :  { %v1872_v43 = vrot.slane %v1860_v52, 2  ;;  %v1874_v18 = vrot.slane %v1861_v31, 2  ;;  %v1871_v15 = vrot.slane %v1859_v14, 2  ;;  %v1877_v5 = vrot.slane %v1863_v35, 2  ;;  %v5149_v52 = vpop.permute.xlu0 %1837 }
 0xf10   :  { %v1879_v16 = vrot.slane %v1864_v40, 2  ;;  %v1876_v51 = vrot.slane %v1862_v54, 2 }
 0xf11   :  { %v1875_v13 = vsel %vm1280_vm4, %v1872_v43, %v1874_v18  ;;  %v1873_v12 = vsel %vm1280_vm4, %v1871_v15, %v1872_v43 }
 0xf12   :  { %1883 = vrot.lane.b32.xlu1 %v1875_v13, %s6689_s21  ;;  %1881 = vrot.lane.b32.xlu0 %v1873_v12, %s6689_s21  ;;  %v1880_v19 = vsel %vm1280_vm4, %v1877_v5, %v1879_v16  ;;  %v1878_v9 = vsel %vm1280_vm4, %v1876_v51, %v1877_v5 }
 0xf13   :  { %v5151_v31 = vpop.permute.xlu0 %1841 }
 0xf16   :  { %1887 = vrot.lane.b32.xlu1 %v1880_v19, %s6689_s21  ;;  %1885 = vrot.lane.b32.xlu0 %v1878_v9, %s6689_s21  ;;  %s6994_s21 = smov 115  }
 0xf1a   :  { %1902 = vrot.lane.b32.xlu0 %v1900_v17, %s6786_s16 }
 0xf84   :  { %v5153_v14 = vpop.permute.xlu0 %1881 }
 0xf85   :  { %6838 = vst [vmem:[#allocation144_spill] sm:$0xff] %v5153_v14 }
 0xf88   :  { %v5155_v35 = vpop.permute.xlu0 %1885 }
 0xf89   :  { %6839 = vst [vmem:[#allocation145_spill] sm:$0xff] %v5155_v35 }
 0xf8c   :  { %v1903_v16 = vpop.permute.xlu0 %1902 }
 0xf8d   :  { %v1906_v51 = vmul.f32 %v4763_v26, %v1903_v16  ;;  %v1907_v19 = vmul.f32 %v4927_v39, %v1903_v16  ;;  %v1905_v9 = vmul.f32 %v4738_v22, %v1903_v16  ;;  %v1909_v40 = vmul.f32 %v4768_v10, %v1903_v16 }
 0xf8e   :  { %v1910_v30 = vmul.f32 %v4932_v11, %v1903_v16  ;;  %v1908_v54 = vmul.f32 %v4772_v29, %v1903_v16  ;;  %v3880_v16 = vld [vmem:[%s6660_s2] ss:$0 sm:$0xff]  ;;  %s6986_s2 = smov 13  }
 0xf8f   :  { %v1918_v43 = vrot.slane %v1906_v51, 2  ;;  %v1920_v18 = vrot.slane %v1907_v19, 2  ;;  %v1917_v15 = vrot.slane %v1905_v9, 2  ;;  %v1923_v5 = vrot.slane %v1909_v40, 2 }
 0xf90   :  { %v1925_v17 = vrot.slane %v1910_v30, 2  ;;  %v1922_v21 = vrot.slane %v1908_v54, 2  ;;  %v121_v51 = vmul.f32 %v4738_v22, %v4214_v37  ;;  %v122_v19 = vmul.f32 %v4763_v26, %v4214_v37 }
 0xf91   :  { %v1921_v13 = vsel %vm1280_vm4, %v1918_v43, %v1920_v18  ;;  %v1919_v12 = vsel %vm1280_vm4, %v1917_v15, %v1918_v43  ;;  %v123_v9 = vmul.f32 %v4772_v29, %v4214_v37 }
 0xf92   :  { %1929 = vrot.lane.b32.xlu0 %v1921_v13, %s4068_s30  ;;  %1927 = vrot.lane.b32.xlu1 %v1919_v12, %s4068_s30  ;;  %v1926_v35 = vsel %vm1280_vm4, %v1923_v5, %v1925_v17  ;;  %v1924_v14 = vsel %vm1280_vm4, %v1922_v21, %v1923_v5  ;;  %v124_v21 = vmul.f32 %v4768_v10, %v4214_v37  ;;  %v6840_v13 = vld [vmem:[#allocation34_spill] sm:$0xff]  ;;  %v6842_v17 = vld [vmem:[#allocation35_spill] sm:$0xff] }
 0xf93   :  { %v159_v40 = vadd.f32 %v4331_v57, %v123_v9  ;;  %v6841_v12 = vld [vmem:[#allocation22_spill] sm:$0xff]  ;;  %v6847_v9 = vld [vmem:[#allocation37_spill] sm:$0xff] }
 0xf94   :  { %v160_v30 = vadd.f32 %v4399_v36, %v124_v21 }
 0xf95   :  { %v191_v15 = vadd.f32 %v4403_v41, %v159_v40  ;;  %v6848_v40 = vld [vmem:[#allocation25_spill] sm:$0xff] }
 0xf96   :  { %1933 = vrot.lane.b32.xlu0 %v1926_v35, %s4068_s30  ;;  %1931 = vrot.lane.b32.xlu1 %v1924_v14, %s4068_s30  ;;  %v157_v14 = vadd.f32 %v4329_v56, %v121_v51  ;;  %v158_v35 = vadd.f32 %v4397_v34, %v122_v19  ;;  %v192_v18 = vadd.f32 %v4335_v59, %v160_v30 }
 0xf97   :  { %v223_v56 = vadd.f32 %v4339_v61, %v191_v15  ;;  %v6851_v15 = vld [vmem:[#allocation39_spill] sm:$0xff] }
 0xf98   :  { %v190_v54 = vadd.f32 %v4333_v58, %v158_v35  ;;  %v189_v43 = vadd.f32 %v4401_v38, %v157_v14  ;;  %v224_v34 = vadd.f32 %v4407_v44, %v192_v18 }
 0xf99   :  { %v255_v38 = vadd.f32 %v4413_v47, %v223_v56 }
 0xf9a   :  { %1949 = vrot.lane.b32.xlu1 %v3880_v16, %s4042_s29  ;;  %v221_v5 = vadd.f32 %v4337_v60, %v189_v43  ;;  %v222_v37 = vadd.f32 %v4405_v42, %v190_v54  ;;  %v256_v58 = vadd.f32 %v4343_v62, %v224_v34  ;;  %v6843_v16 = vld [vmem:[#allocation47_spill] sm:$0xff]  ;;  %v6850_v43 = vld [vmem:[#allocation26_spill] sm:$0xff] }
 0xf9b   :  { %v287_v60 = vadd.f32 %v4347_v0, %v255_v38  ;;  %v589_v14 = vmul.f32 %v4768_v10, %v6843_v16  ;;  %v588_v35 = vmul.f32 %v4772_v29, %v6843_v16  ;;  %v6853_v10 = vld [vmem:[#allocation40_spill] sm:$0xff] }
 0xf9c   :  { %v254_v57 = vadd.f32 %v4341_v24, %v222_v37  ;;  %v253_v36 = vadd.f32 %v4409_v45, %v221_v5  ;;  %v288_v42 = vadd.f32 %v4429_v33, %v256_v58  ;;  %v6854_v38 = vld [vmem:[#allocation28_spill] sm:$0xff] }
 0xf9d   :  { %v319_v45 = vadd.f32 %v4444_v48, %v287_v60  ;;  %v604_v29 = vrot.slane %v589_v14, 1  ;;  %v6867_v14 = vld [vmem:[#allocation48_spill] sm:$0xff] }
 0xf9e   :  { %v285_v59 = vadd.f32 %v4345_v63, %v253_v36  ;;  %v286_v41 = vadd.f32 %v4417_v49, %v254_v57  ;;  %v320_v24 = vadd.f32 %v4351_v2, %v288_v42  ;;  %v6852_v57 = vld [vmem:[#allocation27_spill] sm:$0xff] }
 0xf9f   :  { %v351_v63 = vadd.f32 %v4355_v4, %v319_v45  ;;  %v587_v4 = vmul.f32 %v4927_v39, %v6843_v16  ;;  %v6857_v45 = vld [vmem:[#allocation42_spill] sm:$0xff] }
 0xfa0   :  { %v318_v61 = vadd.f32 %v4349_v1, %v286_v41  ;;  %v317_v44 = vadd.f32 %v4438_v53, %v285_v59  ;;  %v352_v49 = vadd.f32 %v4448_v23, %v320_v24  ;;  %v6855_v41 = vld [vmem:[#allocation41_spill] sm:$0xff] }
 0xfa1   :  { %v383_v53 = vadd.f32 %v6840_v13, %v351_v63  ;;  %v601_v56 = vrot.slane %v587_v4, 1  ;;  %v6860_v13 = vld [vmem:[#allocation31_spill] sm:$0xff] }
 0xfa2   :  { %v349_v62 = vadd.f32 %v4353_v3, %v317_v44  ;;  %v350_v47 = vadd.f32 %v4446_v55, %v318_v61  ;;  %v384_v1 = vadd.f32 %v4359_v8, %v352_v49  ;;  %v586_v3 = vmul.f32 %v4763_v26, %v6843_v16  ;;  %v6846_v8 = vld [vmem:[#allocation24_spill] sm:$0xff]  ;;  %v6856_v44 = vld [vmem:[#allocation29_spill] sm:$0xff]  ;;  %v6859_v49 = vld [vmem:[#allocation43_spill] sm:$0xff] }
 0xfa3   :  { %v585_v55 = vmul.f32 %v4738_v22, %v6843_v16  ;;  %v590_v26 = vmul.f32 %v4932_v11, %v6843_v16  ;;  %v6849_v22 = vld [vmem:[#allocation38_spill] sm:$0xff]  ;;  %v603_v61 = vrot.slane %v588_v35, 1  ;;  %v6863_v16 = vld [vmem:[#allocation45_spill] sm:$0xff] }
 0xfa4   :  { %v382_v0 = vadd.f32 %v4357_v7, %v350_v47  ;;  %v381_v33 = vadd.f32 %v4450_v25, %v349_v62  ;;  %v6844_v7 = vld [vmem:[#allocation23_spill] sm:$0xff]  ;;  %v6845_v25 = vld [vmem:[#allocation36_spill] sm:$0xff]  ;;  %v599_v37 = vrot.slane %v586_v3, 1  ;;  %v6858_v47 = vld [vmem:[#allocation30_spill] sm:$0xff] }
 0xfa5   :  { %v415_v23 = vadd.f32 %v6844_v7, %v383_v53  ;;  %v416_v51 = vadd.f32 %v6845_v25, %v384_v1  ;;  %v598_v34 = vrot.slane %v585_v55, 1  ;;  %v606_v42 = vrot.slane %v590_v26, 1  ;;  %v6864_v7 = vld [vmem:[#allocation33_spill] sm:$0xff]  ;;  %v6865_v25 = vld [vmem:[#allocation46_spill] sm:$0xff] }
 0xfa6   :  { %v413_v2 = vadd.f32 %v6841_v12, %v381_v33  ;;  %v414_v48 = vadd.f32 %v6842_v17, %v382_v0  ;;  %v602_v33 = vsel %vm597_vm3, %v599_v37, %v601_v56  ;;  %v6861_v12 = vld [vmem:[#allocation44_spill] sm:$0xff]  ;;  %v605_v55 = vsel %vm597_vm3, %v603_v61, %v604_v29  ;;  %v6872_v56 = vld [vmem:[#allocation55_spill] sm:$0xff]  ;;  %v6878_v61 = vld [vmem:[#allocation62_spill] sm:$0xff] }
 0xfa7   :  { %v448_v30 = vadd.f32 %v6848_v40, %v416_v51  ;;  %v447_v54 = vadd.f32 %v6849_v22, %v415_v23  ;;  %v600_v1 = vsel %vm597_vm3, %v598_v34, %v599_v37  ;;  %v6862_v17 = vld [vmem:[#allocation32_spill] sm:$0xff]  ;;  %v607_v4 = vsel %vm597_vm3, %v604_v29, %v606_v42  ;;  %v6877_v29 = vld [vmem:[#allocation57_spill] sm:$0xff] }
 0xfa8   :  { %v446_v19 = vadd.f32 %v6846_v8, %v414_v48  ;;  %v445_v21 = vadd.f32 %v6847_v9, %v413_v2  ;;  %v6866_v9 = vld [vmem:[#allocation50_spill] sm:$0xff] }
 0xfa9   :  { %v479_v36 = vadd.f32 %v6852_v57, %v447_v54  ;;  %v480_v58 = vadd.f32 %v6853_v10, %v448_v30  ;;  %v6868_v30 = vld [vmem:[#allocation51_spill] sm:$0xff]  ;;  %v6869_v54 = vld [vmem:[#allocation49_spill] sm:$0xff]  ;;  %v6874_v10 = vld [vmem:[#allocation58_spill] sm:$0xff] }
 0xfaa   :  { %v477_v18 = vadd.f32 %v6850_v43, %v445_v21  ;;  %v478_v5 = vadd.f32 %v6851_v15, %v446_v19  ;;  %v6873_v57 = vld [vmem:[#allocation53_spill] sm:$0xff] }
 0xfab   :  { %v512_v24 = vadd.f32 %v6856_v44, %v480_v58  ;;  %v511_v62 = vadd.f32 %v6857_v45, %v479_v36 }
 0xfac   :  { %v510_v59 = vadd.f32 %v6854_v38, %v478_v5  ;;  %v509_v60 = vadd.f32 %v6855_v41, %v477_v18  ;;  %v6870_v18 = vld [vmem:[#allocation54_spill] sm:$0xff]  ;;  %v6871_v5 = vld [vmem:[#allocation52_spill] sm:$0xff]  ;;  %v6876_v41 = vld [vmem:[#allocation59_spill] sm:$0xff] }
 0xfad   :  { %v543_v53 = vadd.f32 %v6860_v13, %v511_v62  ;;  %v544_v2 = vadd.f32 %v6861_v12, %v512_v24  ;;  %v6875_v38 = vld [vmem:[#allocation56_spill] sm:$0xff]  ;;  %v6880_v62 = vld [vmem:[#allocation63_spill] sm:$0xff] }
 0xfae   :  { %v541_v63 = vadd.f32 %v6858_v47, %v509_v60  ;;  %v542_v0 = vadd.f32 %v6859_v49, %v510_v59  ;;  %v6879_v24 = vld [vmem:[#allocation60_spill] sm:$0xff] }
 0xfaf   :  { %v576_v23 = vadd.f32 %v6864_v7, %v544_v2  ;;  %v575_v51 = vadd.f32 %v6865_v25, %v543_v53  ;;  %v6884_v53 = vld [vmem:[#allocation67_spill] sm:$0xff]  ;;  %v6885_v2 = vld [vmem:[#allocation65_spill] sm:$0xff] }
 0xfb0   :  { %v574_v48 = vadd.f32 %v6862_v17, %v542_v0  ;;  %v573_v3 = vadd.f32 %v6863_v16, %v541_v63  ;;  %v6881_v63 = vld [vmem:[#allocation61_spill] sm:$0xff]  ;;  %v6882_v0 = vld [vmem:[#allocation66_spill] sm:$0xff] }
 0xfb1   :  { %v615_v35 = vadd.f32 %v607_v4, %v576_v23  ;;  %v614_v40 = vadd.f32 %v605_v55, %v575_v51  ;;  %v6888_v55 = vld [vmem:[#allocation71_spill] sm:$0xff]  ;;  %v6889_v23 = vld [vmem:[#allocation69_spill] sm:$0xff]  ;;  %v6890_v51 = vld [vmem:[#allocation74_spill] sm:$0xff] }
 0xfb2   :  { %v613_v8 = vadd.f32 %v602_v33, %v574_v48  ;;  %v612_v19 = vadd.f32 %v600_v1, %v573_v3  ;;  %v6883_v1 = vld [vmem:[#allocation64_spill] sm:$0xff]  ;;  %v6886_v48 = vld [vmem:[#allocation70_spill] sm:$0xff] }
 0xfb3   :  { %v661_v22 = vadd.f32 %v6868_v30, %v615_v35  ;;  %v660_v43 = vadd.f32 %v6869_v54, %v614_v40  ;;  %v6887_v3 = vld [vmem:[#allocation68_spill] sm:$0xff]  ;;  %v6894_v40 = vld [vmem:[#allocation78_spill] sm:$0xff] }
 0xfb4   :  { %v659_v21 = vadd.f32 %v6866_v9, %v613_v8  ;;  %v658_v26 = vadd.f32 %v6867_v14, %v612_v19  ;;  %v6891_v19 = vld [vmem:[#allocation72_spill] sm:$0xff] }
 0xfb5   :  { %v707_v34 = vadd.f32 %v6872_v56, %v661_v22  ;;  %v706_v36 = vadd.f32 %v6873_v57, %v660_v43  ;;  %v6895_v22 = vld [vmem:[#allocation76_spill] sm:$0xff]  ;;  %v6896_v43 = vld [vmem:[#allocation79_spill] sm:$0xff] }
 0xfb6   :  { %v705_v15 = vadd.f32 %v6870_v18, %v659_v21  ;;  %v704_v37 = vadd.f32 %v6871_v5, %v658_v26  ;;  %v6892_v21 = vld [vmem:[#allocation75_spill] sm:$0xff]  ;;  %v6893_v26 = vld [vmem:[#allocation73_spill] sm:$0xff] }
 0xfb7   :  { %v753_v60 = vadd.f32 %v6876_v41, %v707_v34  ;;  %v752_v42 = vadd.f32 %v6877_v29, %v706_v36  ;;  %v6899_v34 = vld [vmem:[#allocation80_spill] sm:$0xff]  ;;  %v3923_v36 = vld [vmem:[#allocation2 + $0x8] sm:$0xff] }
 0xfb8   :  { %v751_v58 = vadd.f32 %v6874_v10, %v705_v15  ;;  %v750_v59 = vadd.f32 %v6875_v38, %v704_v37  ;;  %v6897_v15 = vld [vmem:[#allocation77_spill] sm:$0xff]  ;;  %v6898_v37 = vld [vmem:[#allocation82_spill] sm:$0xff]  ;;  %v6900_v10 = vld [vmem:[#allocation104_spill] sm:$0xff] }
 0xfb9   :  { %v799_v47 = vadd.f32 %v6880_v62, %v753_v60  ;;  %v798_v49 = vadd.f32 %v6881_v63, %v752_v42  ;;  %v1270_v38 = vmul.f32 %v4927_v39, %v6900_v10  ;;  %v6901_v60 = vld [vmem:[#allocation83_spill] sm:$0xff]  ;;  %v6902_v42 = vld [vmem:[#allocation81_spill] sm:$0xff] }
 0xfba   :  { %v797_v44 = vadd.f32 %v6878_v61, %v751_v58  ;;  %v796_v45 = vadd.f32 %v6879_v24, %v750_v59  ;;  %v1269_v58 = vmul.f32 %v3923_v36, %v6900_v10  ;;  %v3924_v59 = vld [vmem:[#allocation2] sm:$0xff] }
 0xfbb   :  { %v845_v12 = vadd.f32 %v6884_v53, %v799_v47  ;;  %v844_v17 = vadd.f32 %v6885_v2, %v798_v49  ;;  %v1268_v41 = vmul.f32 %v3924_v59, %v6900_v10  ;;  %v3925_v47 = vld [vmem:[#allocation2 + $0x20] sm:$0xff]  ;;  %v1273_v49 = vmul.f32 %v4932_v11, %v6900_v10 }
 0xfbc   :  { %v843_v33 = vadd.f32 %v6882_v0, %v797_v44  ;;  %v842_v13 = vadd.f32 %v6883_v1, %v796_v45  ;;  %v6903_v44 = vld [vmem:[#allocation86_spill] sm:$0xff]  ;;  %v6904_v45 = vld [vmem:[#allocation84_spill] sm:$0xff]  ;;  %v1272_v63 = vmul.f32 %v3925_v47, %v6900_v10  ;;  %v3926_v0 = vld [vmem:[#allocation2 + $0x18] sm:$0xff] }
 0xfbd   :  { %v891_v7 = vadd.f32 %v6888_v55, %v845_v12  ;;  %v890_v25 = vadd.f32 %v6889_v23, %v844_v17  ;;  %v1271_v39 = vmul.f32 %v3926_v0, %v6900_v10  ;;  %v6907_v12 = vld [vmem:[#allocation90_spill] sm:$0xff]  ;;  %v6908_v17 = vld [vmem:[#allocation88_spill] sm:$0xff]  ;;  %v6909_v55 = vld [vmem:[#allocation91_spill] sm:$0xff] }
 0xfbe   :  { %v889_v16 = vadd.f32 %v6886_v48, %v843_v33  ;;  %v888_v4 = vadd.f32 %v6887_v3, %v842_v13  ;;  %v6905_v33 = vld [vmem:[#allocation87_spill] sm:$0xff]  ;;  %v6906_v13 = vld [vmem:[#allocation85_spill] sm:$0xff]  ;;  %v1284_v3 = vrot.slane %v1270_v38, 2  ;;  %v6919_v36 = vld [vmem:[#allocation98_spill] sm:$0xff] }
 0xfbf   :  { %v937_v14 = vadd.f32 %v6892_v21, %v891_v7  ;;  %v936_v35 = vadd.f32 %v6893_v26, %v890_v25  ;;  %v6910_v23 = vld [vmem:[#allocation89_spill] sm:$0xff]  ;;  %v1289_v21 = vrot.slane %v1273_v49, 2  ;;  %v6913_v26 = vld [vmem:[#allocation95_spill] sm:$0xff] }
 0xfc0   :  { %v935_v8 = vadd.f32 %v6890_v51, %v889_v16  ;;  %v934_v9 = vadd.f32 %v6891_v19, %v888_v4  ;;  %v1282_v16 = vrot.slane %v1269_v58, 2  ;;  %v1281_v4 = vrot.slane %v1268_v41, 2  ;;  %v6911_v51 = vld [vmem:[#allocation94_spill] sm:$0xff]  ;;  %v6924_v47 = vld [vmem:[#allocation105_spill] sm:$0xff] }
 0xfc1   :  { %v983_v18 = vadd.f32 %v6896_v43, %v937_v14  ;;  %v982_v5 = vadd.f32 %v6897_v15, %v936_v35  ;;  %v1286_v14 = vrot.slane %v1271_v39, 2  ;;  %v6916_v43 = vld [vmem:[#allocation96_spill] sm:$0xff]  ;;  %v6920_v58 = vld [vmem:[#allocation102_spill] sm:$0xff] }
 0xfc2   :  { %v981_v30 = vadd.f32 %v6894_v40, %v935_v8  ;;  %v980_v54 = vadd.f32 %v6895_v22, %v934_v9  ;;  %v6912_v8 = vld [vmem:[#allocation92_spill] sm:$0xff]  ;;  %v1287_v9 = vrot.slane %v1272_v63, 2  ;;  %v6914_v40 = vld [vmem:[#allocation93_spill] sm:$0xff]  ;;  %v1285_v15 = vsel %vm1280_vm4, %v1282_v16, %v1284_v3  ;;  %v6930_v3 = vld [vmem:[#allocation110_spill] sm:$0xff] }
 0xfc3   :  { %v1029_v29 = vadd.f32 %v6901_v60, %v983_v18  ;;  %v1028_v61 = vadd.f32 %v6902_v42, %v982_v5  ;;  %v6915_v22 = vld [vmem:[#allocation100_spill] sm:$0xff]  ;;  %v1283_v5 = vsel %vm1280_vm4, %v1281_v4, %v1282_v16  ;;  %v6921_v60 = vld [vmem:[#allocation99_spill] sm:$0xff] }
 0xfc4   :  { %v1027_v56 = vadd.f32 %v6898_v37, %v981_v30  ;;  %v1026_v57 = vadd.f32 %v6899_v34, %v980_v54  ;;  %v6917_v37 = vld [vmem:[#allocation101_spill] sm:$0xff]  ;;  %v1290_v59 = vsel %vm1280_vm4, %v1287_v9, %v1289_v21  ;;  %v1288_v41 = vsel %vm1280_vm4, %v1286_v14, %v1287_v9  ;;  %v6922_v42 = vld [vmem:[#allocation103_spill] sm:$0xff]  ;;  %v6925_v39 = vld [vmem:[#allocation108_spill] sm:$0xff] }
 0xfc5   :  { %v1075_v1 = vadd.f32 %v6905_v33, %v1029_v29  ;;  %v1074_v53 = vadd.f32 %v6906_v13, %v1028_v61  ;;  %v6918_v34 = vld [vmem:[#allocation97_spill] sm:$0xff]  ;;  %v6935_v9 = vld [vmem:[#allocation119_spill] sm:$0xff] }
 0xfc6   :  { %v1073_v24 = vadd.f32 %v6903_v44, %v1027_v56  ;;  %v1072_v62 = vadd.f32 %v6904_v45, %v1026_v57  ;;  %v6923_v45 = vld [vmem:[#allocation107_spill] sm:$0xff]  ;;  %v6936_v14 = vld [vmem:[#allocation117_spill] sm:$0xff] }
 0xfc7   :  { %v1121_v7 = vadd.f32 %v6909_v55, %v1075_v1  ;;  %v1120_v25 = vadd.f32 %v6910_v23, %v1074_v53  ;;  %v6926_v1 = vld [vmem:[#allocation106_spill] sm:$0xff]  ;;  %v6927_v53 = vld [vmem:[#allocation111_spill] sm:$0xff]  ;;  %v6932_v23 = vld [vmem:[#allocation113_spill] sm:$0xff] }
 0xfc8   :  { %v1119_v2 = vadd.f32 %v6907_v12, %v1073_v24  ;;  %v1118_v48 = vadd.f32 %v6908_v17, %v1072_v62  ;;  %v6931_v55 = vld [vmem:[#allocation115_spill] sm:$0xff] }
 0xfc9   :  { %v1167_v35 = vadd.f32 %v6913_v26, %v1121_v7  ;;  %v1166_v30 = vadd.f32 %v6914_v40, %v1120_v25 }
 0xfca   :  { %v1165_v11 = vadd.f32 %v6911_v51, %v1119_v2  ;;  %v1164_v19 = vadd.f32 %v6912_v8, %v1118_v48  ;;  %v6928_v2 = vld [vmem:[#allocation109_spill] sm:$0xff]  ;;  %v6929_v48 = vld [vmem:[#allocation112_spill] sm:$0xff]  ;;  %v6934_v8 = vld [vmem:[#allocation114_spill] sm:$0xff] }
 0xfcb   :  { %v1213_v56 = vadd.f32 %v6917_v37, %v1167_v35  ;;  %v1212_v57 = vadd.f32 %v6918_v34, %v1166_v30  ;;  %v6933_v51 = vld [vmem:[#allocation116_spill] sm:$0xff]  ;;  %v6938_v30 = vld [vmem:[#allocation118_spill] sm:$0xff]  ;;  %v6941_v34 = vld [vmem:[#allocation125_spill] sm:$0xff] }
 0xfcc   :  { %v1211_v54 = vadd.f32 %v6915_v22, %v1165_v11  ;;  %v1210_v18 = vadd.f32 %v6916_v43, %v1164_v19  ;;  %v6937_v35 = vld [vmem:[#allocation120_spill] sm:$0xff]  ;;  %v6939_v43 = vld [vmem:[#allocation121_spill] sm:$0xff]  ;;  %v6940_v37 = vld [vmem:[#allocation122_spill] sm:$0xff] }
 0xfcd   :  { %v1259_v29 = vadd.f32 %v6921_v60, %v1213_v56  ;;  %v1258_v61 = vadd.f32 %v6922_v42, %v1212_v57 }
 0xfce   :  { %v1257_v10 = vadd.f32 %v6919_v36, %v1211_v54  ;;  %v1256_v38 = vadd.f32 %v6920_v58, %v1210_v18  ;;  %v6942_v36 = vld [vmem:[#allocation123_spill] sm:$0xff]  ;;  %v6943_v58 = vld [vmem:[#allocation126_spill] sm:$0xff] }
 0xfcf   :  { %v1298_v49 = vadd.f32 %v1290_v59, %v1259_v29  ;;  %v1297_v0 = vadd.f32 %v1288_v41, %v1258_v61  ;;  %v6944_v59 = vld [vmem:[#allocation124_spill] sm:$0xff]  ;;  %v6945_v29 = vld [vmem:[#allocation127_spill] sm:$0xff] }
 0xfd0   :  { %v1296_v44 = vadd.f32 %v1285_v15, %v1257_v10  ;;  %v1295_v24 = vadd.f32 %v1283_v5, %v1256_v38  ;;  %v1884_v15 = vpop.permute.xlu1 %1883 }
 0xfd1   :  { %v1344_v33 = vadd.f32 %v6925_v39, %v1298_v49  ;;  %v1343_v13 = vadd.f32 %v6926_v1, %v1297_v0  ;;  %v6950_v0 = vld [vmem:[#allocation131_spill] sm:$0xff]  ;;  %v6951_v1 = vld [vmem:[#allocation133_spill] sm:$0xff] }
 0xfd2   :  { %v1342_v62 = vadd.f32 %v6923_v45, %v1296_v44  ;;  %v1341_v63 = vadd.f32 %v6924_v47, %v1295_v24  ;;  %v6947_v44 = vld [vmem:[#allocation128_spill] sm:$0xff]  ;;  %v6948_v45 = vld [vmem:[#allocation130_spill] sm:$0xff] }
 0xfd3   :  { %v1390_v16 = vadd.f32 %v6929_v48, %v1344_v33  ;;  %v1389_v4 = vadd.f32 %v6930_v3, %v1343_v13  ;;  %v6954_v48 = vld [vmem:[#allocation136_spill] sm:$0xff] }
 0xfd4   :  { %v1388_v12 = vadd.f32 %v6927_v53, %v1342_v62  ;;  %v1387_v17 = vadd.f32 %v6928_v2, %v1341_v63  ;;  %v1888_v47 = vpop.permute.xlu1 %1887  ;;  %v6949_v63 = vld [vmem:[#allocation132_spill] sm:$0xff] }
 0xfd5   :  { %v1436_v11 = vadd.f32 %v6933_v51, %v1390_v16  ;;  %v1435_v19 = vadd.f32 %v6934_v8, %v1389_v4  ;;  %v6955_v4 = vld [vmem:[#allocation138_spill] sm:$0xff]  ;;  %v6957_v51 = vld [vmem:[#allocation139_spill] sm:$0xff] }
 0xfd6   :  { %v1434_v7 = vadd.f32 %v6931_v55, %v1388_v12  ;;  %v1433_v25 = vadd.f32 %v6932_v23, %v1387_v17  ;;  %v6953_v12 = vld [vmem:[#allocation134_spill] sm:$0xff] }
 0xfd7   :  { %v1482_v40 = vadd.f32 %v6937_v35, %v1436_v11  ;;  %v1481_v22 = vadd.f32 %v6938_v30, %v1435_v19  ;;  %v6958_v11 = vld [vmem:[#allocation141_spill] sm:$0xff]  ;;  %v6959_v19 = vld [vmem:[#allocation140_spill] sm:$0xff] }
 0xfd8   :  { %v1480_v21 = vadd.f32 %v6935_v9, %v1434_v7  ;;  %v1479_v26 = vadd.f32 %v6936_v14, %v1433_v25  ;;  %v6956_v7 = vld [vmem:[#allocation137_spill] sm:$0xff]  ;;  %v6960_v14 = vld [vmem:[#allocation142_spill] sm:$0xff] }
 0xfd9   :  { %v1528_v5 = vadd.f32 %v4974_v46, %v1482_v40  ;;  %v1527_v56 = vadd.f32 %v6940_v37, %v1481_v22  ;;  %v6961_v40 = vld [vmem:[#allocation143_spill] sm:$0xff] }
 0xfda   :  { %v1526_v54 = vadd.f32 %v4972_v27, %v1480_v21  ;;  %v1525_v18 = vadd.f32 %v6939_v43, %v1479_v26  ;;  %v6946_v27 = vld [vmem:[#allocation129_spill] sm:$0xff] }
 0xfdb   :  { %v1574_v38 = vadd.f32 %v6943_v58, %v1528_v5  ;;  %v1573_v41 = vadd.f32 %v6944_v59, %v1527_v56  ;;  %v6963_v5 = vld [vmem:[#allocation145_spill] sm:$0xff] }
 0xfdc   :  { %v1572_v57 = vadd.f32 %v6941_v34, %v1526_v54  ;;  %v1571_v10 = vadd.f32 %v6942_v36, %v1525_v18  ;;  %v6962_v54 = vld [vmem:[#allocation144_spill] sm:$0xff] }
 0xfdd   :  { %v1620_v61 = vadd.f32 %v6946_v27, %v1574_v38  ;;  %v1619_v24 = vadd.f32 %v6947_v44, %v1573_v41 }
 0xfde   :  { %v1618_v60 = vadd.f32 %v5024_v20, %v1572_v57  ;;  %v1617_v42 = vadd.f32 %v6945_v29, %v1571_v10  ;;  %v6952_v20 = vld [vmem:[#allocation135_spill] sm:$0xff] }
 0xfdf   :  { %v1666_v49 = vadd.f32 %v6949_v63, %v1620_v61  ;;  %v1665_v39 = vadd.f32 %v6950_v0, %v1619_v24  ;;  %v6965_v61 = vld [vmem:[#allocation15_spill] sm:$0xff]  ;;  %v6966_v24 = vld [vmem:[#allocation16_spill] sm:$0xff] }
 0xfe0   :  { %v1664_v46 = vadd.f32 %v5049_v28, %v1618_v60  ;;  %v1663_v62 = vadd.f32 %v6948_v45, %v1617_v42  ;;  %v6964_v42 = vld [vmem:[#allocation14_spill] sm:$0xff]  ;;  %v6967_v45 = vld [vmem:[#allocation17_spill] sm:$0xff] }
 0xfe1   :  { %v1712_v53 = vadd.f32 %v6952_v20, %v1666_v49  ;;  %v1711_v2 = vadd.f32 %v6953_v12, %v1665_v39 }
 0xfe2   :  { %v1710_v33 = vadd.f32 %v5074_v6, %v1664_v46  ;;  %v1709_v13 = vadd.f32 %v6951_v1, %v1663_v62 }
 0xfe3   :  { %v1758_v55 = vadd.f32 %v6955_v4, %v1712_v53  ;;  %v1757_v23 = vadd.f32 %v6956_v7, %v1711_v2 }
 0xfe4   :  { %v1756_v17 = vadd.f32 %v5099_v32, %v1710_v33  ;;  %v1755_v16 = vadd.f32 %v6954_v48, %v1709_v13 }
 0xfe5   :  { %v1804_v8 = vadd.f32 %v6958_v11, %v1758_v55  ;;  %v1803_v9 = vadd.f32 %v6959_v19, %v1757_v23  ;;  %v6968_v11 = vld [vmem:[#allocation19_spill] sm:$0xff] }
 0xfe6   :  { %v1802_v25 = vadd.f32 %v5124_v50, %v1756_v17  ;;  %v1801_v6 = vadd.f32 %v6957_v51, %v1755_v16 }
 0xfe7   :  { %v1850_v35 = vadd.f32 %v5151_v31, %v1804_v8  ;;  %v1849_v30 = vadd.f32 %v6961_v40, %v1803_v9 }
 0xfe8   :  { %v1848_v21 = vadd.f32 %v5149_v52, %v1802_v25  ;;  %v1847_v32 = vadd.f32 %v6960_v14, %v1801_v6 }
 0xfe9   :  { %v1896_v50 = vadd.f32 %v1888_v47, %v1850_v35  ;;  %v1895_v37 = vadd.f32 %v6963_v5, %v1849_v30 }
 0xfea   :  { %v1894_v22 = vadd.f32 %v1884_v15, %v1848_v21  ;;  %v1893_v43 = vadd.f32 %v6962_v54, %v1847_v32  ;;  %v5375_v15 = vld [vmem:[#allocation9] sm:$0xff] }
 0xfeb   :  { %v2011_v27 = vrot.slane %v5375_v15, %v6964_v42  ;;  %v1995_v44 = vrot.slane %v5375_v15, %v6965_v61  ;;  %v2075_v46 = vrot.slane %v5375_v15, %v6966_v24  ;;  %v2043_v62 = vrot.slane %v5375_v15, %v6967_v45 }
 0xfec   :  { %v2107_v8 = vrot.slane %v5375_v15, %v6968_v11 }
0x1004   :  { %v1930_v28 = vpop.permute.xlu0 %1929  ;;  %v1928_v3 = vpop.permute.xlu1 %1927 }
0x1005   :  { %v1940_v56 = vadd.f32 %v1930_v28, %v1894_v22  ;;  %v1939_v34 = vadd.f32 %v1928_v3, %v1893_v43  ;;  %v6969_v43 = vld [vmem:[#allocation18_spill] sm:$0xff] }
0x1008   :  { %v1932_v26 = vpop.permute.xlu1 %1931  ;;  %v1934_v18 = vpop.permute.xlu0 %1933 }
0x1009   :  { %v1942_v36 = vadd.f32 %v1934_v18, %v1896_v50  ;;  %v1941_v10 = vadd.f32 %v1932_v26, %v1895_v37  ;;  %v2139_v18 = vrot.slane %v5375_v15, %v6969_v43 }
0x100c   :  { %v1950_v57 = vpop.permute.xlu1 %1949 }
0x100d   :  { %v1953_v52 = vadd.f32 %v1950_v57, %v1940_v56  ;;  %v1952_v58 = vadd.f32 %v1950_v57, %v1939_v34  ;;  %v1955_v41 = vadd.f32 %v1950_v57, %v1942_v36  ;;  %v1954_v31 = vadd.f32 %v1950_v57, %v1941_v10 }
0x100f   :  { %v1957_v38 = vmax.f32 %v1953_v52, 0.0  ;;  %v1956_v59 = vmax.f32 %v1952_v58, 0.0  ;;  %v1959_v60 = vmax.f32 %v1955_v41, 0.0  ;;  %v1958_v29 = vmax.f32 %v1954_v31, 0.0  ;;  %v6972_v31 = vld [vmem:[#allocation21_spill] sm:$0xff] }
0x1011   :  { %1966 = vrot.lane.b32.xlu1 %v1957_v38, %s4047_s11  ;;  %1964 = vrot.lane.b32.xlu0 %v1956_v59, %s4047_s11 }
0x1015   :  { %1970 = vrot.lane.b32.xlu1 %v1959_v60, %s4047_s11  ;;  %1968 = vrot.lane.b32.xlu0 %v1958_v29, %s4047_s11  ;;  %v2171_v60 = vrot.slane %v5375_v15, %v6972_v31 }
0x1019   :  { %2013 = vrot.lane.b32.xlu1 %v2011_v27, %s4041_s3  ;;  %1997 = vrot.lane.b32.xlu0 %v1995_v44, %s4042_s29 }
0x101d   :  { %2077 = vrot.lane.b32.xlu1 %v2075_v46, %s4043_s7  ;;  %2045 = vrot.lane.b32.xlu0 %v2043_v62, %s4044_s8 }
0x1083   :  { %v1967_v47 = vpop.permute.xlu1 %1966  ;;  %v1965_v63 = vpop.permute.xlu0 %1964 }
0x1084   :  { %1977 = vst.msk [vmem:[#allocation3 + $0x9] sm:$0xff] %vm96_vm2, %v1967_v47  ;;  %1976 = vst.msk [vmem:[#allocation3 + $0x1] sm:$0xff] %vm96_vm2, %v1965_v63 }
0x1087   :  { %v1971_v49 = vpop.permute.xlu1 %1970  ;;  %v1969_v0 = vpop.permute.xlu0 %1968 }
0x1088   :  { %1979 = vst.msk [vmem:[#allocation3 + $0x21] sm:$0xff] %vm96_vm2, %v1971_v49  ;;  %1978 = vst.msk [vmem:[#allocation3 + $0x19] sm:$0xff] %vm96_vm2, %v1969_v0 }
0x108b   :  { %v5395_v39 = vld [vmem:[#allocation3] sm:$0xff]  ;;  %v5397_v33 = vld [vmem:[#allocation3 + $0x8] sm:$0xff]  ;;  %v2014_v1 = vpop.permute.xlu1 %2013  ;;  %v5399_v13 = vpop.permute.xlu0 %1997 }
0x108c   :  { %v2017_v20 = vmul.f32 %v2014_v1, %v5397_v33  ;;  %v2016_v53 = vmul.f32 %v2014_v1, %v5395_v39 }
0x108e   :  { %2026 = vrot.lane.b32.xlu1 %v2017_v20, %s4054_s17  ;;  %2024 = vrot.lane.b32.xlu0 %v2016_v53, %s4054_s17 }
0x108f   :  { %v5405_v12 = vld [vmem:[#allocation3 + $0x18] sm:$0xff]  ;;  %v5407_v2 = vld [vmem:[#allocation3 + $0x20] sm:$0xff]  ;;  %v2046_v16 = vpop.permute.xlu0 %2045  ;;  %v2078_v7 = vpop.permute.xlu1 %2077 }
0x1090   :  { %v2019_v17 = vmul.f32 %v2014_v1, %v5407_v2  ;;  %v2018_v48 = vmul.f32 %v2014_v1, %v5405_v12  ;;  %v2049_v28 = vmul.f32 %v2046_v16, %v5397_v33  ;;  %v2048_v3 = vmul.f32 %v2046_v16, %v5395_v39  ;;  %v6975_v1 = vld [vmem:[#allocation20_spill] sm:$0xff] }
0x1091   :  { %v2051_v4 = vmul.f32 %v2046_v16, %v5407_v2  ;;  %v2050_v55 = vmul.f32 %v2046_v16, %v5405_v12  ;;  %v2080_v23 = vmul.f32 %v2078_v7, %v5395_v39  ;;  %v2081_v25 = vmul.f32 %v2078_v7, %v5397_v33 }
0x1092   :  { %2030 = vrot.lane.b32.xlu1 %v2019_v17, %s4054_s17  ;;  %2028 = vrot.lane.b32.xlu0 %v2018_v48, %s4054_s17  ;;  %v2082_v51 = vmul.f32 %v2078_v7, %v5405_v12  ;;  %v2083_v6 = vmul.f32 %v2078_v7, %v5407_v2  ;;  %v2203_v20 = vrot.slane %v5375_v15, %v6975_v1  ;;  %v5513_v15 = vld [vmem:[#allocation9 + $0x8] sm:$0x7f] }
0x1096   :  { %2058 = vrot.lane.b32.xlu0 %v2049_v28, %s4055_s18  ;;  %2056 = vrot.lane.b32.xlu1 %v2048_v3, %s4055_s18 }
0x109a   :  { %2062 = vrot.lane.b32.xlu0 %v2051_v4, %s4055_s18  ;;  %2060 = vrot.lane.b32.xlu1 %v2050_v55, %s4055_s18 }
0x109e   :  { %2088 = vrot.lane.b32.xlu0 %v2080_v23, %s4056_s19  ;;  %2090 = vrot.lane.b32.xlu1 %v2081_v25, %s4056_s19  ;;  %v2235_v23 = vrot.slane %v5513_v15, %v6965_v61 }
0x10a2   :  { %2092 = vrot.lane.b32.xlu0 %v2082_v51, %s4056_s19  ;;  %2094 = vrot.lane.b32.xlu1 %v2083_v6, %s4056_s19 }
0x10a6   :  { %2109 = vrot.lane.b32.xlu0 %v2107_v8, %s4046_s10 }
0x1100   :  { %v5432_v19 = vpop.permute.xlu0 %2024  ;;  %v5455_v50 = vpop.permute.xlu1 %2026 }
0x1104   :  { %v5434_v9 = vpop.permute.xlu0 %2028  ;;  %v5457_v5 = vpop.permute.xlu1 %2030 }
0x1108   :  { %v5436_v21 = vpop.permute.xlu0 %2058  ;;  %v5459_v37 = vpop.permute.xlu1 %2056 }
0x110c   :  { %v5438_v14 = vpop.permute.xlu0 %2062  ;;  %v5461_v56 = vpop.permute.xlu1 %2060 }
0x1110   :  { %v5440_v32 = vpop.permute.xlu0 %2088  ;;  %v5463_v34 = vpop.permute.xlu1 %2090 }
0x1114   :  { %v5442_v26 = vpop.permute.xlu0 %2092  ;;  %v5465_v57 = vpop.permute.xlu1 %2094 }
0x1118   :  { %v2110_v35 = vpop.permute.xlu0 %2109 }
0x1119   :  { %v2113_v40 = vmul.f32 %v2110_v35, %v5397_v33  ;;  %v2112_v30 = vmul.f32 %v2110_v35, %v5395_v39  ;;  %v2115_v22 = vmul.f32 %v2110_v35, %v5407_v2  ;;  %v2114_v54 = vmul.f32 %v2110_v35, %v5405_v12 }
0x111b   :  { %2122 = vrot.lane.b32.xlu0 %v2113_v40, %s4057_s20  ;;  %2120 = vrot.lane.b32.xlu1 %v2112_v30, %s4057_s20 }
0x111f   :  { %2126 = vrot.lane.b32.xlu0 %v2115_v22, %s4057_s20  ;;  %2124 = vrot.lane.b32.xlu1 %v2114_v54, %s4057_s20 }
0x1123   :  { %2141 = vrot.lane.b32.xlu1 %v2139_v18, %s4045_s9  ;;  %v2267_v18 = vrot.slane %v5513_v15, %v6964_v42 }
0x118d   :  { %v5467_v36 = vpop.permute.xlu1 %2120  ;;  %v5482_v29 = vpop.permute.xlu0 %2122 }
0x118e   :  { %6970 = vst [vmem:[#allocation34_spill] sm:$0xff] %v5467_v36 }
0x1191   :  { %v5469_v10 = vpop.permute.xlu1 %2124  ;;  %v5484_v27 = vpop.permute.xlu0 %2126 }
0x1192   :  { %6971 = vst [vmem:[#allocation22_spill] sm:$0xff] %v5469_v10 }
0x1195   :  { %v2142_v52 = vpop.permute.xlu1 %2141 }
0x1196   :  { %v2145_v58 = vmul.f32 %v2142_v52, %v5397_v33  ;;  %v2144_v38 = vmul.f32 %v2142_v52, %v5395_v39  ;;  %v2147_v59 = vmul.f32 %v2142_v52, %v5407_v2  ;;  %v2146_v41 = vmul.f32 %v2142_v52, %v5405_v12 }
0x1198   :  { %2154 = vrot.lane.b32.xlu1 %v2145_v58, %s4058_s22  ;;  %2152 = vrot.lane.b32.xlu0 %v2144_v38, %s4058_s22 }
0x119c   :  { %2158 = vrot.lane.b32.xlu1 %v2147_v59, %s4058_s22  ;;  %2156 = vrot.lane.b32.xlu0 %v2146_v41, %s4058_s22 }
0x11a0   :  { %2173 = vrot.lane.b32.xlu0 %v2171_v60, %s4047_s11 }
0x120a   :  { %v5486_v44 = vpop.permute.xlu0 %2152  ;;  %v5501_v53 = vpop.permute.xlu1 %2154 }
0x120b   :  { %6973 = vst [vmem:[#allocation35_spill] sm:$0xff] %v5486_v44 }
0x120e   :  { %v5488_v46 = vpop.permute.xlu0 %2156  ;;  %v5503_v17 = vpop.permute.xlu1 %2158 }
0x120f   :  { %6974 = vst [vmem:[#allocation47_spill] sm:$0xff] %v5488_v46 }
0x1212   :  { %v2174_v62 = vpop.permute.xlu0 %2173 }
0x1213   :  { %v2177_v47 = vmul.f32 %v2174_v62, %v5397_v33  ;;  %v2176_v63 = vmul.f32 %v2174_v62, %v5395_v39  ;;  %v2179_v49 = vmul.f32 %v2174_v62, %v5407_v2  ;;  %v2178_v0 = vmul.f32 %v2174_v62, %v5405_v12 }
0x1215   :  { %2186 = vrot.lane.b32.xlu0 %v2177_v47, %s4059_s23  ;;  %2184 = vrot.lane.b32.xlu1 %v2176_v63, %s4059_s23 }
0x1219   :  { %2190 = vrot.lane.b32.xlu0 %v2179_v49, %s4059_s23  ;;  %2188 = vrot.lane.b32.xlu1 %v2178_v0, %s4059_s23  ;;  %v2299_v49 = vrot.slane %v5513_v15, %v6967_v45 }
0x121d   :  { %2205 = vrot.lane.b32.xlu1 %v2203_v20, %s4038_s6 }
0x1287   :  { %v5505_v48 = vpop.permute.xlu1 %2184  ;;  %v5522_v25 = vpop.permute.xlu0 %2186 }
0x1288   :  { %6976 = vst [vmem:[#allocation23_spill] sm:$0xff] %v5505_v48 }
0x128b   :  { %v5507_v16 = vpop.permute.xlu1 %2188  ;;  %v5524_v51 = vpop.permute.xlu0 %2190 }
0x128c   :  { %6977 = vst [vmem:[#allocation36_spill] sm:$0xff] %v5507_v16 }
0x128f   :  { %v2206_v28 = vpop.permute.xlu1 %2205 }
0x1290   :  { %v2209_v3 = vmul.f32 %v2206_v28, %v5397_v33  ;;  %v2208_v4 = vmul.f32 %v2206_v28, %v5395_v39  ;;  %v2211_v55 = vmul.f32 %v2206_v28, %v5407_v2  ;;  %v2210_v7 = vmul.f32 %v2206_v28, %v5405_v12 }
0x1292   :  { %2218 = vrot.lane.b32.xlu1 %v2209_v3, %s4060_s24  ;;  %2216 = vrot.lane.b32.xlu0 %v2208_v4, %s4060_s24 }
0x1296   :  { %2222 = vrot.lane.b32.xlu1 %v2211_v55, %s4060_s24  ;;  %2220 = vrot.lane.b32.xlu0 %v2210_v7, %s4060_s24 }
0x129a   :  { %2237 = vrot.lane.b32.xlu0 %v2235_v23, %s4049_s13 }
0x1304   :  { %v5526_v6 = vpop.permute.xlu0 %2216  ;;  %v5541_v52 = vpop.permute.xlu1 %2218 }
0x1305   :  { %6978 = vst [vmem:[#allocation24_spill] sm:$0xff] %v5526_v6 }
0x1308   :  { %v5528_v8 = vpop.permute.xlu0 %2220  ;;  %v5543_v58 = vpop.permute.xlu1 %2222 }
0x1309   :  { %6979 = vst [vmem:[#allocation37_spill] sm:$0xff] %v5528_v8 }
0x130c   :  { %v2238_v35 = vpop.permute.xlu0 %2237 }
0x130d   :  { %v2241_v40 = vmul.f32 %v2238_v35, %v5397_v33  ;;  %v2240_v30 = vmul.f32 %v2238_v35, %v5395_v39  ;;  %v2243_v22 = vmul.f32 %v2238_v35, %v5407_v2  ;;  %v2242_v54 = vmul.f32 %v2238_v35, %v5405_v12 }
0x130f   :  { %2250 = vrot.lane.b32.xlu0 %v2241_v40, %s4061_s25  ;;  %2248 = vrot.lane.b32.xlu1 %v2240_v30, %s4061_s25  ;;  %v2331_v40 = vrot.slane %v5513_v15, %v6966_v24 }
0x1313   :  { %2254 = vrot.lane.b32.xlu0 %v2243_v22, %s4061_s25  ;;  %2252 = vrot.lane.b32.xlu1 %v2242_v54, %s4061_s25 }
0x1317   :  { %2269 = vrot.lane.b32.xlu1 %v2267_v18, %s4048_s12 }
0x1381   :  { %v5545_v38 = vpop.permute.xlu1 %2248  ;;  %v5560_v0 = vpop.permute.xlu0 %2250 }
0x1382   :  { %6980 = vst [vmem:[#allocation25_spill] sm:$0xff] %v5545_v38 }
0x1385   :  { %v5547_v59 = vpop.permute.xlu1 %2252  ;;  %v5562_v20 = vpop.permute.xlu0 %2254 }
0x1386   :  { %6981 = vst [vmem:[#allocation38_spill] sm:$0xff] %v5547_v59 }
0x1389   :  { %v2270_v41 = vpop.permute.xlu1 %2269 }
0x138a   :  { %v2273_v60 = vmul.f32 %v2270_v41, %v5397_v33  ;;  %v2272_v62 = vmul.f32 %v2270_v41, %v5395_v39  ;;  %v2275_v47 = vmul.f32 %v2270_v41, %v5407_v2  ;;  %v2274_v63 = vmul.f32 %v2270_v41, %v5405_v12 }
0x138c   :  { %2282 = vrot.lane.b32.xlu1 %v2273_v60, %s4062_s26  ;;  %2280 = vrot.lane.b32.xlu0 %v2272_v62, %s4062_s26 }
0x1390   :  { %2286 = vrot.lane.b32.xlu1 %v2275_v47, %s4062_s26  ;;  %2284 = vrot.lane.b32.xlu0 %v2274_v63, %s4062_s26 }
0x1394   :  { %2301 = vrot.lane.b32.xlu0 %v2299_v49, %s4051_s15  ;;  %v2363_v49 = vrot.slane %v5513_v15, %v6968_v11 }
0x13fe   :  { %v5564_v28 = vpop.permute.xlu0 %2280  ;;  %v5579_v30 = vpop.permute.xlu1 %2282 }
0x13ff   :  { %6982 = vst [vmem:[#allocation26_spill] sm:$0xff] %v5564_v28 }
0x1402   :  { %v5566_v3 = vpop.permute.xlu0 %2284  ;;  %v5581_v22 = vpop.permute.xlu1 %2286 }
0x1403   :  { %6983 = vst [vmem:[#allocation39_spill] sm:$0xff] %v5566_v3 }
0x1406   :  { %v2302_v4 = vpop.permute.xlu0 %2301 }
0x1407   :  { %v2305_v55 = vmul.f32 %v2302_v4, %v5397_v33  ;;  %v2304_v7 = vmul.f32 %v2302_v4, %v5395_v39  ;;  %v2307_v23 = vmul.f32 %v2302_v4, %v5407_v2  ;;  %v2306_v35 = vmul.f32 %v2302_v4, %v5405_v12 }
0x1409   :  { %2314 = vrot.lane.b32.xlu0 %v2305_v55, %s4063_s27  ;;  %2312 = vrot.lane.b32.xlu1 %v2304_v7, %s4063_s27 }
0x140d   :  { %2318 = vrot.lane.b32.xlu0 %v2307_v23, %s4063_s27  ;;  %2316 = vrot.lane.b32.xlu1 %v2306_v35, %s4063_s27 }
0x1411   :  { %2333 = vrot.lane.b32.xlu1 %v2331_v40, %s4050_s14 }
0x147b   :  { %v5583_v54 = vpop.permute.xlu1 %2312  ;;  %v5598_v4 = vpop.permute.xlu0 %2314 }
0x147c   :  { %6984 = vst [vmem:[#allocation27_spill] sm:$0xff] %v5583_v54  ;;  %v5664_v54 = vld [vmem:[#allocation3 + $0x10] sm:$0x3] }
0x147f   :  { %v5585_v18 = vpop.permute.xlu1 %2316  ;;  %v5600_v55 = vpop.permute.xlu0 %2318 }
0x1480   :  { %6985 = vst [vmem:[#allocation40_spill] sm:$0xff] %v5585_v18 }
0x1483   :  { %v2334_v41 = vpop.permute.xlu1 %2333 }
0x1484   :  { %v2337_v60 = vmul.f32 %v2334_v41, %v5397_v33  ;;  %v2336_v62 = vmul.f32 %v2334_v41, %v5395_v39  ;;  %v2339_v47 = vmul.f32 %v2334_v41, %v5407_v2  ;;  %v2338_v63 = vmul.f32 %v2334_v41, %v5405_v12 }
0x1486   :  { %2346 = vrot.lane.b32.xlu1 %v2337_v60, %s4064_s28  ;;  %2344 = vrot.lane.b32.xlu0 %v2336_v62, %s4064_s28 }
0x148a   :  { %2350 = vrot.lane.b32.xlu1 %v2339_v47, %s4064_s28  ;;  %2348 = vrot.lane.b32.xlu0 %v2338_v63, %s4064_s28  ;;  %v2395_v47 = vrot.slane %v5513_v15, %v6969_v43 }
0x148e   :  { %2365 = vrot.lane.b32.xlu0 %v2363_v49, %s6986_s2 }
0x14f8   :  { %v5602_v7 = vpop.permute.xlu0 %2344  ;;  %v5617_v63 = vpop.permute.xlu1 %2346 }
0x14f9   :  { %6987 = vst [vmem:[#allocation28_spill] sm:$0xff] %v5602_v7  ;;  %6990 = vst [vmem:[#allocation29_spill] sm:$0xff] %v5617_v63 }
0x14fc   :  { %v5604_v23 = vpop.permute.xlu0 %2348  ;;  %v5619_v49 = vpop.permute.xlu1 %2350 }
0x14fd   :  { %6988 = vst [vmem:[#allocation41_spill] sm:$0xff] %v5604_v23  ;;  %6991 = vst [vmem:[#allocation42_spill] sm:$0xff] %v5619_v49 }
0x1500   :  { %v2366_v35 = vpop.permute.xlu0 %2365 }
0x1501   :  { %v2369_v40 = vmul.f32 %v2366_v35, %v5397_v33  ;;  %v2368_v41 = vmul.f32 %v2366_v35, %v5395_v39  ;;  %v2371_v60 = vmul.f32 %v2366_v35, %v5407_v2  ;;  %v2370_v62 = vmul.f32 %v2366_v35, %v5405_v12 }
0x1503   :  { %2378 = vrot.lane.b32.xlu0 %v2369_v40, %s6989_s0  ;;  %2376 = vrot.lane.b32.xlu1 %v2368_v41, %s6989_s0 }
0x1507   :  { %2382 = vrot.lane.b32.xlu0 %v2371_v60, %s6989_s0  ;;  %2380 = vrot.lane.b32.xlu1 %v2370_v62, %s6989_s0 }
0x150b   :  { %2397 = vrot.lane.b32.xlu1 %v2395_v47, %s6834_s1 }
0x1575   :  { %v5621_v40 = vpop.permute.xlu1 %2376 }
0x1576   :  { %6992 = vst [vmem:[#allocation30_spill] sm:$0xff] %v5621_v40  ;;  %v5636_v40 = vpop.permute.xlu0 %2378 }
0x1577   :  { %6995 = vst [vmem:[#allocation31_spill] sm:$0xff] %v5636_v40 }
0x1579   :  { %v5623_v41 = vpop.permute.xlu1 %2380 }
0x157a   :  { %6993 = vst [vmem:[#allocation43_spill] sm:$0xff] %v5623_v41  ;;  %v2427_v41 = vrot.slane %v5513_v15, %v6972_v31  ;;  %v5638_v7 = vpop.permute.xlu0 %2382  ;;  %v5648_v15 = vld [vmem:[#allocation9 + $0x10] sm:$0xff] }
0x157b   :  { %6996 = vst [vmem:[#allocation44_spill] sm:$0xff] %v5638_v7 }
0x157d   :  { %v2398_v23 = vpop.permute.xlu1 %2397 }
0x157e   :  { %v2401_v35 = vmul.f32 %v2398_v23, %v5397_v33  ;;  %v2400_v60 = vmul.f32 %v2398_v23, %v5395_v39  ;;  %v2403_v62 = vmul.f32 %v2398_v23, %v5407_v2  ;;  %v2402_v47 = vmul.f32 %v2398_v23, %v5405_v12 }
0x1580   :  { %2410 = vrot.lane.b32.xlu1 %v2401_v35, %s6994_s21  ;;  %2408 = vrot.lane.b32.xlu0 %v2400_v60, %s6994_s21 }
0x1584   :  { %2414 = vrot.lane.b32.xlu1 %v2403_v62, %s6994_s21  ;;  %2412 = vrot.lane.b32.xlu0 %v2402_v47, %s6994_s21 }
0x1588   :  { %2429 = vrot.lane.b32.xlu0 %v2427_v41, %s6786_s16 }
0x15f2   :  { %v5640_v35 = vpop.permute.xlu0 %2408 }
0x15f3   :  { %6997 = vst [vmem:[#allocation32_spill] sm:$0xff] %v5640_v35  ;;  %v2459_v35 = vrot.slane %v5648_v15, %v6965_v61 }
0x15f6   :  { %v5642_v60 = vpop.permute.xlu0 %2412 }
0x15f7   :  { %6998 = vst [vmem:[#allocation45_spill] sm:$0xff] %v5642_v60  ;;  %v2497_v60 = vrot.slane %v5648_v15, %v6964_v42 }
0x15fa   :  { %v2430_v18 = vpop.permute.xlu0 %2429 }
0x15fb   :  { %v2433_v23 = vmul.f32 %v2430_v18, %v5397_v33  ;;  %v2432_v62 = vmul.f32 %v2430_v18, %v5395_v39  ;;  %v2435_v41 = vmul.f32 %v2430_v18, %v5407_v2  ;;  %v2434_v47 = vmul.f32 %v2430_v18, %v5405_v12 }
0x15fd   :  { %2442 = vrot.lane.b32.xlu0 %v2433_v23, %s4068_s30  ;;  %2440 = vrot.lane.b32.xlu1 %v2432_v62, %s4068_s30 }
0x1601   :  { %2446 = vrot.lane.b32.xlu0 %v2435_v41, %s4068_s30  ;;  %2444 = vrot.lane.b32.xlu1 %v2434_v47, %s4068_s30  ;;  %v5666_v41 = vld [vmem:[#allocation3 + $0x28] sm:$0x3] }
0x1605   :  { %2499 = vrot.lane.b32.xlu0 %v2497_v60, %s4041_s3  ;;  %2461 = vrot.lane.b32.xlu1 %v2459_v35, %s4042_s29 }
0x166f   :  { %v5660_v23 = vpop.permute.xlu0 %2442 }
0x1670   :  { %6999 = vst [vmem:[#allocation33_spill] sm:$0xff] %v5660_v23 }
0x1673   :  { %v5662_v62 = vpop.permute.xlu0 %2446 }
0x1674   :  { %7000 = vst [vmem:[#allocation46_spill] sm:$0xff] %v5662_v62 }
0x1677   :  { %v2500_v18 = vpop.permute.xlu0 %2499 }
0x1678   :  { %v2503_v47 = vmul.f32 %v2500_v18, %v5397_v33  ;;  %v2504_v3 = vmul.f32 %v2500_v18, %v5664_v54  ;;  %v2502_v28 = vmul.f32 %v2500_v18, %v5395_v39  ;;  %v2506_v59 = vmul.f32 %v2500_v18, %v5407_v2 }
0x1679   :  { %v2507_v60 = vmul.f32 %v2500_v18, %v5666_v41  ;;  %v2505_v35 = vmul.f32 %v2500_v18, %v5405_v12 }
0x167a   :  { %v2515_v38 = vrot.slane %v2503_v47, 1  ;;  %v2517_v8 = vrot.slane %v2504_v3, 1  ;;  %v2514_v6 = vrot.slane %v2502_v28, 1  ;;  %v2520_v16 = vrot.slane %v2506_v59, 1  ;;  %v5685_v59 = vpop.permute.xlu1 %2410 }
0x167b   :  { %v2522_v23 = vrot.slane %v2507_v60, 1  ;;  %v2519_v46 = vrot.slane %v2505_v35, 1  ;;  %7001 = vst [vmem:[#allocation50_spill] sm:$0xff] %v5685_v59 }
0x167c   :  { %v2518_v62 = vsel %vm597_vm3, %v2515_v38, %v2517_v8  ;;  %v2516_v48 = vsel %vm597_vm3, %v2514_v6, %v2515_v38  ;;  %v2543_v8 = vrot.slane %v5648_v15, %v6967_v45 }
0x167d   :  { %2526 = vrot.lane.b32.xlu0 %v2518_v62, %s4054_s17  ;;  %2524 = vrot.lane.b32.xlu1 %v2516_v48, %s4054_s17  ;;  %v2523_v44 = vsel %vm597_vm3, %v2520_v16, %v2522_v23  ;;  %v2521_v18 = vsel %vm597_vm3, %v2519_v46, %v2520_v16 }
0x167e   :  { %v5687_v28 = vpop.permute.xlu1 %2414 }
0x167f   :  { %7002 = vst [vmem:[#allocation48_spill] sm:$0xff] %v5687_v28 }
0x1681   :  { %2530 = vrot.lane.b32.xlu0 %v2523_v44, %s4054_s17  ;;  %2528 = vrot.lane.b32.xlu1 %v2521_v18, %s4054_s17 }
0x1682   :  { %v5689_v6 = vpop.permute.xlu1 %2440 }
0x1683   :  { %7003 = vst [vmem:[#allocation51_spill] sm:$0xff] %v5689_v6 }
0x1685   :  { %2545 = vrot.lane.b32.xlu1 %v2543_v8, %s4044_s8 }
0x1686   :  { %v5691_v48 = vpop.permute.xlu1 %2444 }
0x1687   :  { %7004 = vst [vmem:[#allocation49_spill] sm:$0xff] %v5691_v48 }
0x168a   :  { %v5693_v38 = vpop.permute.xlu1 %2461 }
0x16ef   :  { %v5695_v44 = vpop.permute.xlu1 %2524 }
0x16f0   :  { %7005 = vst [vmem:[#allocation54_spill] sm:$0xff] %v5695_v44 }
0x16f3   :  { %v5697_v46 = vpop.permute.xlu1 %2528 }
0x16f4   :  { %7006 = vst [vmem:[#allocation52_spill] sm:$0xff] %v5697_v46 }
0x16f7   :  { %v2546_v16 = vpop.permute.xlu1 %2545 }
0x16f8   :  { %v2549_v3 = vmul.f32 %v2546_v16, %v5397_v33  ;;  %v2550_v23 = vmul.f32 %v2546_v16, %v5664_v54  ;;  %v2548_v62 = vmul.f32 %v2546_v16, %v5395_v39  ;;  %v2552_v47 = vmul.f32 %v2546_v16, %v5407_v2 }
0x16f9   :  { %v2553_v60 = vmul.f32 %v2546_v16, %v5666_v41  ;;  %v2551_v35 = vmul.f32 %v2546_v16, %v5405_v12  ;;  %v2589_v16 = vrot.slane %v5648_v15, %v6966_v24 }
0x16fa   :  { %v2561_v18 = vrot.slane %v2549_v3, 1  ;;  %v2563_v8 = vrot.slane %v2550_v23, 1  ;;  %v2560_v48 = vrot.slane %v2548_v62, 1  ;;  %v2566_v6 = vrot.slane %v2552_v47, 1 }
0x16fb   :  { %v2568_v28 = vrot.slane %v2553_v60, 1  ;;  %v2565_v59 = vrot.slane %v2551_v35, 1 }
0x16fc   :  { %v2564_v44 = vsel %vm597_vm3, %v2561_v18, %v2563_v8  ;;  %v2562_v46 = vsel %vm597_vm3, %v2560_v48, %v2561_v18  ;;  %v5716_v48 = vpop.permute.xlu0 %2526 }
0x16fd   :  { %2572 = vrot.lane.b32.xlu1 %v2564_v44, %s4055_s18  ;;  %2570 = vrot.lane.b32.xlu0 %v2562_v46, %s4055_s18  ;;  %v2569_v7 = vsel %vm597_vm3, %v2566_v6, %v2568_v28  ;;  %v2567_v10 = vsel %vm597_vm3, %v2565_v59, %v2566_v6  ;;  %7007 = vst [vmem:[#allocation55_spill] sm:$0xff] %v5716_v48 }
0x1700   :  { %v5718_v3 = vpop.permute.xlu0 %2530 }
0x1701   :  { %2576 = vrot.lane.b32.xlu1 %v2569_v7, %s4055_s18  ;;  %2574 = vrot.lane.b32.xlu0 %v2567_v10, %s4055_s18  ;;  %7008 = vst [vmem:[#allocation53_spill] sm:$0xff] %v5718_v3 }
0x1705   :  { %2591 = vrot.lane.b32.xlu0 %v2589_v16, %s4043_s7 }
0x176f   :  { %v5720_v44 = vpop.permute.xlu0 %2570 }
0x1770   :  { %7009 = vst [vmem:[#allocation58_spill] sm:$0xff] %v5720_v44 }
0x1773   :  { %v5722_v46 = vpop.permute.xlu0 %2574 }
0x1774   :  { %7010 = vst [vmem:[#allocation56_spill] sm:$0xff] %v5722_v46 }
0x1777   :  { %v2592_v28 = vpop.permute.xlu0 %2591 }
0x1778   :  { %v2595_v59 = vmul.f32 %v2592_v28, %v5397_v33  ;;  %v2596_v7 = vmul.f32 %v2592_v28, %v5664_v54  ;;  %v2594_v10 = vmul.f32 %v2592_v28, %v5395_v39  ;;  %v2598_v6 = vmul.f32 %v2592_v28, %v5407_v2 }
0x1779   :  { %v2599_v23 = vmul.f32 %v2592_v28, %v5666_v41  ;;  %v2597_v62 = vmul.f32 %v2592_v28, %v5405_v12  ;;  %v2635_v28 = vrot.slane %v5648_v15, %v6968_v11 }
0x177a   :  { %v2607_v47 = vrot.slane %v2595_v59, 1  ;;  %v2609_v60 = vrot.slane %v2596_v7, 1  ;;  %v2606_v35 = vrot.slane %v2594_v10, 1  ;;  %v2612_v18 = vrot.slane %v2598_v6, 1  ;;  %v5741_v59 = vpop.permute.xlu1 %2572 }
0x177b   :  { %v2614_v46 = vrot.slane %v2599_v23, 1  ;;  %v2611_v44 = vrot.slane %v2597_v62, 1  ;;  %7011 = vst [vmem:[#allocation59_spill] sm:$0xff] %v5741_v59 }
0x177c   :  { %v2610_v8 = vsel %vm597_vm3, %v2607_v47, %v2609_v60  ;;  %v2608_v16 = vsel %vm597_vm3, %v2606_v35, %v2607_v47 }
0x177d   :  { %2618 = vrot.lane.b32.xlu0 %v2610_v8, %s4056_s19  ;;  %2616 = vrot.lane.b32.xlu1 %v2608_v16, %s4056_s19  ;;  %v2615_v3 = vsel %vm597_vm3, %v2612_v18, %v2614_v46  ;;  %v2613_v48 = vsel %vm597_vm3, %v2611_v44, %v2612_v18 }
0x177e   :  { %v5743_v7 = vpop.permute.xlu1 %2576 }
0x177f   :  { %7012 = vst [vmem:[#allocation57_spill] sm:$0xff] %v5743_v7 }
0x1781   :  { %2622 = vrot.lane.b32.xlu0 %v2615_v3, %s4056_s19  ;;  %2620 = vrot.lane.b32.xlu1 %v2613_v48, %s4056_s19 }
0x1785   :  { %2637 = vrot.lane.b32.xlu1 %v2635_v28, %s4046_s10 }
0x17ef   :  { %v5745_v10 = vpop.permute.xlu1 %2616 }
0x17f0   :  { %7013 = vst [vmem:[#allocation62_spill] sm:$0xff] %v5745_v10 }
0x17f3   :  { %v5747_v6 = vpop.permute.xlu1 %2620 }
0x17f4   :  { %7014 = vst [vmem:[#allocation60_spill] sm:$0xff] %v5747_v6 }
0x17f7   :  { %v2638_v46 = vpop.permute.xlu1 %2637 }
0x17f8   :  { %v2641_v44 = vmul.f32 %v2638_v46, %v5397_v33  ;;  %v2642_v3 = vmul.f32 %v2638_v46, %v5664_v54  ;;  %v2640_v48 = vmul.f32 %v2638_v46, %v5395_v39  ;;  %v2644_v23 = vmul.f32 %v2638_v46, %v5407_v2 }
0x17f9   :  { %v2645_v62 = vmul.f32 %v2638_v46, %v5666_v41  ;;  %v2643_v47 = vmul.f32 %v2638_v46, %v5405_v12  ;;  %v2681_v46 = vrot.slane %v5648_v15, %v6969_v43 }
0x17fa   :  { %v2653_v60 = vrot.slane %v2641_v44, 1  ;;  %v2655_v35 = vrot.slane %v2642_v3, 1  ;;  %v2652_v18 = vrot.slane %v2640_v48, 1  ;;  %v2658_v8 = vrot.slane %v2644_v23, 1  ;;  %v5766_v44 = vpop.permute.xlu0 %2618 }
0x17fb   :  { %v2660_v6 = vrot.slane %v2645_v62, 1  ;;  %v2657_v10 = vrot.slane %v2643_v47, 1  ;;  %7015 = vst [vmem:[#allocation63_spill] sm:$0xff] %v5766_v44 }
0x17fc   :  { %v2656_v16 = vsel %vm597_vm3, %v2653_v60, %v2655_v35  ;;  %v2654_v28 = vsel %vm597_vm3, %v2652_v18, %v2653_v60 }
0x17fd   :  { %2664 = vrot.lane.b32.xlu1 %v2656_v16, %s4057_s20  ;;  %2662 = vrot.lane.b32.xlu0 %v2654_v28, %s4057_s20  ;;  %v2661_v7 = vsel %vm597_vm3, %v2658_v8, %v2660_v6  ;;  %v2659_v59 = vsel %vm597_vm3, %v2657_v10, %v2658_v8 }
0x17fe   :  { %v5768_v3 = vpop.permute.xlu0 %2622 }
0x17ff   :  { %7016 = vst [vmem:[#allocation61_spill] sm:$0xff] %v5768_v3 }
0x1801   :  { %2668 = vrot.lane.b32.xlu1 %v2661_v7, %s4057_s20  ;;  %2666 = vrot.lane.b32.xlu0 %v2659_v59, %s4057_s20 }
0x1805   :  { %2683 = vrot.lane.b32.xlu0 %v2681_v46, %s4045_s9 }
0x186f   :  { %v5770_v48 = vpop.permute.xlu0 %2662 }
0x1870   :  { %7017 = vst [vmem:[#allocation66_spill] sm:$0xff] %v5770_v48 }
0x1873   :  { %v5772_v23 = vpop.permute.xlu0 %2666 }
0x1874   :  { %7018 = vst [vmem:[#allocation64_spill] sm:$0xff] %v5772_v23 }
0x1877   :  { %v2684_v6 = vpop.permute.xlu0 %2683 }
0x1878   :  { %v2687_v10 = vmul.f32 %v2684_v6, %v5397_v33  ;;  %v2688_v7 = vmul.f32 %v2684_v6, %v5664_v54  ;;  %v2686_v59 = vmul.f32 %v2684_v6, %v5395_v39  ;;  %v2690_v62 = vmul.f32 %v2684_v6, %v5407_v2 }
0x1879   :  { %v2691_v47 = vmul.f32 %v2684_v6, %v5666_v41  ;;  %v2689_v60 = vmul.f32 %v2684_v6, %v5405_v12  ;;  %v2727_v6 = vrot.slane %v5648_v15, %v6972_v31 }
0x187a   :  { %v2699_v35 = vrot.slane %v2687_v10, 1  ;;  %v2701_v18 = vrot.slane %v2688_v7, 1  ;;  %v2698_v8 = vrot.slane %v2686_v59, 1  ;;  %v2704_v16 = vrot.slane %v2690_v62, 1  ;;  %v5791_v10 = vpop.permute.xlu1 %2664 }
0x187b   :  { %v2706_v48 = vrot.slane %v2691_v47, 1  ;;  %v2703_v23 = vrot.slane %v2689_v60, 1  ;;  %7019 = vst [vmem:[#allocation67_spill] sm:$0xff] %v5791_v10 }
0x187c   :  { %v2702_v28 = vsel %vm597_vm3, %v2699_v35, %v2701_v18  ;;  %v2700_v46 = vsel %vm597_vm3, %v2698_v8, %v2699_v35 }
0x187d   :  { %2710 = vrot.lane.b32.xlu0 %v2702_v28, %s4058_s22  ;;  %2708 = vrot.lane.b32.xlu1 %v2700_v46, %s4058_s22  ;;  %v2707_v3 = vsel %vm597_vm3, %v2704_v16, %v2706_v48  ;;  %v2705_v44 = vsel %vm597_vm3, %v2703_v23, %v2704_v16 }
0x187e   :  { %v5793_v7 = vpop.permute.xlu1 %2668 }
0x187f   :  { %7020 = vst [vmem:[#allocation65_spill] sm:$0xff] %v5793_v7  ;;  %v1983_v7 = vld [vmem:[#allocation9 + $0x18] sm:$0x7f] }
0x1881   :  { %2714 = vrot.lane.b32.xlu0 %v2707_v3, %s4058_s22  ;;  %2712 = vrot.lane.b32.xlu1 %v2705_v44, %s4058_s22 }
0x1885   :  { %2729 = vrot.lane.b32.xlu1 %v2727_v6, %s4047_s11 }
0x18ef   :  { %v5795_v59 = vpop.permute.xlu1 %2708 }
0x18f0   :  { %7021 = vst [vmem:[#allocation70_spill] sm:$0xff] %v5795_v59 }
0x18f3   :  { %v5797_v62 = vpop.permute.xlu1 %2712 }
0x18f4   :  { %7022 = vst [vmem:[#allocation68_spill] sm:$0xff] %v5797_v62 }
0x18f7   :  { %v2730_v48 = vpop.permute.xlu1 %2729 }
0x18f8   :  { %v2733_v23 = vmul.f32 %v2730_v48, %v5397_v33  ;;  %v2734_v3 = vmul.f32 %v2730_v48, %v5664_v54  ;;  %v2732_v44 = vmul.f32 %v2730_v48, %v5395_v39  ;;  %v2736_v47 = vmul.f32 %v2730_v48, %v5407_v2 }
0x18f9   :  { %v2737_v60 = vmul.f32 %v2730_v48, %v5666_v41  ;;  %v2735_v35 = vmul.f32 %v2730_v48, %v5405_v12  ;;  %v2819_v48 = vrot.slane %v1983_v7, %v6965_v61 }
0x18fa   :  { %v2745_v18 = vrot.slane %v2733_v23, 1  ;;  %v2747_v8 = vrot.slane %v2734_v3, 1  ;;  %v2744_v16 = vrot.slane %v2732_v44, 1  ;;  %v2750_v28 = vrot.slane %v2736_v47, 1 }
0x18fb   :  { %v2752_v59 = vrot.slane %v2737_v60, 1  ;;  %v2749_v62 = vrot.slane %v2735_v35, 1  ;;  %v2773_v23 = vrot.slane %v5648_v15, %v6975_v1  ;;  %v2911_v3 = vrot.slane %v1983_v7, %v6967_v45 }
0x18fc   :  { %v2748_v46 = vsel %vm597_vm3, %v2745_v18, %v2747_v8  ;;  %v2746_v6 = vsel %vm597_vm3, %v2744_v16, %v2745_v18  ;;  %v2865_v44 = vrot.slane %v1983_v7, %v6964_v42  ;;  %v3095_v15 = vrot.slane %v1983_v7, %v6972_v31  ;;  %v5843_v18 = vld [vmem:[#allocation9 + $0x28] sm:$0x7f] }
0x18fd   :  { %2756 = vrot.lane.b32.xlu1 %v2748_v46, %s4059_s23  ;;  %2754 = vrot.lane.b32.xlu0 %v2746_v6, %s4059_s23  ;;  %v2753_v10 = vsel %vm597_vm3, %v2750_v28, %v2752_v59  ;;  %v2751_v40 = vsel %vm597_vm3, %v2749_v62, %v2750_v28  ;;  %v3049_v59 = vrot.slane %v1983_v7, %v6969_v43  ;;  %v5828_v62 = vld [vmem:[#allocation9 + $0x20] sm:$0xff] }
0x18fe   :  { %v3179_v47 = vrot.slane %v5828_v62, %v6964_v42  ;;  %v3271_v60 = vrot.slane %v5828_v62, %v6966_v24  ;;  %v3363_v35 = vrot.slane %v5828_v62, %v6969_v43  ;;  %v3547_v8 = vrot.slane %v5843_v18, %v6964_v42 }
0x18ff   :  { %v3639_v16 = vrot.slane %v5843_v18, %v6966_v24  ;;  %v3731_v28 = vrot.slane %v5843_v18, %v6969_v43 }
0x1901   :  { %2760 = vrot.lane.b32.xlu1 %v2753_v10, %s4059_s23  ;;  %2758 = vrot.lane.b32.xlu0 %v2751_v40, %s4059_s23  ;;  %v3003_v10 = vrot.slane %v1983_v7, %v6968_v11  ;;  %v2957_v40 = vrot.slane %v1983_v7, %v6966_v24  ;;  %v3455_v7 = vrot.slane %v5828_v62, %v6975_v1  ;;  %v5855_v1 = vpop.permute.xlu0 %2710 }
0x1902   :  { %7023 = vst [vmem:[#allocation71_spill] sm:$0xff] %v5855_v1 }
0x1905   :  { %2821 = vrot.lane.b32.xlu1 %v2819_v48, %s4049_s13  ;;  %2775 = vrot.lane.b32.xlu0 %v2773_v23, %s4038_s6  ;;  %v5857_v46 = vpop.permute.xlu0 %2714 }
0x1906   :  { %7024 = vst [vmem:[#allocation69_spill] sm:$0xff] %v5857_v46 }
0x1909   :  { %2913 = vrot.lane.b32.xlu1 %v2911_v3, %s4051_s15  ;;  %2867 = vrot.lane.b32.xlu0 %v2865_v44, %s4048_s12 }
0x190d   :  { %3005 = vrot.lane.b32.xlu1 %v3003_v10, %s6986_s2  ;;  %2959 = vrot.lane.b32.xlu0 %v2957_v40, %s4050_s14 }
0x1911   :  { %3097 = vrot.lane.b32.xlu1 %v3095_v15, %s6786_s16  ;;  %3051 = vrot.lane.b32.xlu0 %v3049_v59, %s6834_s1 }
0x1915   :  { %3181 = vrot.lane.b32.xlu1 %v3179_v47, %s4041_s3 }
0x1919   :  { %3273 = vrot.lane.b32.xlu1 %v3271_v60, %s4043_s7 }
0x191d   :  { %3365 = vrot.lane.b32.xlu1 %v3363_v35, %s4045_s9 }
0x1921   :  { %3457 = vrot.lane.b32.xlu1 %v3455_v7, %s4038_s6 }
0x1925   :  { %3549 = vrot.lane.b32.xlu1 %v3547_v8, %s4048_s12 }
0x1929   :  { %3641 = vrot.lane.b32.xlu1 %v3639_v16, %s4050_s14 }
0x192d   :  { %3733 = vrot.lane.b32.xlu1 %v3731_v28, %s6834_s1 }
0x196f   :  { %v5859_v6 = vpop.permute.xlu1 %2756  ;;  %v5861_v48 = vpop.permute.xlu0 %2754 }
0x1970   :  { %7025 = vst [vmem:[#allocation74_spill] sm:$0xff] %v5859_v6  ;;  %7026 = vst [vmem:[#allocation72_spill] sm:$0xff] %v5861_v48 }
0x1973   :  { %v5863_v42 = vpop.permute.xlu1 %2760  ;;  %v5865_v23 = vpop.permute.xlu0 %2758 }
0x1974   :  { %7027 = vst [vmem:[#allocation75_spill] sm:$0xff] %v5863_v42  ;;  %7028 = vst [vmem:[#allocation73_spill] sm:$0xff] %v5865_v23 }
0x1977   :  { %v5867_v24 = vpop.permute.xlu0 %2775  ;;  %v5869_v3 = vpop.permute.xlu1 %2821 }
0x1978   :  { %v2779_v43 = vmul.f32 %v5867_v24, %v5397_v33  ;;  %v2780_v44 = vmul.f32 %v5867_v24, %v5664_v54  ;;  %v2778_v10 = vmul.f32 %v5867_v24, %v5395_v39  ;;  %v5879_v40 = vmul.f32 %v5867_v24, %v5407_v2 }
0x1979   :  { %v2783_v15 = vmul.f32 %v5867_v24, %v5666_v41  ;;  %v5885_v35 = vmul.f32 %v5869_v3, %v5397_v33  ;;  %v2826_v7 = vmul.f32 %v5869_v3, %v5664_v54 }
0x197a   :  { %v2791_v59 = vrot.slane %v2779_v43, 1  ;;  %v2793_v47 = vrot.slane %v2780_v44, 1  ;;  %v2790_v60 = vrot.slane %v2778_v10, 1  ;;  %v6693_v28 = vrot.slane %v5879_v40, 1 }
0x197b   :  { %v2798_v48 = vrot.slane %v2783_v15, 1  ;;  %v3225_v43 = vrot.slane %v5828_v62, %v6967_v45  ;;  %v5898_v44 = vmul.f32 %v5869_v3, %v5407_v2  ;;  %v5900_v10 = vpop.permute.xlu0 %2867  ;;  %v2839_v15 = vrot.slane %v2826_v7, 1  ;;  %v5927_v42 = vpop.permute.xlu1 %2913 }
0x197c   :  { %v2794_v8 = vsel %vm597_vm3, %v2791_v59, %v2793_v47  ;;  %v2792_v16 = vsel %vm597_vm3, %v2790_v60, %v2791_v59  ;;  %v6694_v47 = vrot.slane %v5885_v35, 1  ;;  %v2829_v60 = vmul.f32 %v5869_v3, %v5666_v41 }
0x197d   :  { %2802 = vrot.lane.b32.xlu1 %v2794_v8, %s4060_s24  ;;  %2800 = vrot.lane.b32.xlu0 %v2792_v16, %s4060_s24  ;;  %v2799_v59 = vsel %vm597_vm3, %v6693_v28, %v2798_v48  ;;  %v3317_v8 = vrot.slane %v5828_v62, %v6968_v11  ;;  %v5914_v16 = vmul.f32 %v5900_v10, %v5397_v33  ;;  %v6695_v7 = vrot.slane %v5898_v44, 1 }
0x197e   :  { %v2840_v48 = vsel %vm597_vm3, %v6694_v47, %v2839_v15  ;;  %v2844_v28 = vrot.slane %v2829_v60, 1  ;;  %v2872_v23 = vmul.f32 %v5900_v10, %v5664_v54  ;;  %v5934_v60 = vmul.f32 %v5900_v10, %v5407_v2 }
0x197f   :  { %v2918_v46 = vmul.f32 %v5927_v42, %v5664_v54  ;;  %v2921_v1 = vmul.f32 %v5927_v42, %v5666_v41  ;;  %v6000_v49 = vpop.permute.xlu1 %3005 }
0x1980   :  { %v2845_v15 = vsel %vm597_vm3, %v6695_v7, %v2844_v28  ;;  %v2885_v47 = vrot.slane %v2872_v23, 1  ;;  %v7029_v23 = vrot.slane %v5914_v16, 1  ;;  %v6696_v7 = vrot.slane %v5934_v60, 1 }
0x1981   :  { %2806 = vrot.lane.b32.xlu1 %v2799_v59, %s4060_s24  ;;  %3227 = vrot.lane.b32.xlu0 %v3225_v43, %s4044_s8  ;;  %v3409_v43 = vrot.slane %v5828_v62, %v6972_v31  ;;  %v5944_v59 = vmul.f32 %v5927_v42, %v5397_v33 }
0x1982   :  { %v2886_v28 = vsel %vm597_vm3, %v7029_v23, %v2885_v47  ;;  %v2931_v23 = vrot.slane %v2918_v46, 1 }
0x1985   :  { %2848 = vrot.lane.b32.xlu1 %v2840_v48, %s4061_s25  ;;  %3319 = vrot.lane.b32.xlu0 %v3317_v8, %s4046_s10  ;;  %v2875_v48 = vmul.f32 %v5900_v10, %v5666_v41  ;;  %v3501_v8 = vrot.slane %v5843_v18, %v6965_v61 }
0x1987   :  { %v2890_v6 = vrot.slane %v2875_v48, 1  ;;  %v6697_v48 = vrot.slane %v5944_v59, 1 }
0x1989   :  { %2852 = vrot.lane.b32.xlu1 %v2845_v15, %s4061_s25  ;;  %3411 = vrot.lane.b32.xlu0 %v3409_v43, %s4047_s11  ;;  %v3593_v43 = vrot.slane %v5843_v18, %v6967_v45  ;;  %v5958_v15 = vmul.f32 %v5927_v42, %v5407_v2  ;;  %v2891_v47 = vsel %vm597_vm3, %v6696_v7, %v2890_v6  ;;  %v2936_v7 = vrot.slane %v2921_v1, 1 }
0x198a   :  { %v3685_v45 = vrot.slane %v5843_v18, %v6968_v11  ;;  %v2781_v6 = vmul.f32 %v5867_v24, %v5405_v12  ;;  %v2932_v46 = vsel %vm597_vm3, %v6697_v48, %v2931_v23  ;;  %v3777_v11 = vrot.slane %v5843_v18, %v6972_v31 }
0x198b   :  { %v7030_v31 = vrot.slane %v5879_v40, 1  ;;  %v3010_v40 = vmul.f32 %v6000_v49, %v5664_v54 }
0x198c   :  { %v2795_v24 = vrot.slane %v2781_v6, 1 }
0x198d   :  { %3503 = vrot.lane.b32.xlu0 %v3501_v8, %s4049_s13  ;;  %2894 = vrot.lane.b32.xlu1 %v2886_v28, %s4062_s26  ;;  %v5966_v8 = vpop.permute.xlu0 %2959  ;;  %v6698_v28 = vrot.slane %v5958_v15, 1 }
0x198e   :  { %v5980_v36 = vmul.f32 %v5966_v8, %v5397_v33  ;;  %v5992_v1 = vmul.f32 %v5966_v8, %v5407_v2  ;;  %v2797_v18 = vsel %vm597_vm3, %v2795_v24, %v7030_v31  ;;  %v7031_v24 = vrot.slane %v5885_v35, 1 }
0x198f   :  { %v2937_v23 = vsel %vm597_vm3, %v6698_v28, %v2936_v7  ;;  %v2827_v7 = vmul.f32 %v5869_v3, %v5405_v12  ;;  %v3023_v31 = vrot.slane %v3010_v40, 1  ;;  %v3013_v35 = vmul.f32 %v6000_v49, %v5666_v41 }
0x1990   :  { %v6702_v48 = vrot.slane %v5980_v36, 1  ;;  %v6701_v63 = vrot.slane %v5992_v1, 1 }
0x1991   :  { %3595 = vrot.lane.b32.xlu0 %v3593_v43, %s4051_s15  ;;  %2898 = vrot.lane.b32.xlu1 %v2891_v47, %s4062_s26  ;;  %v2964_v43 = vmul.f32 %v5966_v8, %v5664_v54  ;;  %v2824_v47 = vmul.f32 %v5869_v3, %v5395_v39  ;;  %v3028_v40 = vrot.slane %v3013_v35, 1 }
0x1993   :  { %v2836_v6 = vrot.slane %v2824_v47, 1  ;;  %v2841_v47 = vrot.slane %v2827_v7, 1 }
0x1995   :  { %3687 = vrot.lane.b32.xlu0 %v3685_v45, %s6986_s2  ;;  %2940 = vrot.lane.b32.xlu1 %v2932_v46, %s4063_s27  ;;  %v2977_v45 = vrot.slane %v2964_v43, 1  ;;  %v2967_v46 = vmul.f32 %v5966_v8, %v5666_v41  ;;  %v2838_v3 = vsel %vm597_vm3, %v2836_v6, %v7031_v24  ;;  %v6049_v24 = vld [vmem:[#allocation3] sm:$0xff] }
0x1997   :  { %v2978_v43 = vsel %vm597_vm3, %v6702_v48, %v2977_v45  ;;  %v2982_v28 = vrot.slane %v2967_v46, 1  ;;  %v6028_v45 = vmul.f32 %v6000_v49, %v5407_v2 }
0x1999   :  { %3779 = vrot.lane.b32.xlu0 %v3777_v11, %s6786_s16  ;;  %2944 = vrot.lane.b32.xlu1 %v2937_v23, %s4063_s27  ;;  %v6015_v11 = vmul.f32 %v6000_v49, %v5397_v33  ;;  %v2870_v23 = vmul.f32 %v5900_v10, %v5395_v39  ;;  %v2983_v33 = vsel %vm597_vm3, %v6701_v63, %v2982_v28  ;;  %v7032_v39 = vrot.slane %v5898_v44, 1 }
0x199a   :  { %v6700_v7 = vrot.slane %v6028_v45, 1  ;;  %v2873_v28 = vmul.f32 %v5900_v10, %v5405_v12  ;;  %v7033_v12 = vrot.slane %v5914_v16, 1 }
0x199b   :  { %v6699_v46 = vrot.slane %v6015_v11, 1  ;;  %v2843_v2 = vsel %vm597_vm3, %v2841_v47, %v7032_v39  ;;  %v2882_v6 = vrot.slane %v2870_v23, 1  ;;  %v2916_v23 = vmul.f32 %v6049_v24, %v5927_v42 }
0x199c   :  { %v2887_v47 = vrot.slane %v2873_v28, 1  ;;  %v3029_v39 = vsel %vm597_vm3, %v6700_v7, %v3028_v40  ;;  %v7034_v28 = vrot.slane %v5934_v60, 1  ;;  %v7035_v60 = vrot.slane %v5944_v59, 1 }
0x199d   :  { %2804 = vrot.lane.b32.xlu0 %v2797_v18, %s4060_s24  ;;  %2986 = vrot.lane.b32.xlu1 %v2978_v43, %s4064_s28  ;;  %v6036_v18 = vpop.permute.xlu0 %3051  ;;  %v3024_v43 = vsel %vm597_vm3, %v6699_v46, %v3023_v31  ;;  %v2884_v10 = vsel %vm597_vm3, %v2882_v6, %v7033_v12  ;;  %v6066_v31 = vld [vmem:[#allocation3 + $0x18] sm:$0xff]  ;;  %v6074_v46 = vld [vmem:[#allocation3 + $0x20] sm:$0xff]  ;;  %v6080_v6 = vpop.permute.xlu1 %3097  ;;  %v2928_v40 = vrot.slane %v2916_v23, 1  ;;  %v2962_v23 = vmul.f32 %v6049_v24, %v5966_v8 }
0x199e   :  { %v3057_v35 = vmul.f32 %v6066_v31, %v6036_v18  ;;  %v6078_v16 = vmul.f32 %v6074_v46, %v6036_v18  ;;  %v2889_v12 = vsel %vm597_vm3, %v2887_v47, %v7034_v28  ;;  %v2919_v7 = vmul.f32 %v6066_v31, %v5927_v42 }
0x199f   :  { %v2930_v42 = vsel %vm597_vm3, %v2928_v40, %v7035_v60  ;;  %v2974_v60 = vrot.slane %v2962_v23, 1  ;;  %v3008_v23 = vmul.f32 %v6049_v24, %v6000_v49 }
0x19a0   :  { %v6704_v48 = vrot.slane %v6078_v16, 1  ;;  %v2933_v47 = vrot.slane %v2919_v7, 1  ;;  %v7036_v7 = vrot.slane %v5958_v15, 1  ;;  %v7037_v15 = vrot.slane %v5980_v36, 1 }
0x19a1   :  { %2846 = vrot.lane.b32.xlu0 %v2838_v3, %s4061_s25  ;;  %2990 = vrot.lane.b32.xlu1 %v2983_v33, %s4064_s28  ;;  %v3054_v3 = vmul.f32 %v6049_v24, %v6036_v18  ;;  %v6053_v33 = vld [vmem:[#allocation3 + $0x8] sm:$0xff]  ;;  %v6116_v59 = vpop.permute.xlu1 %3181  ;;  %v7038_v36 = vrot.slane %v5992_v1, 1 }
0x19a2   :  { %v6057_v44 = vmul.f32 %v6053_v33, %v6036_v18  ;;  %v2935_v40 = vsel %vm597_vm3, %v2933_v47, %v7036_v7 }
0x19a5   :  { %2850 = vrot.lane.b32.xlu0 %v2843_v2, %s4061_s25  ;;  %3032 = vrot.lane.b32.xlu1 %v3024_v43, %s6989_s0  ;;  %v3066_v2 = vrot.slane %v3054_v3, 1  ;;  %v6703_v43 = vrot.slane %v6057_v44, 1  ;;  %v3071_v3 = vrot.slane %v3057_v35, 1  ;;  %v3103_v35 = vmul.f32 %v6066_v31, %v6080_v6 }
0x19a7   :  { %v3068_v63 = vsel %vm597_vm3, %v3066_v2, %v6703_v43  ;;  %v3073_v2 = vsel %vm597_vm3, %v3071_v3, %v6704_v48  ;;  %v3117_v43 = vrot.slane %v3103_v35, 1  ;;  %v2965_v3 = vmul.f32 %v6066_v31, %v5966_v8 }
0x19a8   :  { %v2976_v8 = vsel %vm597_vm3, %v2974_v60, %v7037_v15  ;;  %v3187_v35 = vmul.f32 %v6066_v31, %v6116_v59 }
0x19a9   :  { %2892 = vrot.lane.b32.xlu0 %v2884_v10, %s4062_s26  ;;  %3036 = vrot.lane.b32.xlu1 %v3029_v39, %s6989_s0  ;;  %v3100_v10 = vmul.f32 %v6049_v24, %v6080_v6  ;;  %v6097_v39 = vmul.f32 %v6053_v33, %v6080_v6  ;;  %v2979_v47 = vrot.slane %v2965_v3, 1  ;;  %v3020_v3 = vrot.slane %v3008_v23, 1 }
0x19ab   :  { %v3112_v28 = vrot.slane %v3100_v10, 1  ;;  %v2981_v60 = vsel %vm597_vm3, %v2979_v47, %v7038_v36  ;;  %v2001_v36 = vmul.f32 %v6053_v33, %v5399_v13 }
0x19ad   :  { %2896 = vrot.lane.b32.xlu0 %v2889_v12, %s4062_s26  ;;  %3076 = vrot.lane.b32.xlu1 %v3068_v63, %s6994_s21  ;;  %v3113_v12 = vrot.slane %v6097_v39, 1  ;;  %v6114_v63 = vmul.f32 %v6074_v46, %v6080_v6 }
0x19af   :  { %v3114_v10 = vsel %vm597_vm3, %v3112_v28, %v3113_v12  ;;  %v6705_v48 = vrot.slane %v6114_v63, 1  ;;  %v7043_v39 = vrot.slane %v6114_v63, 1 }
0x19b1   :  { %2938 = vrot.lane.b32.xlu0 %v2930_v42, %s4063_s27  ;;  %3080 = vrot.lane.b32.xlu1 %v3073_v2, %s6994_s21  ;;  %v3184_v42 = vmul.f32 %v6049_v24, %v6116_v59  ;;  %v6133_v2 = vmul.f32 %v6053_v33, %v6116_v59  ;;  %v3119_v28 = vsel %vm597_vm3, %v3117_v43, %v6705_v48 }
0x19b2   :  { %v3011_v48 = vmul.f32 %v6066_v31, %v6000_v49 }
0x19b3   :  { %v3196_v7 = vrot.slane %v3184_v42, 2  ;;  %v3201_v42 = vrot.slane %v3187_v35, 2  ;;  %v7040_v35 = vrot.slane %v6028_v45, 1  ;;  %v2003_v45 = vmul.f32 %v6074_v46, %v5399_v13 }
0x19b4   :  { %v3025_v23 = vrot.slane %v3011_v48, 1  ;;  %v3059_v48 = vmul.f32 %v6036_v18, %v5666_v41 }
0x19b5   :  { %2942 = vrot.lane.b32.xlu0 %v2935_v40, %s4063_s27  ;;  %3122 = vrot.lane.b32.xlu1 %v3114_v10, %s4068_s30  ;;  %v3197_v40 = vrot.slane %v6133_v2, 2  ;;  %v6150_v10 = vmul.f32 %v6074_v46, %v6116_v59 }
0x19b6   :  { %v3027_v49 = vsel %vm597_vm3, %v3025_v23, %v7040_v35  ;;  %v3105_v35 = vmul.f32 %v6080_v6, %v5666_v41 }
0x19b7   :  { %v3198_v43 = vsel %vm1280_vm4, %v3196_v7, %v3197_v40  ;;  %v3202_v15 = vrot.slane %v6150_v10, 2  ;;  %v7052_v10 = vld [vmem:[#allocation47_spill] sm:$0xff] }
0x19b9   :  { %2984 = vrot.lane.b32.xlu0 %v2976_v8, %s4064_s28  ;;  %3126 = vrot.lane.b32.xlu1 %v3119_v28, %s4068_s30  ;;  %v7039_v8 = vrot.slane %v6015_v11, 1  ;;  %v3203_v47 = vsel %vm1280_vm4, %v3201_v42, %v3202_v15  ;;  %v3056_v28 = vmul.f32 %v6036_v18, %v5664_v54  ;;  %v3141_v11 = vrot.slane %v5828_v62, %v6965_v61 }
0x19ba   :  { %v3074_v62 = vrot.slane %v3059_v48, 1  ;;  %v3102_v18 = vmul.f32 %v6080_v6, %v5664_v54  ;;  %v3186_v6 = vmul.f32 %v6116_v59, %v5664_v54  ;;  %v3189_v48 = vmul.f32 %v6116_v59, %v5666_v41 }
0x19bb   :  { %v3022_v1 = vsel %vm597_vm3, %v3020_v3, %v7039_v8  ;;  %v3069_v7 = vrot.slane %v3056_v28, 1  ;;  %v2039_v3 = vadd.f32 %v5457_v5, %v2003_v45 }
0x19bc   :  { %v3115_v23 = vrot.slane %v3102_v18, 1 }
0x19bd   :  { %2988 = vrot.lane.b32.xlu0 %v2981_v60, %s4064_s28  ;;  %3206 = vrot.lane.b32.xlu1 %v3198_v43, %s4054_s17  ;;  %v2037_v60 = vadd.f32 %v5455_v50, %v2001_v36  ;;  %v7041_v43 = vrot.slane %v6057_v44, 1  ;;  %v2071_v8 = vadd.f32 %v5438_v14, %v2039_v3  ;;  %v7042_v44 = vrot.slane %v6078_v16, 1 }
0x19be   :  { %v3120_v16 = vrot.slane %v3105_v35, 1  ;;  %v7049_v35 = vld [vmem:[#allocation44_spill] sm:$0xff] }
0x19bf   :  { %v3070_v61 = vsel %vm597_vm3, %v7041_v43, %v3069_v7  ;;  %v2069_v42 = vadd.f32 %v5436_v21, %v2037_v60  ;;  %v2103_v5 = vadd.f32 %v5465_v57, %v2071_v8  ;;  %v3116_v57 = vsel %vm597_vm3, %v3113_v12, %v3115_v23  ;;  %v7044_v43 = vld [vmem:[#allocation29_spill] sm:$0xff] }
0x19c0   :  { %v3121_v12 = vsel %vm597_vm3, %v7043_v39, %v3120_v16  ;;  %v3199_v7 = vrot.slane %v3186_v6, 2 }
0x19c1   :  { %3030 = vrot.lane.b32.xlu0 %v3022_v1, %s6989_s0  ;;  %3210 = vrot.lane.b32.xlu1 %v3203_v47, %s4054_s17  ;;  %v6197_v1 = vpop.permute.xlu1 %3273  ;;  %v2101_v50 = vadd.f32 %v5463_v34, %v2069_v42  ;;  %v3075_v47 = vsel %vm597_vm3, %v7042_v44, %v3074_v62  ;;  %v2135_v14 = vadd.f32 %v5484_v27, %v2103_v5 }
0x19c3   :  { %v2133_v21 = vadd.f32 %v5482_v29, %v2101_v50  ;;  %v2167_v34 = vadd.f32 %v5503_v17, %v2135_v14  ;;  %v7046_v50 = vld [vmem:[#allocation34_spill] sm:$0xff]  ;;  %v7050_v14 = vld [vmem:[#allocation35_spill] sm:$0xff] }
0x19c5   :  { %3034 = vrot.lane.b32.xlu0 %v3027_v49, %s6989_s0  ;;  %v2165_v49 = vadd.f32 %v5501_v53, %v2133_v21  ;;  %v6212_v28 = vpop.permute.xlu1 %3365  ;;  %v2199_v27 = vadd.f32 %v5524_v51, %v2167_v34  ;;  %v2000_v53 = vmul.f32 %v6049_v24, %v5399_v13  ;;  %v7051_v34 = vld [vmem:[#allocation50_spill] sm:$0xff] }
0x19c7   :  { %v2197_v29 = vadd.f32 %v5522_v25, %v2165_v49  ;;  %v2002_v25 = vmul.f32 %v6066_v31, %v5399_v13  ;;  %v2036_v51 = vadd.f32 %v5432_v19, %v2000_v53  ;;  %v6245_v13 = vmul.f32 %v6053_v33, %v5693_v38 }
0x19c8   :  { %v2466_v19 = vmul.f32 %v5693_v38, %v5664_v54 }
0x19c9   :  { %3143 = vrot.lane.b32.xlu0 %v3141_v11, %s4042_s29  ;;  %v2229_v17 = vadd.f32 %v5541_v52, %v2197_v29  ;;  %v2231_v11 = vadd.f32 %v5543_v58, %v2199_v27  ;;  %v6236_v52 = vpop.permute.xlu1 %3457  ;;  %v2038_v58 = vadd.f32 %v5434_v9, %v2002_v25  ;;  %v2068_v63 = vadd.f32 %v5459_v37, %v2036_v51  ;;  %v7054_v27 = vld [vmem:[#allocation23_spill] sm:$0xff]  ;;  %v7057_v25 = vld [vmem:[#allocation46_spill] sm:$0xff] }
0x19ca   :  { %v2477_v18 = vrot.slane %v6245_v13, 1  ;;  %v2479_v42 = vrot.slane %v2466_v19, 1  ;;  %v7060_v19 = vld [vmem:[#allocation25_spill] sm:$0xff]  ;;  %v3279_v13 = vmul.f32 %v6066_v31, %v6197_v1 }
0x19cb   :  { %v2261_v36 = vadd.f32 %v5560_v0, %v2229_v17  ;;  %v2263_v45 = vadd.f32 %v5562_v20, %v2231_v11  ;;  %v3200_v0 = vsel %vm1280_vm4, %v3197_v40, %v3199_v7  ;;  %v3204_v20 = vrot.slane %v3189_v48, 2  ;;  %v7055_v17 = vld [vmem:[#allocation33_spill] sm:$0xff]  ;;  %v7056_v7 = vld [vmem:[#allocation36_spill] sm:$0xff] }
0x19cc   :  { %v2070_v9 = vadd.f32 %v5461_v56, %v2038_v58  ;;  %v2100_v2 = vadd.f32 %v5440_v32, %v2068_v63  ;;  %v2480_v29 = vsel %vm597_vm3, %v2477_v18, %v2479_v42  ;;  %v7059_v63 = vld [vmem:[#allocation37_spill] sm:$0xff]  ;;  %v7066_v42 = vld [vmem:[#allocation39_spill] sm:$0xff] }
0x19cd   :  { %3078 = vrot.lane.b32.xlu0 %v3070_v61, %s6994_s21  ;;  %v2293_v60 = vadd.f32 %v5579_v30, %v2261_v36  ;;  %v2295_v59 = vadd.f32 %v5581_v22, %v2263_v45  ;;  %v6256_v30 = vmul.f32 %v6074_v46, %v5693_v38  ;;  %v2469_v22 = vmul.f32 %v5693_v38, %v5666_v41  ;;  %v6265_v56 = vpop.permute.xlu1 %3549  ;;  %v7058_v36 = vld [vmem:[#allocation24_spill] sm:$0xff] }
0x19ce   :  { %v2102_v40 = vadd.f32 %v5442_v26, %v2070_v9  ;;  %v3205_v8 = vsel %vm1280_vm4, %v3202_v15, %v3204_v20  ;;  %v2132_v5 = vadd.f32 %v7046_v50, %v2100_v2  ;;  %v7053_v15 = vld [vmem:[#allocation48_spill] sm:$0xff]  ;;  %v7061_v20 = vld [vmem:[#allocation55_spill] sm:$0xff]  ;;  %v7067_v50 = vld [vmem:[#allocation57_spill] sm:$0xff] }
0x19cf   :  { %v2325_v37 = vadd.f32 %v5598_v4, %v2293_v60  ;;  %v2327_v3 = vadd.f32 %v5600_v55, %v2295_v59  ;;  %v7045_v4 = vld [vmem:[#allocation42_spill] sm:$0xff]  ;;  %v7047_v55 = vld [vmem:[#allocation31_spill] sm:$0xff]  ;;  %v2482_v32 = vrot.slane %v6256_v30, 1  ;;  %v2484_v26 = vrot.slane %v2469_v22, 1 }
0x19d0   :  { %v2164_v49 = vadd.f32 %v7050_v14, %v2132_v5  ;;  %v7086_v30 = vld [vmem:[#allocation54_spill] sm:$0xff] }
0x19d1   :  { %3082 = vrot.lane.b32.xlu0 %v3075_v47, %s6994_s21  ;;  %v2357_v61 = vadd.f32 %v7044_v43, %v2325_v37  ;;  %v2359_v62 = vadd.f32 %v7045_v4, %v2327_v3  ;;  %v7048_v47 = vld [vmem:[#allocation22_spill] sm:$0xff]  ;;  %v2485_v39 = vsel %vm597_vm3, %v2482_v32, %v2484_v26  ;;  %v7063_v3 = vld [vmem:[#allocation53_spill] sm:$0xff]  ;;  %v7069_v26 = vld [vmem:[#allocation63_spill] sm:$0xff] }
0x19d2   :  { %v2134_v23 = vadd.f32 %v7048_v47, %v2102_v40  ;;  %v2196_v53 = vadd.f32 %v7054_v27, %v2164_v49  ;;  %v7062_v37 = vld [vmem:[#allocation38_spill] sm:$0xff]  ;;  %v7072_v49 = vld [vmem:[#allocation28_spill] sm:$0xff] }
0x19d3   :  { %v2389_v44 = vadd.f32 %v7047_v55, %v2357_v61  ;;  %v2391_v21 = vadd.f32 %v7049_v35, %v2359_v62  ;;  %v7064_v40 = vld [vmem:[#allocation26_spill] sm:$0xff]  ;;  %v7065_v61 = vld [vmem:[#allocation59_spill] sm:$0xff] }
0x19d4   :  { %v2166_v16 = vadd.f32 %v7052_v10, %v2134_v23  ;;  %v2228_v45 = vadd.f32 %v7058_v36, %v2196_v53  ;;  %v7068_v55 = vld [vmem:[#allocation27_spill] sm:$0xff]  ;;  %v7070_v23 = vld [vmem:[#allocation40_spill] sm:$0xff]  ;;  %v7075_v53 = vld [vmem:[#allocation65_spill] sm:$0xff] }
0x19d5   :  { %3124 = vrot.lane.b32.xlu0 %v3116_v57, %s4068_s30  ;;  %v2421_v57 = vadd.f32 %v7051_v34, %v2389_v44  ;;  %v2423_v6 = vadd.f32 %v7053_v15, %v2391_v21  ;;  %v7071_v21 = vld [vmem:[#allocation61_spill] sm:$0xff]  ;;  %v7073_v10 = vld [vmem:[#allocation67_spill] sm:$0xff] }
0x19d6   :  { %v2198_v48 = vadd.f32 %v7056_v7, %v2166_v16  ;;  %v7077_v7 = vld [vmem:[#allocation71_spill] sm:$0xff]  ;;  %v7079_v36 = vld [vmem:[#allocation69_spill] sm:$0xff] }
0x19d7   :  { %v2453_v11 = vadd.f32 %v7055_v17, %v2421_v57  ;;  %v2455_v51 = vadd.f32 %v7057_v25, %v2423_v6  ;;  %v2464_v57 = vmul.f32 %v6049_v24, %v5693_v38  ;;  %v7078_v25 = vld [vmem:[#allocation43_spill] sm:$0xff] }
0x19d8   :  { %v2230_v60 = vadd.f32 %v7059_v63, %v2198_v48 }
0x19d9   :  { %3128 = vrot.lane.b32.xlu0 %v3121_v12, %s4068_s30  ;;  %v6290_v12 = vpop.permute.xlu1 %3641  ;;  %v2491_v58 = vadd.f32 %v2480_v29, %v2453_v11  ;;  %v2493_v59 = vadd.f32 %v2485_v39, %v2455_v51  ;;  %v7074_v29 = vld [vmem:[#allocation41_spill] sm:$0xff]  ;;  %v7076_v11 = vld [vmem:[#allocation30_spill] sm:$0xff] }
0x19da   :  { %v2262_v22 = vadd.f32 %v7062_v37, %v2230_v60  ;;  %v2476_v60 = vrot.slane %v2464_v57, 1  ;;  %v7082_v37 = vld [vmem:[#allocation75_spill] sm:$0xff] }
0x19db   :  { %v2537_v9 = vadd.f32 %v7061_v20, %v2491_v58  ;;  %v2539_v2 = vadd.f32 %v7063_v3, %v2493_v59  ;;  %v7080_v58 = vld [vmem:[#allocation32_spill] sm:$0xff]  ;;  %v2467_v59 = vmul.f32 %v6066_v31, %v5693_v38  ;;  %v3277_v38 = vmul.f32 %v6053_v33, %v6197_v1 }
0x19dd   :  { %3208 = vrot.lane.b32.xlu0 %v3200_v0, %s4054_s17  ;;  %v2260_v0 = vadd.f32 %v7060_v19, %v2228_v45  ;;  %v2583_v4 = vadd.f32 %v7065_v61, %v2537_v9  ;;  %v6302_v62 = vpop.permute.xlu1 %3733  ;;  %v2585_v5 = vadd.f32 %v7067_v50, %v2539_v2  ;;  %v7081_v19 = vld [vmem:[#allocation74_spill] sm:$0xff] }
0x19df   :  { %v2292_v43 = vadd.f32 %v7064_v40, %v2260_v0  ;;  %v2629_v47 = vadd.f32 %v7069_v26, %v2583_v4  ;;  %v2631_v14 = vadd.f32 %v7071_v21, %v2585_v5 }
0x19e1   :  { %3212 = vrot.lane.b32.xlu0 %v3205_v8, %s4054_s17  ;;  %v2294_v8 = vadd.f32 %v7066_v42, %v2262_v22  ;;  %v2324_v44 = vadd.f32 %v7068_v55, %v2292_v43  ;;  %v2675_v16 = vadd.f32 %v7073_v10, %v2629_v47  ;;  %v2677_v17 = vadd.f32 %v7075_v53, %v2631_v14  ;;  %v7084_v10 = vld [vmem:[#allocation51_spill] sm:$0xff]  ;;  %v6352_v53 = vld [vmem:[#allocation3 + $0x28] sm:$0x3] }
0x19e3   :  { %v2326_v35 = vadd.f32 %v7070_v23, %v2294_v8  ;;  %v2356_v34 = vadd.f32 %v7072_v49, %v2324_v44  ;;  %v2721_v48 = vadd.f32 %v7077_v7, %v2675_v16  ;;  %v2723_v45 = vadd.f32 %v7079_v36, %v2677_v17 }
0x19e4   :  { %v3281_v17 = vmul.f32 %v6352_v53, %v6197_v1 }
0x19e5   :  { %v2358_v27 = vadd.f32 %v7074_v29, %v2326_v35  ;;  %v2388_v39 = vadd.f32 %v7076_v11, %v2356_v34  ;;  %v2767_v0 = vadd.f32 %v7081_v19, %v2721_v48  ;;  %v2769_v22 = vadd.f32 %v7082_v37, %v2723_v45  ;;  %v7083_v34 = vld [vmem:[#allocation45_spill] sm:$0xff] }
0x19e6   :  { %v2481_v11 = vrot.slane %v2467_v59, 1  ;;  %v3289_v48 = vrot.slane %v3277_v38, 2  ;;  %v3296_v19 = vrot.slane %v3281_v17, 2  ;;  %v3293_v37 = vrot.slane %v3279_v13, 2  ;;  %v7090_v13 = vld [vmem:[#allocation62_spill] sm:$0xff] }
0x19e7   :  { %v2390_v51 = vadd.f32 %v7078_v25, %v2358_v27  ;;  %v2420_v63 = vadd.f32 %v7080_v58, %v2388_v39  ;;  %v3280_v27 = vmul.f32 %v6074_v46, %v6197_v1  ;;  %v7085_v58 = vld [vmem:[#allocation49_spill] sm:$0xff] }
0x19e9   :  { %v2422_v57 = vadd.f32 %v7083_v34, %v2390_v51  ;;  %v2452_v16 = vadd.f32 %v7084_v10, %v2420_v63  ;;  %v3294_v59 = vrot.slane %v3280_v27, 2  ;;  %v3369_v34 = vmul.f32 %v6053_v33, %v6212_v28 }
0x19eb   :  { %v2454_v63 = vadd.f32 %v7085_v58, %v2422_v57 }
0x19ef   :  { %v2803_v15 = vpop.permute.xlu1 %2802  ;;  %v6314_v6 = vpop.permute.xlu0 %2800 }
0x19f0   :  { %v2813_v42 = vadd.f32 %v2803_v15, %v2767_v0  ;;  %v2478_v15 = vsel %vm597_vm3, %v2476_v60, %v2477_v18  ;;  %v2483_v0 = vsel %vm597_vm3, %v2481_v11, %v2482_v32 }
0x19f1   :  { %v2490_v60 = vadd.f32 %v2478_v15, %v2452_v16 }
0x19f3   :  { %v2807_v20 = vpop.permute.xlu1 %2806  ;;  %v3228_v9 = vpop.permute.xlu0 %3227  ;;  %v2536_v32 = vadd.f32 %v7086_v30, %v2490_v60 }
0x19f4   :  { %v3231_v3 = vmul.f32 %v6053_v33, %v3228_v9  ;;  %v3232_v2 = vmul.f32 %v3228_v9, %v5664_v54  ;;  %v3230_v40 = vmul.f32 %v6049_v24, %v3228_v9  ;;  %v3234_v43 = vmul.f32 %v6074_v46, %v3228_v9  ;;  %v6335_v54 = vld [vmem:[#allocation3 + $0x10] sm:$0x3] }
0x19f5   :  { %v3235_v61 = vmul.f32 %v3228_v9, %v5666_v41  ;;  %v3233_v4 = vmul.f32 %v6066_v31, %v3228_v9  ;;  %v3278_v23 = vmul.f32 %v6335_v54, %v6197_v1  ;;  %v3276_v41 = vmul.f32 %v6049_v24, %v6197_v1 }
0x19f6   :  { %v3243_v8 = vrot.slane %v3231_v3, 2  ;;  %v3245_v50 = vrot.slane %v3232_v2, 2  ;;  %v3242_v5 = vrot.slane %v3230_v40, 2  ;;  %v3248_v26 = vrot.slane %v3234_v43, 2 }
0x19f7   :  { %v2849_v55 = vpop.permute.xlu1 %2848  ;;  %v3320_v44 = vpop.permute.xlu0 %3319  ;;  %v3250_v47 = vrot.slane %v3235_v61, 2  ;;  %v3247_v49 = vrot.slane %v3233_v4, 2  ;;  %v2815_v29 = vadd.f32 %v2807_v20, %v2769_v22  ;;  %v3291_v25 = vrot.slane %v3278_v23, 2 }
0x19f8   :  { %v2859_v35 = vadd.f32 %v2849_v55, %v2813_v42  ;;  %v3246_v21 = vsel %vm1280_vm4, %v3243_v8, %v3245_v50  ;;  %v3244_v14 = vsel %vm1280_vm4, %v3242_v5, %v3243_v8  ;;  %v3288_v45 = vrot.slane %v3276_v41, 2 }
0x19f9   :  { %3254 = vrot.lane.b32.xlu0 %v3246_v21, %s4055_s18  ;;  %3252 = vrot.lane.b32.xlu1 %v3244_v14, %s4055_s18  ;;  %v3251_v18 = vsel %vm1280_vm4, %v3248_v26, %v3250_v47  ;;  %v3249_v36 = vsel %vm1280_vm4, %v3247_v49, %v3248_v26  ;;  %v3292_v9 = vsel %vm1280_vm4, %v3289_v48, %v3291_v25  ;;  %v7088_v14 = vld [vmem:[#allocation58_spill] sm:$0xff] }
0x19fa   :  { %v3323_v22 = vmul.f32 %v6053_v33, %v3320_v44  ;;  %v3290_v2 = vsel %vm1280_vm4, %v3288_v45, %v3289_v48  ;;  %v3324_v40 = vmul.f32 %v6335_v54, %v3320_v44  ;;  %v3322_v43 = vmul.f32 %v6049_v24, %v3320_v44  ;;  %v7089_v48 = vld [vmem:[#allocation56_spill] sm:$0xff] }
0x19fb   :  { %v2853_v39 = vpop.permute.xlu1 %2852  ;;  %v6356_v7 = vpop.permute.xlu0 %3411  ;;  %v2492_v61 = vadd.f32 %v2483_v0, %v2454_v63  ;;  %v3297_v4 = vsel %vm1280_vm4, %v3294_v59, %v3296_v19  ;;  %v3295_v8 = vsel %vm1280_vm4, %v3293_v37, %v3294_v59  ;;  %v3326_v5 = vmul.f32 %v6074_v46, %v3320_v44  ;;  %v7091_v45 = vld [vmem:[#allocation60_spill] sm:$0xff] }
0x19fc   :  { %v2861_v51 = vadd.f32 %v2853_v39, %v2815_v29  ;;  %v3335_v50 = vrot.slane %v3323_v22, 2  ;;  %v3327_v55 = vmul.f32 %v6352_v53, %v3320_v44  ;;  %v3337_v47 = vrot.slane %v3324_v40, 2  ;;  %v7093_v40 = vld [vmem:[#allocation66_spill] sm:$0xff] }
0x19fd   :  { %3258 = vrot.lane.b32.xlu0 %v3251_v18, %s4055_s18  ;;  %3256 = vrot.lane.b32.xlu1 %v3249_v36, %s4055_s18  ;;  %v3334_v23 = vrot.slane %v3322_v43, 2  ;;  %v3325_v41 = vmul.f32 %v6066_v31, %v3320_v44  ;;  %v2582_v49 = vadd.f32 %v7088_v14, %v2536_v32  ;;  %v3340_v16 = vrot.slane %v3326_v5, 2 }
0x19fe   :  { %v3342_v15 = vrot.slane %v3327_v55, 2  ;;  %v3370_v29 = vmul.f32 %v6335_v54, %v6212_v28  ;;  %v3368_v44 = vmul.f32 %v6049_v24, %v6212_v28  ;;  %v3338_v17 = vsel %vm1280_vm4, %v3335_v50, %v3337_v47 }
0x19ff   :  { %v2895_v1 = vpop.permute.xlu1 %2894  ;;  %v6368_v20 = vpop.permute.xlu0 %3503  ;;  %v3336_v11 = vsel %vm1280_vm4, %v3334_v23, %v3335_v50  ;;  %v3339_v39 = vrot.slane %v3325_v41, 2  ;;  %v3372_v18 = vmul.f32 %v6074_v46, %v6212_v28  ;;  %v3373_v36 = vmul.f32 %v6352_v53, %v6212_v28  ;;  %v7095_v41 = vld [vmem:[#allocation70_spill] sm:$0xff] }
0x1a00   :  { %v2905_v3 = vadd.f32 %v2895_v1, %v2859_v35  ;;  %v7087_v35 = vld [vmem:[#allocation52_spill] sm:$0xff]  ;;  %v3381_v59 = vrot.slane %v3369_v34, 2  ;;  %v3383_v19 = vrot.slane %v3370_v29, 2  ;;  %v3380_v0 = vrot.slane %v3368_v44, 2 }
0x1a01   :  { %3300 = vrot.lane.b32.xlu0 %v3292_v9, %s4056_s19  ;;  %3298 = vrot.lane.b32.xlu1 %v3290_v2, %s4056_s19  ;;  %v2538_v21 = vadd.f32 %v7087_v35, %v2492_v61  ;;  %v3343_v9 = vsel %vm1280_vm4, %v3340_v16, %v3342_v15  ;;  %v3341_v37 = vsel %vm1280_vm4, %v3339_v39, %v3340_v16  ;;  %v3386_v30 = vrot.slane %v3372_v18, 2  ;;  %v7094_v61 = vld [vmem:[#allocation68_spill] sm:$0xff] }
0x1a02   :  { %v3371_v22 = vmul.f32 %v6066_v31, %v6212_v28  ;;  %v3388_v32 = vrot.slane %v3373_v36, 2  ;;  %v3384_v50 = vsel %vm1280_vm4, %v3381_v59, %v3383_v19  ;;  %v3415_v5 = vmul.f32 %v6053_v33, %v6356_v7 }
0x1a03   :  { %v2899_v38 = vpop.permute.xlu1 %2898  ;;  %v6379_v42 = vpop.permute.xlu0 %3595  ;;  %v2584_v25 = vadd.f32 %v7089_v48, %v2538_v21  ;;  %v3416_v28 = vmul.f32 %v6335_v54, %v6356_v7  ;;  %v3414_v23 = vmul.f32 %v6049_v24, %v6356_v7  ;;  %v7096_v21 = vld [vmem:[#allocation73_spill] sm:$0xff]  ;;  %v3418_v29 = vmul.f32 %v6074_v46, %v6356_v7  ;;  %v7097_v48 = vld [vmem:[#allocation72_spill] sm:$0xff] }
0x1a04   :  { %v2907_v26 = vadd.f32 %v2899_v38, %v2861_v51  ;;  %v2628_v51 = vadd.f32 %v7090_v13, %v2582_v49  ;;  %v3385_v47 = vrot.slane %v3371_v22, 2  ;;  %v3389_v49 = vsel %vm1280_vm4, %v3386_v30, %v3388_v32 }
0x1a05   :  { %3304 = vrot.lane.b32.xlu0 %v3297_v4, %s4056_s19  ;;  %3302 = vrot.lane.b32.xlu1 %v3295_v8, %s4056_s19  ;;  %v2630_v58 = vadd.f32 %v7091_v45, %v2584_v25  ;;  %v3427_v16 = vrot.slane %v3415_v5, 2  ;;  %v3429_v15 = vrot.slane %v3416_v28, 2  ;;  %v3419_v44 = vmul.f32 %v6352_v53, %v6356_v7 }
0x1a06   :  { %v2674_v43 = vadd.f32 %v7093_v40, %v2628_v51  ;;  %v3417_v39 = vmul.f32 %v6066_v31, %v6356_v7  ;;  %v3461_v51 = vmul.f32 %v6053_v33, %v6236_v52  ;;  %v3462_v18 = vmul.f32 %v6335_v54, %v6236_v52 }
0x1a07   :  { %v2941_v57 = vpop.permute.xlu1 %2940  ;;  %v6391_v10 = vpop.permute.xlu0 %3687  ;;  %v3460_v36 = vmul.f32 %v6049_v24, %v6236_v52  ;;  %v3434_v19 = vrot.slane %v3419_v44, 2 }
0x1a08   :  { %v2951_v27 = vadd.f32 %v2941_v57, %v2905_v3  ;;  %v7092_v3 = vld [vmem:[#allocation64_spill] sm:$0xff]  ;;  %v2720_v35 = vadd.f32 %v7095_v41, %v2674_v43  ;;  %v3473_v43 = vrot.slane %v3461_v51, 2  ;;  %v3554_v51 = vmul.f32 %v6335_v54, %v6265_v56 }
0x1a09   :  { %3346 = vrot.lane.b32.xlu0 %v3338_v17, %s4057_s20  ;;  %3344 = vrot.lane.b32.xlu1 %v3336_v11, %s4057_s20  ;;  %v2676_v2 = vadd.f32 %v7092_v3, %v2630_v58  ;;  %v3387_v17 = vsel %vm1280_vm4, %v3385_v47, %v3386_v30  ;;  %v3426_v11 = vrot.slane %v3414_v23, 2  ;;  %v3465_v3 = vmul.f32 %v6352_v53, %v6236_v52 }
0x1a0a   :  { %v2766_v25 = vadd.f32 %v7097_v48, %v2720_v35  ;;  %v3475_v30 = vrot.slane %v3462_v18, 2  ;;  %v3472_v32 = vrot.slane %v3460_v36, 2  ;;  %v3507_v47 = vmul.f32 %v6053_v33, %v6368_v20 }
0x1a0b   :  { %v2945_v63 = vpop.permute.xlu1 %2944  ;;  %v6408_v60 = vpop.permute.xlu0 %3779  ;;  %v2722_v4 = vadd.f32 %v7094_v61, %v2676_v2  ;;  %v3463_v61 = vmul.f32 %v6066_v31, %v6236_v52  ;;  %v3480_v28 = vrot.slane %v3465_v3, 2  ;;  %v3552_v18 = vmul.f32 %v6049_v24, %v6265_v56 }
0x1a0c   :  { %v2953_v1 = vadd.f32 %v2945_v63, %v2907_v26  ;;  %v3382_v26 = vsel %vm1280_vm4, %v3380_v0, %v3381_v59  ;;  %v2812_v45 = vadd.f32 %v6314_v6, %v2766_v25  ;;  %v3430_v63 = vsel %vm1280_vm4, %v3427_v16, %v3429_v15 }
0x1a0d   :  { %3350 = vrot.lane.b32.xlu0 %v3343_v9, %s4057_s20  ;;  %3348 = vrot.lane.b32.xlu1 %v3341_v37, %s4057_s20  ;;  %v2768_v14 = vadd.f32 %v7096_v21, %v2722_v4  ;;  %v3432_v59 = vrot.slane %v3418_v29, 2  ;;  %v3428_v9 = vsel %vm1280_vm4, %v3426_v11, %v3427_v16  ;;  %v3431_v37 = vrot.slane %v3417_v39, 2 }
0x1a0e   :  { %v3464_v6 = vmul.f32 %v6074_v46, %v6236_v52  ;;  %v3508_v52 = vmul.f32 %v6335_v54, %v6368_v20  ;;  %v3476_v41 = vsel %vm1280_vm4, %v3473_v43, %v3475_v30  ;;  %v3474_v35 = vsel %vm1280_vm4, %v3472_v32, %v3473_v43 }
0x1a0f   :  { %v2987_v38 = vpop.permute.xlu1 %2986  ;;  %v2805_v8 = vpop.permute.xlu0 %2804  ;;  %v3506_v21 = vmul.f32 %v6049_v24, %v6368_v20  ;;  %v3510_v15 = vmul.f32 %v6074_v46, %v6368_v20  ;;  %v3553_v39 = vmul.f32 %v6053_v33, %v6265_v56 }
0x1a10   :  { %v2997_v55 = vadd.f32 %v2987_v38, %v2951_v27  ;;  %v2814_v13 = vadd.f32 %v2805_v8, %v2768_v14  ;;  %v3435_v8 = vsel %vm1280_vm4, %v3432_v59, %v3434_v19  ;;  %v3478_v5 = vrot.slane %v3464_v6, 2 }
0x1a11   :  { %3392 = vrot.lane.b32.xlu0 %v3384_v50, %s4058_s22  ;;  %3390 = vrot.lane.b32.xlu1 %v3382_v26, %s4058_s22  ;;  %v3433_v50 = vsel %vm1280_vm4, %v3431_v37, %v3432_v59  ;;  %v3477_v26 = vrot.slane %v3463_v61, 2  ;;  %v3521_v16 = vrot.slane %v3508_v52, 2  ;;  %v3518_v44 = vrot.slane %v3506_v21, 2 }
0x1a12   :  { %v3481_v14 = vsel %vm1280_vm4, %v3478_v5, %v3480_v28  ;;  %v3555_v37 = vmul.f32 %v6066_v31, %v6265_v56  ;;  %v3599_v61 = vmul.f32 %v6053_v33, %v6379_v42 }
0x1a13   :  { %v2991_v34 = vpop.permute.xlu1 %2990  ;;  %v2847_v57 = vpop.permute.xlu0 %2846 }
0x1a14   :  { %v2999_v27 = vadd.f32 %v2991_v34, %v2953_v1  ;;  %v2858_v22 = vadd.f32 %v2847_v57, %v2812_v45  ;;  %v3479_v34 = vsel %vm1280_vm4, %v3477_v26, %v3478_v5  ;;  %v3519_v57 = vrot.slane %v3507_v47, 2 }
0x1a15   :  { %3396 = vrot.lane.b32.xlu0 %v3389_v49, %s4058_s22  ;;  %3394 = vrot.lane.b32.xlu1 %v3387_v17, %s4058_s22  ;;  %v3509_v17 = vmul.f32 %v6066_v31, %v6368_v20  ;;  %v3598_v5 = vmul.f32 %v6049_v24, %v6379_v42  ;;  %v3611_v47 = vrot.slane %v3599_v61, 2  ;;  %v3692_v61 = vmul.f32 %v6335_v54, %v6391_v10 }
0x1a16   :  { %v3522_v25 = vsel %vm1280_vm4, %v3519_v57, %v3521_v16  ;;  %v3646_v16 = vmul.f32 %v6335_v54, %v6290_v12 }
0x1a17   :  { %v3033_v58 = vpop.permute.xlu1 %3032  ;;  %v2851_v7 = vpop.permute.xlu0 %2850 }
0x1a18   :  { %v6450_v0 = vadd.f32 %v3033_v58, %v2997_v55  ;;  %v2860_v1 = vadd.f32 %v2851_v7, %v2814_v13  ;;  %v3524_v13 = vrot.slane %v3510_v15, 2  ;;  %v3523_v58 = vrot.slane %v3509_v17, 2 }
0x1a19   :  { %3438 = vrot.lane.b32.xlu0 %v3430_v63, %s4059_s23  ;;  %3436 = vrot.lane.b32.xlu1 %v3428_v9, %s4059_s23  ;;  %v3556_v7 = vmul.f32 %v6074_v46, %v6265_v56  ;;  %v3557_v63 = vmul.f32 %v6352_v53, %v6265_v56  ;;  %v3567_v9 = vrot.slane %v3554_v51, 2  ;;  %v3600_v56 = vmul.f32 %v6335_v54, %v6379_v42 }
0x1a1a   :  { %v3525_v3 = vsel %vm1280_vm4, %v3523_v58, %v3524_v13  ;;  %v3644_v15 = vmul.f32 %v6049_v24, %v6290_v12 }
0x1a1b   :  { %v3037_v2 = vpop.permute.xlu1 %3036  ;;  %v2893_v40 = vpop.permute.xlu0 %2892  ;;  %v3572_v43 = vrot.slane %v3557_v63, 2  ;;  %v3613_v52 = vrot.slane %v3600_v56, 2  ;;  %v3690_v56 = vmul.f32 %v6049_v24, %v6391_v10 }
0x1a1c   :  { %v6461_v4 = vadd.f32 %v3037_v2, %v2999_v27  ;;  %v2904_v38 = vadd.f32 %v2893_v40, %v2858_v22  ;;  %v3511_v27 = vmul.f32 %v6352_v53, %v6368_v20  ;;  %v3520_v20 = vsel %vm1280_vm4, %v3518_v44, %v3519_v57 }
0x1a1d   :  { %3442 = vrot.lane.b32.xlu0 %v3435_v8, %s4059_s23  ;;  %3440 = vrot.lane.b32.xlu1 %v3433_v50, %s4059_s23  ;;  %v3564_v2 = vrot.slane %v3552_v18, 2  ;;  %v3570_v40 = vrot.slane %v3556_v7, 2  ;;  %v3569_v50 = vrot.slane %v3555_v37, 2  ;;  %v3656_v63 = vrot.slane %v3644_v15, 2 }
0x1a1e   :  { %v3526_v45 = vrot.slane %v3511_v27, 2 }
0x1a1f   :  { %v2897_v55 = vpop.permute.xlu0 %2896  ;;  %v3077_v11 = vpop.permute.xlu1 %3076  ;;  %v3571_v21 = vsel %vm1280_vm4, %v3569_v50, %v3570_v40 }
0x1a20   :  { %v2906_v23 = vadd.f32 %v2897_v55, %v2860_v1  ;;  %v3565_v1 = vrot.slane %v3553_v39, 2  ;;  %v3527_v6 = vsel %vm1280_vm4, %v3524_v13, %v3526_v45  ;;  %v3573_v55 = vsel %vm1280_vm4, %v3570_v40, %v3572_v43 }
0x1a21   :  { %3484 = vrot.lane.b32.xlu0 %v3476_v41, %s4060_s24  ;;  %3482 = vrot.lane.b32.xlu1 %v3474_v35, %s4060_s24  ;;  %v3603_v41 = vmul.f32 %v6352_v53, %v6379_v42  ;;  %v3647_v45 = vmul.f32 %v6066_v31, %v6290_v12  ;;  %v3691_v40 = vmul.f32 %v6053_v33, %v6391_v10 }
0x1a22   :  { %v3568_v32 = vsel %vm1280_vm4, %v3565_v1, %v3567_v9  ;;  %v3566_v8 = vsel %vm1280_vm4, %v3564_v2, %v3565_v1 }
0x1a23   :  { %v2939_v49 = vpop.permute.xlu0 %2938  ;;  %v3081_v59 = vpop.permute.xlu1 %3080  ;;  %v3618_v39 = vrot.slane %v3603_v41, 2  ;;  %v3661_v2 = vrot.slane %v3647_v45, 2  ;;  %v3703_v41 = vrot.slane %v3691_v40, 2  ;;  %v3740_v45 = vmul.f32 %v6074_v46, %v6302_v62 }
0x1a24   :  { %v2950_v29 = vadd.f32 %v2939_v49, %v2904_v38  ;;  %v3601_v49 = vmul.f32 %v6066_v31, %v6379_v42 }
0x1a25   :  { %3488 = vrot.lane.b32.xlu0 %v3481_v14, %s4060_s24  ;;  %3486 = vrot.lane.b32.xlu1 %v3479_v34, %s4060_s24  ;;  %v3610_v14 = vrot.slane %v3598_v5, 2  ;;  %v3645_v34 = vmul.f32 %v6053_v33, %v6290_v12 }
0x1a26   :  { %v3615_v51 = vrot.slane %v3601_v49, 2  ;;  %v3705_v49 = vrot.slane %v3692_v61, 2 }
0x1a27   :  { %v2943_v48 = vpop.permute.xlu0 %2942  ;;  %v3123_v28 = vpop.permute.xlu1 %3122  ;;  %v3612_v13 = vsel %vm1280_vm4, %v3610_v14, %v3611_v47 }
0x1a28   :  { %v2952_v36 = vadd.f32 %v2943_v48, %v2906_v23  ;;  %v3602_v23 = vmul.f32 %v6074_v46, %v6379_v42  ;;  %v3614_v42 = vsel %vm1280_vm4, %v3611_v47, %v3613_v52  ;;  %v3649_v48 = vmul.f32 %v6352_v53, %v6290_v12 }
0x1a29   :  { %3530 = vrot.lane.b32.xlu0 %v3522_v25, %s4061_s25  ;;  %3528 = vrot.lane.b32.xlu1 %v3520_v20, %s4061_s25  ;;  %v3659_v20 = vrot.slane %v3646_v16, 2  ;;  %v3695_v16 = vmul.f32 %v6352_v53, %v6391_v10 }
0x1a2a   :  { %v3616_v17 = vrot.slane %v3602_v23, 2  ;;  %v3664_v1 = vrot.slane %v3649_v48, 2 }
0x1a2b   :  { %v2985_v19 = vpop.permute.xlu0 %2984  ;;  %v3127_v44 = vpop.permute.xlu1 %3126 }
0x1a2c   :  { %v2996_v22 = vadd.f32 %v2985_v19, %v2950_v29  ;;  %v3648_v29 = vmul.f32 %v6074_v46, %v6290_v12  ;;  %v3619_v7 = vsel %vm1280_vm4, %v3616_v17, %v3618_v39  ;;  %v3617_v37 = vsel %vm1280_vm4, %v3615_v51, %v3616_v17 }
0x1a2d   :  { %3534 = vrot.lane.b32.xlu0 %v3527_v6, %s4061_s25  ;;  %3532 = vrot.lane.b32.xlu1 %v3525_v3, %s4061_s25  ;;  %v3737_v39 = vmul.f32 %v6053_v33, %v6302_v62  ;;  %v3710_v51 = vrot.slane %v3695_v16, 2 }
0x1a2e   :  { %v3662_v19 = vrot.slane %v3648_v29, 2  ;;  %v3693_v29 = vmul.f32 %v6066_v31, %v6391_v10 }
0x1a2f   :  { %v2989_v30 = vpop.permute.xlu0 %2988 }
0x1a30   :  { %v2998_v38 = vadd.f32 %v2989_v30, %v2952_v36  ;;  %v3657_v36 = vrot.slane %v3645_v34, 2  ;;  %v3663_v23 = vsel %vm1280_vm4, %v3661_v2, %v3662_v19  ;;  %v3702_v34 = vrot.slane %v3690_v56, 2 }
0x1a31   :  { %3576 = vrot.lane.b32.xlu0 %v3568_v32, %s4062_s26  ;;  %3574 = vrot.lane.b32.xlu1 %v3566_v8, %s4062_s26 }
0x1a32   :  { %v3660_v5 = vsel %vm1280_vm4, %v3657_v36, %v3659_v20 }
0x1a33   :  { %v3031_v26 = vpop.permute.xlu0 %3030 }
0x1a34   :  { %v3042_v35 = vadd.f32 %v3031_v26, %v2996_v22 }
0x1a35   :  { %3580 = vrot.lane.b32.xlu0 %v3573_v55, %s4062_s26  ;;  %3578 = vrot.lane.b32.xlu1 %v3571_v21, %s4062_s26  ;;  %v3665_v55 = vsel %vm1280_vm4, %v3662_v19, %v3664_v1  ;;  %v3933_v19 = vld [vmem:[#allocation3 + $0x18] sm:$0xff] }
0x1a36   :  { %v3088_v57 = vadd.f32 %v3077_v11, %v3042_v35  ;;  %v3739_v1 = vmul.f32 %v3933_v19, %v6302_v62 }
0x1a37   :  { %v3035_v27 = vpop.permute.xlu0 %3034 }
0x1a38   :  { %v3134_v25 = vadd.f32 %v3123_v28, %v3088_v57  ;;  %v3044_v11 = vadd.f32 %v3035_v27, %v2998_v38  ;;  %v3658_v28 = vsel %vm1280_vm4, %v3656_v63, %v3657_v36  ;;  %v3694_v57 = vmul.f32 %v6074_v46, %v6391_v10 }
0x1a39   :  { %3622 = vrot.lane.b32.xlu0 %v3614_v42, %s4063_s27  ;;  %3620 = vrot.lane.b32.xlu1 %v3612_v13, %s4063_s27  ;;  %v3736_v10 = vmul.f32 %v6049_v24, %v6302_v62  ;;  %v3704_v13 = vsel %vm1280_vm4, %v3702_v34, %v3703_v41  ;;  %v3753_v40 = vrot.slane %v3739_v1, 2 }
0x1a3a   :  { %v3090_v18 = vadd.f32 %v3081_v59, %v3044_v11  ;;  %v3207_v59 = vpop.permute.xlu1 %3206 }
0x1a3b   :  { %v3144_v58 = vpop.permute.xlu0 %3143 }
0x1a3c   :  { %v3136_v9 = vadd.f32 %v3127_v44, %v3090_v18  ;;  %v3147_v22 = vmul.f32 %v6053_v33, %v3144_v58  ;;  %v6547_v6 = vmul.f32 %v6074_v46, %v3144_v58  ;;  %v3146_v12 = vmul.f32 %v6049_v24, %v3144_v58 }
0x1a3d   :  { %3626 = vrot.lane.b32.xlu0 %v3619_v7, %s4063_s27  ;;  %3624 = vrot.lane.b32.xlu1 %v3617_v37, %s4063_s27  ;;  %v3149_v3 = vmul.f32 %v6066_v31, %v3144_v58  ;;  %v3148_v26 = vmul.f32 %v6335_v54, %v3144_v58  ;;  %v3151_v17 = vmul.f32 %v6352_v53, %v3144_v58  ;;  %v3707_v18 = vrot.slane %v3693_v29, 2 }
0x1a3e   :  { %v3159_v43 = vrot.slane %v3147_v22, 2  ;;  %v3164_v30 = vrot.slane %v6547_v6, 2  ;;  %v3158_v38 = vrot.slane %v3146_v12, 2  ;;  %v3211_v21 = vpop.permute.xlu1 %3210  ;;  %v3738_v31 = vmul.f32 %v6335_v54, %v6302_v62 }
0x1a3f   :  { %v3079_v32 = vpop.permute.xlu0 %3078  ;;  %v3163_v8 = vrot.slane %v3149_v3, 2  ;;  %v3161_v42 = vrot.slane %v3148_v26, 2  ;;  %v3166_v36 = vrot.slane %v3151_v17, 2  ;;  %v3741_v58 = vmul.f32 %v6352_v53, %v6302_v62 }
0x1a40   :  { %v3089_v50 = vadd.f32 %v3079_v32, %v6450_v0  ;;  %v3160_v47 = vsel %vm1280_vm4, %v3158_v38, %v3159_v43  ;;  %v3749_v7 = vrot.slane %v3737_v39, 2  ;;  %v3751_v63 = vrot.slane %v3738_v31, 2 }
0x1a41   :  { %3668 = vrot.lane.b32.xlu0 %v3660_v5, %s4064_s28  ;;  %3666 = vrot.lane.b32.xlu1 %v3658_v28, %s4064_s28  ;;  %v3165_v52 = vsel %vm1280_vm4, %v3163_v8, %v3164_v30  ;;  %v3172_v0 = vadd.f32 %v3160_v47, %v3134_v25  ;;  %v3708_v25 = vrot.slane %v3694_v57, 2  ;;  %v3162_v33 = vsel %vm1280_vm4, %v3159_v43, %v3161_v42  ;;  %v3934_v43 = vld [vmem:[#allocation3 + $0x8] sm:$0xff]  ;;  %v3935_v8 = vld [vmem:[#allocation3] sm:$0xff] }
0x1a42   :  { %v3174_v35 = vadd.f32 %v3165_v52, %v3136_v9  ;;  %v3748_v6 = vrot.slane %v3736_v10, 2  ;;  %v3167_v46 = vsel %vm1280_vm4, %v3164_v30, %v3166_v36  ;;  %v3754_v12 = vrot.slane %v3740_v45, 2 }
0x1a43   :  { %v3083_v14 = vpop.permute.xlu0 %3082  ;;  %v6577_v44 = vadd.f32 %v3207_v59, %v3172_v0  ;;  %v3711_v37 = vsel %vm1280_vm4, %v3708_v25, %v3710_v51  ;;  %v3709_v22 = vsel %vm1280_vm4, %v3707_v18, %v3708_v25  ;;  %v3756_v3 = vrot.slane %v3741_v58, 2 }
0x1a44   :  { %v3091_v15 = vadd.f32 %v3083_v14, %v6461_v4  ;;  %v6579_v27 = vadd.f32 %v3211_v21, %v3174_v35  ;;  %v3706_v4 = vsel %vm1280_vm4, %v3703_v41, %v3705_v49  ;;  %v3783_v62 = vmul.f32 %v3934_v43, %v6408_v60 }
0x1a45   :  { %3672 = vrot.lane.b32.xlu0 %v3665_v55, %s4064_s28  ;;  %3670 = vrot.lane.b32.xlu1 %v3663_v23, %s4064_s28  ;;  %v3784_v32 = vmul.f32 %v6335_v54, %v6408_v60  ;;  %v3752_v56 = vsel %vm1280_vm4, %v3749_v7, %v3751_v63  ;;  %v3750_v38 = vsel %vm1280_vm4, %v3748_v6, %v3749_v7  ;;  %v3936_v54 = vld [vmem:[#allocation3 + $0x20] sm:$0xff] }
0x1a46   :  { %v3757_v30 = vsel %vm1280_vm4, %v3754_v12, %v3756_v3  ;;  %v3755_v28 = vsel %vm1280_vm4, %v3753_v40, %v3754_v12  ;;  %v3795_v55 = vrot.slane %v3783_v62, 2  ;;  %v3786_v47 = vmul.f32 %v3936_v54, %v6408_v60 }
0x1a47   :  { %v3125_v48 = vpop.permute.xlu0 %3124  ;;  %v3797_v26 = vrot.slane %v3784_v32, 2  ;;  %v3787_v41 = vmul.f32 %v6352_v53, %v6408_v60  ;;  %v3785_v0 = vmul.f32 %v3933_v19, %v6408_v60 }
0x1a48   :  { %v3135_v11 = vadd.f32 %v3125_v48, %v3089_v50  ;;  %v3782_v50 = vmul.f32 %v3935_v8, %v6408_v60  ;;  %v3800_v35 = vrot.slane %v3786_v47, 2  ;;  %v3881_v60 = vld [vmem:[%s6662_s4] ss:$0 sm:$0xff]  ;;  %s4069_s4 = smov [#allocation10]  }
0x1a49   :  { %3714 = vrot.lane.b32.xlu0 %v3706_v4, %s6989_s0  ;;  %3712 = vrot.lane.b32.xlu1 %v3704_v13, %s6989_s0  ;;  %v3798_v21 = vsel %vm1280_vm4, %v3795_v55, %v3797_v26  ;;  %v3802_v49 = vrot.slane %v3787_v41, 2  ;;  %v3799_v34 = vrot.slane %v3785_v0, 2 }
0x1a4a   :  { %v3173_v20 = vadd.f32 %v3162_v33, %v3135_v11  ;;  %v3794_v23 = vrot.slane %v3782_v50, 2 }
0x1a4b   :  { %v3129_v24 = vpop.permute.xlu0 %3128  ;;  %v3803_v57 = vsel %vm1280_vm4, %v3800_v35, %v3802_v49  ;;  %v3801_v53 = vsel %vm1280_vm4, %v3799_v34, %v3800_v35 }
0x1a4c   :  { %v3137_v9 = vadd.f32 %v3129_v24, %v3091_v15  ;;  %v3796_v14 = vsel %vm1280_vm4, %v3794_v23, %v3795_v55 }
0x1a4d   :  { %3718 = vrot.lane.b32.xlu0 %v3711_v37, %s6989_s0  ;;  %3716 = vrot.lane.b32.xlu1 %v3709_v22, %s6989_s0 }
0x1a4e   :  { %v3175_v59 = vadd.f32 %v3167_v46, %v3137_v9 }
0x1a4f   :  { %v3209_v2 = vpop.permute.xlu0 %3208 }
0x1a50   :  { %v3219_v61 = vadd.f32 %v3209_v2, %v3173_v20 }
0x1a51   :  { %3760 = vrot.lane.b32.xlu0 %v3752_v56, %s6994_s21  ;;  %3758 = vrot.lane.b32.xlu1 %v3750_v38, %s6994_s21 }
0x1a53   :  { %v3213_v5 = vpop.permute.xlu0 %3212 }
0x1a54   :  { %v3221_v52 = vadd.f32 %v3213_v5, %v3175_v59 }
0x1a55   :  { %3764 = vrot.lane.b32.xlu0 %v3757_v30, %s6994_s21  ;;  %3762 = vrot.lane.b32.xlu1 %v3755_v28, %s6994_s21 }
0x1a59   :  { %3806 = vrot.lane.b32.xlu0 %v3798_v21, %s4068_s30  ;;  %3804 = vrot.lane.b32.xlu1 %v3796_v14, %s4068_s30 }
0x1a5d   :  { %3810 = vrot.lane.b32.xlu0 %v3803_v57, %s4068_s30  ;;  %3808 = vrot.lane.b32.xlu1 %v3801_v53, %s4068_s30  ;;  %s3867_s30 = sshll.u32 %s4069_s4, 4  ;;  %s3868_s30 = int_to_ptr.vmem [resolvable:$true] %s3867_s30 }
0x1a5e   :  { %p4012_p11 = scmp.lt.s32.totalorder %s3868_s30, %s3868_s30 }
0x1a61   :  { %3826 = vrot.lane.b32.xlu1 %v3881_v60, %s4042_s29  ;;  %s4007_s29 = scalar_lea.vmem %s3868_s30, 512 }
0x1a62   :  { %p4008_p10 = scmp.ne.s32.totalorder %s3868_s30, %s4007_s29  ;;  %p4013_p12 = scmp.lt.s32.totalorder %s4007_s29, %s4007_s29 }
0x1a64   :  { %p4014_p13 = por %p4013_p12, %p4012_p11 }
0x1a66   :  { %p4015_p0 = pnand %p4014_p13, %p4008_p10 }
0x1a6b   :  { %v3253_v16 = vpop.permute.xlu1 %3252  ;;  %v3255_v15 = vpop.permute.xlu0 %3254 }
0x1a6c   :  { %v3264_v29 = vadd.f32 %v3253_v16, %v6577_v44  ;;  %v3265_v42 = vadd.f32 %v3255_v15, %v3219_v61 }
0x1a6f   :  { %v3257_v17 = vpop.permute.xlu1 %3256  ;;  %v3259_v39 = vpop.permute.xlu0 %3258 }
0x1a70   :  { %v3266_v48 = vadd.f32 %v3257_v17, %v6579_v27  ;;  %v3267_v4 = vadd.f32 %v3259_v39, %v3221_v52 }
0x1a73   :  { %v3299_v25 = vpop.permute.xlu1 %3298  ;;  %v3301_v31 = vpop.permute.xlu0 %3300 }
0x1a74   :  { %v3310_v10 = vadd.f32 %v3299_v25, %v3264_v29  ;;  %v3311_v11 = vadd.f32 %v3301_v31, %v3265_v42 }
0x1a77   :  { %v3303_v13 = vpop.permute.xlu1 %3302  ;;  %v3305_v51 = vpop.permute.xlu0 %3304 }
0x1a78   :  { %v3312_v18 = vadd.f32 %v3303_v13, %v3266_v48  ;;  %v3313_v33 = vadd.f32 %v3305_v51, %v3267_v4 }
0x1a7b   :  { %v3345_v36 = vpop.permute.xlu1 %3344  ;;  %v3347_v20 = vpop.permute.xlu0 %3346 }
0x1a7c   :  { %v3356_v45 = vadd.f32 %v3345_v36, %v3310_v10  ;;  %v3357_v52 = vadd.f32 %v3347_v20, %v3311_v11 }
0x1a7f   :  { %v3349_v58 = vpop.permute.xlu1 %3348  ;;  %v3351_v24 = vpop.permute.xlu0 %3350 }
0x1a80   :  { %v3358_v44 = vadd.f32 %v3349_v58, %v3312_v18  ;;  %v3359_v0 = vadd.f32 %v3351_v24, %v3313_v33 }
0x1a83   :  { %v3391_v7 = vpop.permute.xlu1 %3390  ;;  %v3393_v63 = vpop.permute.xlu0 %3392 }
0x1a84   :  { %v3402_v35 = vadd.f32 %v3391_v7, %v3356_v45  ;;  %v3403_v21 = vadd.f32 %v3393_v63, %v3357_v52 }
0x1a87   :  { %v3395_v19 = vpop.permute.xlu1 %3394  ;;  %v3397_v1 = vpop.permute.xlu0 %3396 }
0x1a88   :  { %v3404_v14 = vadd.f32 %v3395_v19, %v3358_v44  ;;  %v3405_v49 = vadd.f32 %v3397_v1, %v3359_v0 }
0x1a8b   :  { %v3437_v27 = vpop.permute.xlu1 %3436  ;;  %v3439_v9 = vpop.permute.xlu0 %3438 }
0x1a8c   :  { %v3448_v34 = vadd.f32 %v3437_v27, %v3402_v35  ;;  %v3449_v57 = vadd.f32 %v3439_v9, %v3403_v21  ;;  %v3939_v21 = vld [vmem:[#allocation4 + $0x18] sm:$0xff] }
0x1a8f   :  { %v3441_v37 = vpop.permute.xlu1 %3440  ;;  %v3443_v22 = vpop.permute.xlu0 %3442 }
0x1a90   :  { %v3450_v16 = vadd.f32 %v3441_v37, %v3404_v14  ;;  %v3451_v15 = vadd.f32 %v3443_v22, %v3405_v49  ;;  %v3940_v49 = vld [vmem:[#allocation4 + $0x10] sm:$0xff] }
0x1a93   :  { %v3483_v6 = vpop.permute.xlu1 %3482  ;;  %v3485_v46 = vpop.permute.xlu0 %3484 }
0x1a94   :  { %v3494_v29 = vadd.f32 %v3483_v6, %v3448_v34  ;;  %v3495_v42 = vadd.f32 %v3485_v46, %v3449_v57 }
0x1a97   :  { %v3487_v59 = vpop.permute.xlu1 %3486  ;;  %v3489_v12 = vpop.permute.xlu0 %3488 }
0x1a98   :  { %v3496_v17 = vadd.f32 %v3487_v59, %v3450_v16  ;;  %v3497_v39 = vadd.f32 %v3489_v12, %v3451_v15 }
0x1a9b   :  { %v3529_v3 = vpop.permute.xlu1 %3528  ;;  %v3531_v2 = vpop.permute.xlu0 %3530 }
0x1a9c   :  { %v3540_v48 = vadd.f32 %v3529_v3, %v3494_v29  ;;  %v3541_v4 = vadd.f32 %v3531_v2, %v3495_v42 }
0x1a9f   :  { %v3533_v40 = vpop.permute.xlu1 %3532  ;;  %v3535_v43 = vpop.permute.xlu0 %3534 }
0x1aa0   :  { %v3542_v10 = vadd.f32 %v3533_v40, %v3496_v17  ;;  %v3543_v11 = vadd.f32 %v3535_v43, %v3497_v39 }
0x1aa3   :  { %v3575_v62 = vpop.permute.xlu1 %3574  ;;  %v3577_v32 = vpop.permute.xlu0 %3576 }
0x1aa4   :  { %v3586_v13 = vadd.f32 %v3575_v62, %v3540_v48  ;;  %v3587_v51 = vadd.f32 %v3577_v32, %v3541_v4 }
0x1aa7   :  { %v3579_v61 = vpop.permute.xlu1 %3578  ;;  %v3581_v56 = vpop.permute.xlu0 %3580 }
0x1aa8   :  { %v3588_v18 = vadd.f32 %v3579_v61, %v3542_v10  ;;  %v3589_v33 = vadd.f32 %v3581_v56, %v3543_v11 }
0x1aab   :  { %v3621_v38 = vpop.permute.xlu1 %3620  ;;  %v3623_v8 = vpop.permute.xlu0 %3622 }
0x1aac   :  { %v3632_v36 = vadd.f32 %v3621_v38, %v3586_v13  ;;  %v3633_v20 = vadd.f32 %v3623_v8, %v3587_v51 }
0x1aaf   :  { %v3625_v50 = vpop.permute.xlu1 %3624  ;;  %v3627_v30 = vpop.permute.xlu0 %3626 }
0x1ab0   :  { %v3634_v24 = vadd.f32 %v3625_v50, %v3588_v18  ;;  %v3635_v44 = vadd.f32 %v3627_v30, %v3589_v33 }
0x1ab3   :  { %v3667_v5 = vpop.permute.xlu1 %3666  ;;  %v3669_v28 = vpop.permute.xlu0 %3668 }
0x1ab4   :  { %v3678_v7 = vadd.f32 %v3667_v5, %v3632_v36  ;;  %v3679_v63 = vadd.f32 %v3669_v28, %v3633_v20 }
0x1ab7   :  { %v3671_v55 = vpop.permute.xlu1 %3670  ;;  %v3673_v26 = vpop.permute.xlu0 %3672 }
0x1ab8   :  { %v3680_v19 = vadd.f32 %v3671_v55, %v3634_v24  ;;  %v3681_v1 = vadd.f32 %v3673_v26, %v3635_v44 }
0x1abb   :  { %v3713_v54 = vpop.permute.xlu1 %3712  ;;  %v3715_v47 = vpop.permute.xlu0 %3714 }
0x1abc   :  { %v3724_v27 = vadd.f32 %v3713_v54, %v3678_v7  ;;  %v3725_v9 = vadd.f32 %v3715_v47, %v3679_v63  ;;  %v3937_v47 = vld [vmem:[#allocation4 + $0x8] sm:$0xff] }
0x1abf   :  { %v3717_v23 = vpop.permute.xlu1 %3716  ;;  %v3719_v41 = vpop.permute.xlu0 %3718 }
0x1ac0   :  { %v3726_v22 = vadd.f32 %v3717_v23, %v3680_v19  ;;  %v3727_v6 = vadd.f32 %v3719_v41, %v3681_v1  ;;  %v3938_v23 = vld [vmem:[#allocation4] sm:$0xff] }
0x1ac3   :  { %v3759_v53 = vpop.permute.xlu1 %3758  ;;  %v3761_v60 = vpop.permute.xlu0 %3760 }
0x1ac4   :  { %v3770_v46 = vadd.f32 %v3759_v53, %v3724_v27  ;;  %v3771_v59 = vadd.f32 %v3761_v60, %v3725_v9 }
0x1ac7   :  { %v3763_v25 = vpop.permute.xlu1 %3762  ;;  %v3765_v31 = vpop.permute.xlu0 %3764 }
0x1ac8   :  { %v3772_v3 = vadd.f32 %v3763_v25, %v3726_v22  ;;  %v3773_v2 = vadd.f32 %v3765_v31, %v3727_v6 }
0x1acb   :  { %v3805_v45 = vpop.permute.xlu1 %3804  ;;  %v3807_v58 = vpop.permute.xlu0 %3806 }
0x1acc   :  { %v3816_v40 = vadd.f32 %v3805_v45, %v3770_v46  ;;  %v3817_v43 = vadd.f32 %v3807_v58, %v3771_v59 }
0x1acf   :  { %v3809_v37 = vpop.permute.xlu1 %3808  ;;  %v3811_v12 = vpop.permute.xlu0 %3810 }
0x1ad0   :  { %v3818_v32 = vadd.f32 %v3809_v37, %v3772_v3  ;;  %v3819_v61 = vadd.f32 %v3811_v12, %v3773_v2 }
0x1ad3   :  { %v3827_v62 = vpop.permute.xlu1 %3826 }
0x1ad4   :  { %v3829_v56 = vadd.f32 %v3827_v62, %v3816_v40  ;;  %v3830_v38 = vadd.f32 %v3827_v62, %v3817_v43  ;;  %v3831_v8 = vadd.f32 %v3827_v62, %v3818_v32  ;;  %v3832_v50 = vadd.f32 %v3827_v62, %v3819_v61 }
0x1ad6   :  { %v3833_v30 = vmax.f32 %v3829_v56, 0.0  ;;  %v3834_v5 = vmax.f32 %v3830_v38, 0.0  ;;  %v3835_v28 = vmax.f32 %v3831_v8, 0.0  ;;  %v3836_v55 = vmax.f32 %v3832_v50, 0.0 }
0x1ad8   :  { %3841 = vrot.lane.b32.xlu0 %v3833_v30, %s4054_s17  ;;  %3843 = vrot.lane.b32.xlu1 %v3834_v5, %s4054_s17 }
0x1adc   :  { %3845 = vrot.lane.b32.xlu0 %v3835_v28, %s4054_s17  ;;  %3847 = vrot.lane.b32.xlu1 %v3836_v55, %s4054_s17 }
0x1b4a   :  { %v3844_v26 = vpop.permute.xlu1 %3843  ;;  %v3842_v54 = vpop.permute.xlu0 %3841 }
0x1b4b   :  { %v3854_v52 = vadd.f32 %v3937_v47, %v3844_v26  ;;  %v3853_v41 = vadd.f32 %v3938_v23, %v3842_v54 }
0x1b4d   :  { %3859 = vst.msk [vmem:[#allocation10 + $0x8] sm:$0xff] %vm3857_vm5, %v3854_v52  ;;  %3858 = vst.msk [vmem:[#allocation10] sm:$0xff] %vm3857_vm5, %v3853_v41 }
0x1b4e   :  { %v3848_v0 = vpop.permute.xlu1 %3847  ;;  %v3846_v35 = vpop.permute.xlu0 %3845 }
0x1b4f   :  { %v3856_v14 = vadd.f32 %v3939_v21, %v3848_v0  ;;  %v3855_v34 = vadd.f32 %v3940_v49, %v3846_v35 }
0x1b51   :  { %3861 = vst.msk [vmem:[#allocation10 + $0x18] sm:$0xff] %vm3857_vm5, %v3856_v14  ;;  %3860 = vst.msk [vmem:[#allocation10 + $0x10] sm:$0xff] %vm3857_vm5, %v3855_v34 }
0x1b52   :  { %4018 = shalt.err (!%p4015_p0)
}
0x1b53   :  { %s4019_s10 = scalar_lea.hbm %s6663_s5, 512 }
0x1b54   :  { %p4020_p1 = scmp.ne.s32.totalorder %s6663_s5, %s4019_s10  ;;  %p4023_p2 = scmp.lt.u32.totalorder %s4019_s10, %s6663_s5 }
0x1b56   :  { %p4025_p3 = pnand %p4023_p2, %p4020_p1 }
0x1b58   :  { %4028 = shalt.err (!%p4025_p3)
}
0x1b59   :  { %s7098_s15 = smov 128  }
0x1b5a   :  { %3873 = dma.vmem_to_hbm [thread:$0]  %s3868_s30, 512, %s6663_s5, [#allocation6], %s7098_s15, %s7098_s15, %s4038_s6  }
0x1b5b   :  { %4033 = dma.done.wait [#allocation6], 512  }
0x1b5c   :  { %4034 = vsyncadd [#allocation6], 4294966784 }
0x1b5d   :  { %3877 = vsyncpa [#allocation5], 1 }
0x1b5e   :  { %3878 = vsyncpa [#allocation8], 1 }
0x1b5f   :  { %3879 = vsyncpa [#allocation6], 1 }

</bundles_post_ra>
